<compile_context>
chip_gen: v7x
topology: tpu7x:2x2x1
jax: 0.10.0
libtpu: 0.0.40
codegen_flags: <defaults>
</compile_context>

<pallas_src>
import functools
import math

import numpy as np
import jax
import jax.numpy as jnp
from jax.experimental import pallas as pl
from jax.experimental.pallas import tpu as pltpu

# --------- small synthetic config (videomae-base scaled down) ----------------
CFG = dict(
    image_size=16, patch_size=8, num_channels=3, num_frames=4, tubelet_size=2,
    hidden_size=32, num_heads=4, num_layers=2, intermediate_size=64,
    layer_norm_eps=1e-12, num_labels=3,
)
OUT_PAD = 128  # lane-dense padded classifier width (sliced to num_labels outside)


# ------------------------------ helpers --------------------------------------
def sinusoid_table(n_position, d_hid):
    # VideoMAE fixed sinusoidal position embeddings (HF even/odd sin-cos interleave).
    pos = np.arange(n_position, dtype=np.float32)[:, None]
    i = np.arange(d_hid, dtype=np.float32)[None, :]
    angle = pos / np.power(10000.0, 2.0 * (np.floor(i / 2.0)) / d_hid)
    table = np.zeros((n_position, d_hid), dtype=np.float32)
    table[:, 0::2] = np.sin(angle[:, 0::2])
    table[:, 1::2] = np.cos(angle[:, 1::2])
    return jnp.asarray(table)


def _gelu(x):
    # TODO(synk): HF VideoMAE uses exact (erf) GELU; tanh approximation is kept
    # here for guaranteed Mosaic lowering (deviation ~1e-3 per activation).
    return 0.5 * x * (1.0 + jnp.tanh(0.7978845608028654 * (x + 0.044715 * x * x * x)))


# --------------------------- fused encoder kernel ----------------------------
def _encoder_kernel(
    patches_ref, posb_ref,
    patch_w_ref,
    ln1_g_ref, ln1_b_ref,
    wqkv_ref, bqkv_ref,
    wo_ref, bo_ref,
    ln2_g_ref, ln2_b_ref,
    w1_ref, b1_ref, w2_ref, b2_ref,
    fcn_g_ref, fcn_b_ref, fc_w_ref, fc_b_ref,
    out_ref,
    *, num_layers, num_heads, batch, seq, eps, scale, inv_s,
):
    """Whole VideoMAE encoder + mean-pool head; all batch tokens in one grid step."""
    bf16 = jnp.bfloat16

    def ln(x, g, b):
        mu = jnp.mean(x, axis=-1, keepdims=True)
        xc = x - mu
        var = jnp.mean(xc * xc, axis=-1, keepdims=True)
        return xc * jax.lax.rsqrt(var + eps) * g + b

    # --- patch embedding (Conv3d, stride==kernel -> matmul) + fixed pos emb + bias
    h = (jnp.dot(patches_ref[...], patch_w_ref[...],
                 preferred_element_type=jnp.float32)
         + posb_ref[...])                                            # (B*S, D) f32

    # --- transformer layers, all activations stay in vregs/VMEM
    for l in range(num_layers):
        n1 = ln(h, ln1_g_ref[l], ln1_b_ref[l])                       # (B*S, D)

        # fused QKV projection: one (B*S, D) @ (D, 3D) matmul (key has no bias:
        # the K slot of the packed bias is zero).
        qkv = (jnp.dot(n1.astype(bf16), wqkv_ref[l],
                       preferred_element_type=jnp.float32)
               + bqkv_ref[l])                                        # (B*S, 3D) f32
        d_model = qkv.shape[-1] // 3
        dh = d_model // num_heads

        # attention: per (batch, head) scores/softmax/ctx, no cross-batch mixing.
        ctx_rows = []
        for b in range(batch):
            r0 = b * seq
            ctx_heads = []
            for hd in range(num_heads):
                c0 = hd * dh
                q = qkv[r0:r0 + seq, c0:c0 + dh]
                k = qkv[r0:r0 + seq, d_model + c0:d_model + c0 + dh]
                v = qkv[r0:r0 + seq, 2 * d_model + c0:2 * d_model + c0 + dh]
                s = jax.lax.dot_general(
                    q.astype(bf16), k.astype(bf16), (((1,), (1,)), ((), ())),
                    preferred_element_type=jnp.float32) * scale       # (S, S)
                m = jnp.max(s, axis=-1, keepdims=True)
                p = jnp.exp(s - m)
                p = p * pl.reciprocal(jnp.sum(p, axis=-1, keepdims=True),
                                      approx=False)
                ctx_heads.append(jnp.dot(p.astype(bf16), v.astype(bf16),
                                         preferred_element_type=jnp.float32))
            ctx_rows.append(jnp.concatenate(ctx_heads, axis=-1))      # (S, D)
        ctx = jnp.concatenate(ctx_rows, axis=0)                       # (B*S, D)

        # fused output projection: concat(heads) @ (D, D) in one matmul
        attn_out = (jnp.dot(ctx.astype(bf16), wo_ref[l],
                            preferred_element_type=jnp.float32) + bo_ref[l])
        h = h + attn_out                                              # residual 1

        n2 = ln(h, ln2_g_ref[l], ln2_b_ref[l])
        m1 = _gelu(jnp.dot(n2.astype(bf16), w1_ref[l],
                           preferred_element_type=jnp.float32) + b1_ref[l])
        m2 = jnp.dot(m1.astype(bf16), w2_ref[l],
                     preferred_element_type=jnp.float32) + b2_ref[l]
        h = h + m2                                                    # residual 2

    # --- use_mean_pooling head: mean over tokens -> fc_norm -> (Identity) -> fc
    pooled = jnp.concatenate(
        [jnp.sum(h[b * seq:(b + 1) * seq], axis=0, keepdims=True)
         for b in range(batch)], axis=0) * inv_s                      # (B, D)
    normed = ln(pooled, fcn_g_ref[...], fcn_b_ref[...])
    out_ref[...] = (jnp.dot(normed.astype(bf16), fc_w_ref[...],
                            preferred_element_type=jnp.float32)
                    + fc_b_ref[...])                                  # (B, 128)


def _full_spec(arr):
    zeros = (0,) * arr.ndim
    return pl.BlockSpec(arr.shape, lambda i, _z=zeros: _z)


def encoder_forward(patches, pos_bias, params, cfg, batch, seq):
    D = cfg["hidden_size"]
    nh = cfg["num_heads"]
    dh = D // nh
    n_pad = params["fc_w"].shape[-1]

    kernel = functools.partial(
        _encoder_kernel,
        num_layers=cfg["num_layers"], num_heads=nh, batch=batch, seq=seq,
        eps=cfg["layer_norm_eps"], scale=1.0 / math.sqrt(dh), inv_s=1.0 / seq)

    args = (patches, pos_bias,
            params["patch_w"],
            params["ln1_g"], params["ln1_b"],
            params["wqkv"], params["bqkv"],
            params["wo"], params["bo"],
            params["ln2_g"], params["ln2_b"],
            params["w1"], params["b1"], params["w2"], params["b2"],
            params["fc_norm_g"], params["fc_norm_b"],
            params["fc_w"], params["fc_b"])

    in_specs = [_full_spec(a) for a in args]

    return pl.pallas_call(
        kernel,
        out_shape=jax.ShapeDtypeStruct((batch, n_pad), jnp.float32),
        grid=(1,),                      # batch folded into one step (latency-bound)
        in_specs=in_specs,
        out_specs=pl.BlockSpec((batch, n_pad), lambda i: (0, 0)),
        compiler_params=pltpu.CompilerParams(dimension_semantics=("arbitrary",)),
    )(*args)


# ------------------------------- glue / params -------------------------------
def init_params(key, cfg):
    # TODO(synk): the original module loads pretrained VideoMAE + DEAP weights
    # via torch.load / from_pretrained; here parameters are synthetic.
    D, I, L = cfg["hidden_size"], cfg["intermediate_size"], cfg["num_layers"]
    Pd = cfg["num_channels"] * cfg["tubelet_size"] * cfg["patch_size"] ** 2
    N = cfg["num_labels"]
    keys = iter(jax.random.split(key, 32))

    def w(shape, s=0.02, dtype=jnp.bfloat16):
        return (jax.random.normal(next(keys), shape, jnp.float32) * s).astype(dtype)

    # VideoMAE: q and v projections have bias, key projection has none ->
    # the packed QKV bias keeps a zero slot for K.
    bq = w((L, 1, D), dtype=jnp.float32)
    bv = w((L, 1, D), dtype=jnp.float32)
    bqkv = jnp.concatenate([bq, jnp.zeros((L, 1, D), jnp.float32), bv], axis=-1)

    # classifier weights lane-padded to OUT_PAD (extra columns are zero).
    fc_w = jnp.zeros((D, OUT_PAD), jnp.float32).at[:, :N].set(
        jax.random.normal(next(keys), (D, N), jnp.float32) * 0.02).astype(jnp.bfloat16)
    fc_b = jnp.zeros((1, OUT_PAD), jnp.float32).at[:, :N].set(
        jax.random.normal(next(keys), (1, N), jnp.float32) * 0.02)

    return dict(
        patch_w=w((Pd, D)), patch_b=w((1, D), dtype=jnp.float32),
        ln1_g=jnp.ones((L, 1, D), jnp.float32), ln1_b=jnp.zeros((L, 1, D), jnp.float32),
        wqkv=w((L, D, 3 * D)), bqkv=bqkv,
        wo=w((L, D, D)),                       # rows ordered [head0 | head1 | ...]
        bo=w((L, 1, D), dtype=jnp.float32),
        ln2_g=jnp.ones((L, 1, D), jnp.float32), ln2_b=jnp.zeros((L, 1, D), jnp.float32),
        w1=w((L, D, I)), b1=w((L, 1, I), dtype=jnp.float32),
        w2=w((L, I, D)), b2=w((L, 1, D), dtype=jnp.float32),
        fc_norm_g=jnp.ones((1, D), jnp.float32), fc_norm_b=jnp.zeros((1, D), jnp.float32),
        fc_w=fc_w, fc_b=fc_b,
    )


def vivit_forward(pixel_values, params, cfg, pos_table):
    """pixel_values: (B, T, C, H, W) float32 (HF VideoMAE layout)."""
    B, T, C, H_img, W_img = pixel_values.shape
    P, tub = cfg["patch_size"], cfg["tubelet_size"]
    Tp, Hp, Wp = T // tub, H_img // P, W_img // P
    S = Tp * Hp * Wp

    # Conv3d(stride == kernel) == non-overlapping tubelet extraction + matmul.
    x = jnp.transpose(pixel_values, (0, 2, 1, 3, 4))          # (B, C, T, H, W)
    x = x.reshape(B, C, Tp, tub, Hp, P, Wp, P)
    x = jnp.transpose(x, (0, 2, 4, 6, 1, 3, 5, 7))            # (B, Tp, Hp, Wp, C, tub, P, P)
    patches = x.reshape(B * S, C * tub * P * P).astype(jnp.bfloat16)   # (B*S, Pd)

    # fold patch-embed bias and fixed sinusoidal position table into one constant.
    pos_bias = jnp.tile(pos_table + params["patch_b"], (B, 1))          # (B*S, D)

    logits_padded = encoder_forward(patches, pos_bias, params, cfg, B, S)
    return logits_padded[:, :cfg["num_labels"]]


if __name__ == "__main__":
    key = jax.random.PRNGKey(0)
    pkey, xkey = jax.random.split(key)
    params = init_params(pkey, CFG)

    B = 2
    x = jax.random.normal(
        xkey,
        (B, CFG["num_frames"], CFG["num_channels"], CFG["image_size"], CFG["image_size"]),
        jnp.float32,
    )

    S = (CFG["num_frames"] // CFG["tubelet_size"]) * (CFG["image_size"] // CFG["patch_size"]) ** 2
    pos_table = sinusoid_table(S, CFG["hidden_size"])          # built once, constant

    forward = jax.jit(functools.partial(vivit_forward, cfg=CFG, pos_table=pos_table))
    out = jax.block_until_ready(forward(x, params))

    assert out.shape == (B, CFG["num_labels"])
    assert bool(jnp.all(jnp.isfinite(out)))
    print("KERNEL_OK")
</pallas_src>

<mosaic_0001>
module attributes {stable_mosaic.version = 11 : i64} {
  func.func @_encoder_kernel(%arg0: i32, %arg1: memref<16x384xbf16, #tpu.memory_space<vmem>>, %arg2: memref<16x32xf32, #tpu.memory_space<vmem>>, %arg3: memref<384x32xbf16, #tpu.memory_space<vmem>>, %arg4: memref<2x1x32xf32, #tpu.memory_space<vmem>>, %arg5: memref<2x1x32xf32, #tpu.memory_space<vmem>>, %arg6: memref<2x32x96xbf16, #tpu.memory_space<vmem>>, %arg7: memref<2x1x96xf32, #tpu.memory_space<vmem>>, %arg8: memref<2x32x32xbf16, #tpu.memory_space<vmem>>, %arg9: memref<2x1x32xf32, #tpu.memory_space<vmem>>, %arg10: memref<2x1x32xf32, #tpu.memory_space<vmem>>, %arg11: memref<2x1x32xf32, #tpu.memory_space<vmem>>, %arg12: memref<2x32x64xbf16, #tpu.memory_space<vmem>>, %arg13: memref<2x1x64xf32, #tpu.memory_space<vmem>>, %arg14: memref<2x64x32xbf16, #tpu.memory_space<vmem>>, %arg15: memref<2x1x32xf32, #tpu.memory_space<vmem>>, %arg16: memref<1x32xf32, #tpu.memory_space<vmem>>, %arg17: memref<1x32xf32, #tpu.memory_space<vmem>>, %arg18: memref<32x128xbf16, #tpu.memory_space<vmem>>, %arg19: memref<1x128xf32, #tpu.memory_space<vmem>>, %arg20: memref<2x128xf32, #tpu.memory_space<vmem>>) attributes {dimension_semantics = [#tpu.dimension_semantics<arbitrary>], iteration_bounds = array<i64: 1>, scalar_prefetch = 0 : i64, scratch_operands = 0 : i64, tpu.core_type = #tpu.core_type<tc>, window_params = [{pipeline_mode = #tpu.pipeline_mode<synchronous>, transform_indices = @transform_0, window_bounds = array<i64: 16, 384>}, {pipeline_mode = #tpu.pipeline_mode<synchronous>, transform_indices = @transform_1, window_bounds = array<i64: 16, 32>}, {pipeline_mode = #tpu.pipeline_mode<synchronous>, transform_indices = @transform_2, window_bounds = array<i64: 384, 32>}, {pipeline_mode = #tpu.pipeline_mode<synchronous>, transform_indices = @transform_3, window_bounds = array<i64: 2, 1, 32>}, {pipeline_mode = #tpu.pipeline_mode<synchronous>, transform_indices = @transform_4, window_bounds = array<i64: 2, 1, 32>}, {pipeline_mode = #tpu.pipeline_mode<synchronous>, transform_indices = @transform_5, window_bounds = array<i64: 2, 32, 96>}, {pipeline_mode = #tpu.pipeline_mode<synchronous>, transform_indices = @transform_6, window_bounds = array<i64: 2, 1, 96>}, {pipeline_mode = #tpu.pipeline_mode<synchronous>, transform_indices = @transform_7, window_bounds = array<i64: 2, 32, 32>}, {pipeline_mode = #tpu.pipeline_mode<synchronous>, transform_indices = @transform_8, window_bounds = array<i64: 2, 1, 32>}, {pipeline_mode = #tpu.pipeline_mode<synchronous>, transform_indices = @transform_9, window_bounds = array<i64: 2, 1, 32>}, {pipeline_mode = #tpu.pipeline_mode<synchronous>, transform_indices = @transform_10, window_bounds = array<i64: 2, 1, 32>}, {pipeline_mode = #tpu.pipeline_mode<synchronous>, transform_indices = @transform_11, window_bounds = array<i64: 2, 32, 64>}, {pipeline_mode = #tpu.pipeline_mode<synchronous>, transform_indices = @transform_12, window_bounds = array<i64: 2, 1, 64>}, {pipeline_mode = #tpu.pipeline_mode<synchronous>, transform_indices = @transform_13, window_bounds = array<i64: 2, 64, 32>}, {pipeline_mode = #tpu.pipeline_mode<synchronous>, transform_indices = @transform_14, window_bounds = array<i64: 2, 1, 32>}, {pipeline_mode = #tpu.pipeline_mode<synchronous>, transform_indices = @transform_15, window_bounds = array<i64: 1, 32>}, {pipeline_mode = #tpu.pipeline_mode<synchronous>, transform_indices = @transform_16, window_bounds = array<i64: 1, 32>}, {pipeline_mode = #tpu.pipeline_mode<synchronous>, transform_indices = @transform_17, window_bounds = array<i64: 32, 128>}, {pipeline_mode = #tpu.pipeline_mode<synchronous>, transform_indices = @transform_18, window_bounds = array<i64: 1, 128>}, {pipeline_mode = #tpu.pipeline_mode<synchronous>, transform_indices = @transform_19, window_bounds = array<i64: 2, 128>}]} {
    %c0 = arith.constant 0 : index
    %c0_0 = arith.constant 0 : index
    %0 = vector.load %arg1[%c0, %c0_0] : memref<16x384xbf16, #tpu.memory_space<vmem>>, vector<16x384xbf16>
    %c0_1 = arith.constant 0 : index
    %c0_2 = arith.constant 0 : index
    %1 = vector.load %arg3[%c0_1, %c0_2] : memref<384x32xbf16, #tpu.memory_space<vmem>>, vector<384x32xbf16>
    %cst = arith.constant dense<0.000000e+00> : vector<16x32xf32>
    %2 = tpu.matmul %0, %1, %cst {dimension_numbers = #tpu.dot_dimension_numbers<[1], [0], [0], [1], [0, 0, 1, 1], [], []>} : vector<16x384xbf16>, vector<384x32xbf16>, vector<16x32xf32> -> vector<16x32xf32>
    %c0_3 = arith.constant 0 : index
    %c0_4 = arith.constant 0 : index
    %3 = vector.load %arg2[%c0_3, %c0_4] : memref<16x32xf32, #tpu.memory_space<vmem>>, vector<16x32xf32>
    %4 = arith.addf %2, %3 : vector<16x32xf32>
    %c0_5 = arith.constant 0 : index
    %c0_6 = arith.constant 0 : index
    %c0_7 = arith.constant 0 : index
    %5 = vector.load %arg4[%c0_5, %c0_6, %c0_7] : memref<2x1x32xf32, #tpu.memory_space<vmem>>, vector<1x1x32xf32>
    %6 = vector.shape_cast %5 : vector<1x1x32xf32> to vector<1x32xf32>
    %c0_8 = arith.constant 0 : index
    %c0_9 = arith.constant 0 : index
    %c0_10 = arith.constant 0 : index
    %7 = vector.load %arg5[%c0_8, %c0_9, %c0_10] : memref<2x1x32xf32, #tpu.memory_space<vmem>>, vector<1x1x32xf32>
    %8 = vector.shape_cast %7 : vector<1x1x32xf32> to vector<1x32xf32>
    %cst_11 = arith.constant dense<0.000000e+00> : vector<16xf32>
    %9 = vector.multi_reduction <add>, %4, %cst_11 [1] : vector<16x32xf32> to vector<16xf32>
    %10 = vector.shape_cast %9 : vector<16xf32> to vector<16x1xf32>
    %cst_12 = arith.constant 3.200000e+01 : f32
    %11 = vector.broadcast %cst_12 : f32 to vector<16x1xf32>
    %12 = arith.divf %10, %11 : vector<16x1xf32>
    %13 = vector.broadcast %12 : vector<16x1xf32> to vector<16x32xf32>
    %14 = arith.subf %4, %13 : vector<16x32xf32>
    %15 = arith.mulf %14, %14 : vector<16x32xf32>
    %cst_13 = arith.constant dense<0.000000e+00> : vector<16xf32>
    %16 = vector.multi_reduction <add>, %15, %cst_13 [1] : vector<16x32xf32> to vector<16xf32>
    %17 = vector.shape_cast %16 : vector<16xf32> to vector<16x1xf32>
    %cst_14 = arith.constant 3.200000e+01 : f32
    %18 = vector.broadcast %cst_14 : f32 to vector<16x1xf32>
    %19 = arith.divf %17, %18 : vector<16x1xf32>
    %cst_15 = arith.constant 9.99999996E-13 : f32
    %20 = vector.broadcast %cst_15 : f32 to vector<16x1xf32>
    %21 = arith.addf %19, %20 : vector<16x1xf32>
    %22 = math.rsqrt %21 : vector<16x1xf32>
    %23 = vector.broadcast %22 : vector<16x1xf32> to vector<16x32xf32>
    %24 = arith.mulf %14, %23 : vector<16x32xf32>
    %25 = vector.broadcast %6 : vector<1x32xf32> to vector<16x32xf32>
    %26 = arith.mulf %24, %25 : vector<16x32xf32>
    %27 = vector.broadcast %8 : vector<1x32xf32> to vector<16x32xf32>
    %28 = arith.addf %26, %27 : vector<16x32xf32>
    %29 = arith.truncf %28 : vector<16x32xf32> to vector<16x32xbf16>
    %c0_16 = arith.constant 0 : index
    %c0_17 = arith.constant 0 : index
    %c0_18 = arith.constant 0 : index
    %30 = vector.load %arg6[%c0_16, %c0_17, %c0_18] : memref<2x32x96xbf16, #tpu.memory_space<vmem>>, vector<1x32x96xbf16>
    %31 = vector.shape_cast %30 : vector<1x32x96xbf16> to vector<32x96xbf16>
    %cst_19 = arith.constant dense<0.000000e+00> : vector<16x96xf32>
    %32 = tpu.matmul %29, %31, %cst_19 {dimension_numbers = #tpu.dot_dimension_numbers<[1], [0], [0], [1], [0, 0, 1, 1], [], []>} : vector<16x32xbf16>, vector<32x96xbf16>, vector<16x96xf32> -> vector<16x96xf32>
    %c0_20 = arith.constant 0 : index
    %c0_21 = arith.constant 0 : index
    %c0_22 = arith.constant 0 : index
    %33 = vector.load %arg7[%c0_20, %c0_21, %c0_22] : memref<2x1x96xf32, #tpu.memory_space<vmem>>, vector<1x1x96xf32>
    %34 = vector.shape_cast %33 : vector<1x1x96xf32> to vector<1x96xf32>
    %35 = vector.broadcast %34 : vector<1x96xf32> to vector<16x96xf32>
    %36 = arith.addf %32, %35 : vector<16x96xf32>
    %37 = vector.extract_strided_slice %36 {offsets = [0, 0], sizes = [8, 8], strides = [1, 1]} : vector<16x96xf32> to vector<8x8xf32>
    %38 = vector.extract_strided_slice %36 {offsets = [0, 32], sizes = [8, 8], strides = [1, 1]} : vector<16x96xf32> to vector<8x8xf32>
    %39 = vector.extract_strided_slice %36 {offsets = [0, 64], sizes = [8, 8], strides = [1, 1]} : vector<16x96xf32> to vector<8x8xf32>
    %40 = arith.truncf %37 : vector<8x8xf32> to vector<8x8xbf16>
    %41 = arith.truncf %38 : vector<8x8xf32> to vector<8x8xbf16>
    %cst_23 = arith.constant dense<0.000000e+00> : vector<8x8xf32>
    %42 = tpu.matmul %40, %41, %cst_23 {dimension_numbers = #tpu.dot_dimension_numbers<[1], [1], [0], [0], [0, 0, 1, 0], [], []>} : vector<8x8xbf16>, vector<8x8xbf16>, vector<8x8xf32> -> vector<8x8xf32>
    %cst_24 = arith.constant 0.353553385 : f32
    %43 = vector.broadcast %cst_24 : f32 to vector<8x8xf32>
    %44 = arith.mulf %42, %43 : vector<8x8xf32>
    %cst_25 = arith.constant dense<0xFF800000> : vector<8xf32>
    %45 = vector.multi_reduction <maximumf>, %44, %cst_25 [1] : vector<8x8xf32> to vector<8xf32>
    %46 = vector.shape_cast %45 : vector<8xf32> to vector<8x1xf32>
    %47 = vector.broadcast %46 : vector<8x1xf32> to vector<8x8xf32>
    %48 = arith.subf %44, %47 : vector<8x8xf32>
    %49 = math.exp %48 : vector<8x8xf32>
    %cst_26 = arith.constant dense<0.000000e+00> : vector<8xf32>
    %50 = vector.multi_reduction <add>, %49, %cst_26 [1] : vector<8x8xf32> to vector<8xf32>
    %51 = vector.shape_cast %50 : vector<8xf32> to vector<8x1xf32>
    %52 = tpu.reciprocal %51 : vector<8x1xf32> -> vector<8x1xf32>
    %53 = vector.broadcast %52 : vector<8x1xf32> to vector<8x8xf32>
    %54 = arith.mulf %49, %53 : vector<8x8xf32>
    %55 = arith.truncf %54 : vector<8x8xf32> to vector<8x8xbf16>
    %56 = arith.truncf %39 : vector<8x8xf32> to vector<8x8xbf16>
    %cst_27 = arith.constant dense<0.000000e+00> : vector<8x8xf32>
    %57 = tpu.matmul %55, %56, %cst_27 {dimension_numbers = #tpu.dot_dimension_numbers<[1], [0], [0], [1], [0, 0, 1, 1], [], []>} : vector<8x8xbf16>, vector<8x8xbf16>, vector<8x8xf32> -> vector<8x8xf32>
    %58 = vector.extract_strided_slice %36 {offsets = [0, 8], sizes = [8, 8], strides = [1, 1]} : vector<16x96xf32> to vector<8x8xf32>
    %59 = vector.extract_strided_slice %36 {offsets = [0, 40], sizes = [8, 8], strides = [1, 1]} : vector<16x96xf32> to vector<8x8xf32>
    %60 = vector.extract_strided_slice %36 {offsets = [0, 72], sizes = [8, 8], strides = [1, 1]} : vector<16x96xf32> to vector<8x8xf32>
    %61 = arith.truncf %58 : vector<8x8xf32> to vector<8x8xbf16>
    %62 = arith.truncf %59 : vector<8x8xf32> to vector<8x8xbf16>
    %cst_28 = arith.constant dense<0.000000e+00> : vector<8x8xf32>
    %63 = tpu.matmul %61, %62, %cst_28 {dimension_numbers = #tpu.dot_dimension_numbers<[1], [1], [0], [0], [0, 0, 1, 0], [], []>} : vector<8x8xbf16>, vector<8x8xbf16>, vector<8x8xf32> -> vector<8x8xf32>
    %cst_29 = arith.constant 0.353553385 : f32
    %64 = vector.broadcast %cst_29 : f32 to vector<8x8xf32>
    %65 = arith.mulf %63, %64 : vector<8x8xf32>
    %cst_30 = arith.constant dense<0xFF800000> : vector<8xf32>
    %66 = vector.multi_reduction <maximumf>, %65, %cst_30 [1] : vector<8x8xf32> to vector<8xf32>
    %67 = vector.shape_cast %66 : vector<8xf32> to vector<8x1xf32>
    %68 = vector.broadcast %67 : vector<8x1xf32> to vector<8x8xf32>
    %69 = arith.subf %65, %68 : vector<8x8xf32>
    %70 = math.exp %69 : vector<8x8xf32>
    %cst_31 = arith.constant dense<0.000000e+00> : vector<8xf32>
    %71 = vector.multi_reduction <add>, %70, %cst_31 [1] : vector<8x8xf32> to vector<8xf32>
    %72 = vector.shape_cast %71 : vector<8xf32> to vector<8x1xf32>
    %73 = tpu.reciprocal %72 : vector<8x1xf32> -> vector<8x1xf32>
    %74 = vector.broadcast %73 : vector<8x1xf32> to vector<8x8xf32>
    %75 = arith.mulf %70, %74 : vector<8x8xf32>
    %76 = arith.truncf %75 : vector<8x8xf32> to vector<8x8xbf16>
    %77 = arith.truncf %60 : vector<8x8xf32> to vector<8x8xbf16>
    %cst_32 = arith.constant dense<0.000000e+00> : vector<8x8xf32>
    %78 = tpu.matmul %76, %77, %cst_32 {dimension_numbers = #tpu.dot_dimension_numbers<[1], [0], [0], [1], [0, 0, 1, 1], [], []>} : vector<8x8xbf16>, vector<8x8xbf16>, vector<8x8xf32> -> vector<8x8xf32>
    %79 = vector.extract_strided_slice %36 {offsets = [0, 16], sizes = [8, 8], strides = [1, 1]} : vector<16x96xf32> to vector<8x8xf32>
    %80 = vector.extract_strided_slice %36 {offsets = [0, 48], sizes = [8, 8], strides = [1, 1]} : vector<16x96xf32> to vector<8x8xf32>
    %81 = vector.extract_strided_slice %36 {offsets = [0, 80], sizes = [8, 8], strides = [1, 1]} : vector<16x96xf32> to vector<8x8xf32>
    %82 = arith.truncf %79 : vector<8x8xf32> to vector<8x8xbf16>
    %83 = arith.truncf %80 : vector<8x8xf32> to vector<8x8xbf16>
    %cst_33 = arith.constant dense<0.000000e+00> : vector<8x8xf32>
    %84 = tpu.matmul %82, %83, %cst_33 {dimension_numbers = #tpu.dot_dimension_numbers<[1], [1], [0], [0], [0, 0, 1, 0], [], []>} : vector<8x8xbf16>, vector<8x8xbf16>, vector<8x8xf32> -> vector<8x8xf32>
    %cst_34 = arith.constant 0.353553385 : f32
    %85 = vector.broadcast %cst_34 : f32 to vector<8x8xf32>
    %86 = arith.mulf %84, %85 : vector<8x8xf32>
    %cst_35 = arith.constant dense<0xFF800000> : vector<8xf32>
    %87 = vector.multi_reduction <maximumf>, %86, %cst_35 [1] : vector<8x8xf32> to vector<8xf32>
    %88 = vector.shape_cast %87 : vector<8xf32> to vector<8x1xf32>
    %89 = vector.broadcast %88 : vector<8x1xf32> to vector<8x8xf32>
    %90 = arith.subf %86, %89 : vector<8x8xf32>
    %91 = math.exp %90 : vector<8x8xf32>
    %cst_36 = arith.constant dense<0.000000e+00> : vector<8xf32>
    %92 = vector.multi_reduction <add>, %91, %cst_36 [1] : vector<8x8xf32> to vector<8xf32>
    %93 = vector.shape_cast %92 : vector<8xf32> to vector<8x1xf32>
    %94 = tpu.reciprocal %93 : vector<8x1xf32> -> vector<8x1xf32>
    %95 = vector.broadcast %94 : vector<8x1xf32> to vector<8x8xf32>
    %96 = arith.mulf %91, %95 : vector<8x8xf32>
    %97 = arith.truncf %96 : vector<8x8xf32> to vector<8x8xbf16>
    %98 = arith.truncf %81 : vector<8x8xf32> to vector<8x8xbf16>
    %cst_37 = arith.constant dense<0.000000e+00> : vector<8x8xf32>
    %99 = tpu.matmul %97, %98, %cst_37 {dimension_numbers = #tpu.dot_dimension_numbers<[1], [0], [0], [1], [0, 0, 1, 1], [], []>} : vector<8x8xbf16>, vector<8x8xbf16>, vector<8x8xf32> -> vector<8x8xf32>
    %100 = vector.extract_strided_slice %36 {offsets = [0, 24], sizes = [8, 8], strides = [1, 1]} : vector<16x96xf32> to vector<8x8xf32>
    %101 = vector.extract_strided_slice %36 {offsets = [0, 56], sizes = [8, 8], strides = [1, 1]} : vector<16x96xf32> to vector<8x8xf32>
    %102 = vector.extract_strided_slice %36 {offsets = [0, 88], sizes = [8, 8], strides = [1, 1]} : vector<16x96xf32> to vector<8x8xf32>
    %103 = arith.truncf %100 : vector<8x8xf32> to vector<8x8xbf16>
    %104 = arith.truncf %101 : vector<8x8xf32> to vector<8x8xbf16>
    %cst_38 = arith.constant dense<0.000000e+00> : vector<8x8xf32>
    %105 = tpu.matmul %103, %104, %cst_38 {dimension_numbers = #tpu.dot_dimension_numbers<[1], [1], [0], [0], [0, 0, 1, 0], [], []>} : vector<8x8xbf16>, vector<8x8xbf16>, vector<8x8xf32> -> vector<8x8xf32>
    %cst_39 = arith.constant 0.353553385 : f32
    %106 = vector.broadcast %cst_39 : f32 to vector<8x8xf32>
    %107 = arith.mulf %105, %106 : vector<8x8xf32>
    %cst_40 = arith.constant dense<0xFF800000> : vector<8xf32>
    %108 = vector.multi_reduction <maximumf>, %107, %cst_40 [1] : vector<8x8xf32> to vector<8xf32>
    %109 = vector.shape_cast %108 : vector<8xf32> to vector<8x1xf32>
    %110 = vector.broadcast %109 : vector<8x1xf32> to vector<8x8xf32>
    %111 = arith.subf %107, %110 : vector<8x8xf32>
    %112 = math.exp %111 : vector<8x8xf32>
    %cst_41 = arith.constant dense<0.000000e+00> : vector<8xf32>
    %113 = vector.multi_reduction <add>, %112, %cst_41 [1] : vector<8x8xf32> to vector<8xf32>
    %114 = vector.shape_cast %113 : vector<8xf32> to vector<8x1xf32>
    %115 = tpu.reciprocal %114 : vector<8x1xf32> -> vector<8x1xf32>
    %116 = vector.broadcast %115 : vector<8x1xf32> to vector<8x8xf32>
    %117 = arith.mulf %112, %116 : vector<8x8xf32>
    %118 = arith.truncf %117 : vector<8x8xf32> to vector<8x8xbf16>
    %119 = arith.truncf %102 : vector<8x8xf32> to vector<8x8xbf16>
    %cst_42 = arith.constant dense<0.000000e+00> : vector<8x8xf32>
    %120 = tpu.matmul %118, %119, %cst_42 {dimension_numbers = #tpu.dot_dimension_numbers<[1], [0], [0], [1], [0, 0, 1, 1], [], []>} : vector<8x8xbf16>, vector<8x8xbf16>, vector<8x8xf32> -> vector<8x8xf32>
    %121 = tpu.concatenate %57, %78, %99, %120 in 1 : vector<8x8xf32>, vector<8x8xf32>, vector<8x8xf32>, vector<8x8xf32> -> vector<8x32xf32>
    %122 = vector.extract_strided_slice %36 {offsets = [8, 0], sizes = [8, 8], strides = [1, 1]} : vector<16x96xf32> to vector<8x8xf32>
    %123 = vector.extract_strided_slice %36 {offsets = [8, 32], sizes = [8, 8], strides = [1, 1]} : vector<16x96xf32> to vector<8x8xf32>
    %124 = vector.extract_strided_slice %36 {offsets = [8, 64], sizes = [8, 8], strides = [1, 1]} : vector<16x96xf32> to vector<8x8xf32>
    %125 = arith.truncf %122 : vector<8x8xf32> to vector<8x8xbf16>
    %126 = arith.truncf %123 : vector<8x8xf32> to vector<8x8xbf16>
    %cst_43 = arith.constant dense<0.000000e+00> : vector<8x8xf32>
    %127 = tpu.matmul %125, %126, %cst_43 {dimension_numbers = #tpu.dot_dimension_numbers<[1], [1], [0], [0], [0, 0, 1, 0], [], []>} : vector<8x8xbf16>, vector<8x8xbf16>, vector<8x8xf32> -> vector<8x8xf32>
    %cst_44 = arith.constant 0.353553385 : f32
    %128 = vector.broadcast %cst_44 : f32 to vector<8x8xf32>
    %129 = arith.mulf %127, %128 : vector<8x8xf32>
    %cst_45 = arith.constant dense<0xFF800000> : vector<8xf32>
    %130 = vector.multi_reduction <maximumf>, %129, %cst_45 [1] : vector<8x8xf32> to vector<8xf32>
    %131 = vector.shape_cast %130 : vector<8xf32> to vector<8x1xf32>
    %132 = vector.broadcast %131 : vector<8x1xf32> to vector<8x8xf32>
    %133 = arith.subf %129, %132 : vector<8x8xf32>
    %134 = math.exp %133 : vector<8x8xf32>
    %cst_46 = arith.constant dense<0.000000e+00> : vector<8xf32>
    %135 = vector.multi_reduction <add>, %134, %cst_46 [1] : vector<8x8xf32> to vector<8xf32>
    %136 = vector.shape_cast %135 : vector<8xf32> to vector<8x1xf32>
    %137 = tpu.reciprocal %136 : vector<8x1xf32> -> vector<8x1xf32>
    %138 = vector.broadcast %137 : vector<8x1xf32> to vector<8x8xf32>
    %139 = arith.mulf %134, %138 : vector<8x8xf32>
    %140 = arith.truncf %139 : vector<8x8xf32> to vector<8x8xbf16>
    %141 = arith.truncf %124 : vector<8x8xf32> to vector<8x8xbf16>
    %cst_47 = arith.constant dense<0.000000e+00> : vector<8x8xf32>
    %142 = tpu.matmul %140, %141, %cst_47 {dimension_numbers = #tpu.dot_dimension_numbers<[1], [0], [0], [1], [0, 0, 1, 1], [], []>} : vector<8x8xbf16>, vector<8x8xbf16>, vector<8x8xf32> -> vector<8x8xf32>
    %143 = vector.extract_strided_slice %36 {offsets = [8, 8], sizes = [8, 8], strides = [1, 1]} : vector<16x96xf32> to vector<8x8xf32>
    %144 = vector.extract_strided_slice %36 {offsets = [8, 40], sizes = [8, 8], strides = [1, 1]} : vector<16x96xf32> to vector<8x8xf32>
    %145 = vector.extract_strided_slice %36 {offsets = [8, 72], sizes = [8, 8], strides = [1, 1]} : vector<16x96xf32> to vector<8x8xf32>
    %146 = arith.truncf %143 : vector<8x8xf32> to vector<8x8xbf16>
    %147 = arith.truncf %144 : vector<8x8xf32> to vector<8x8xbf16>
    %cst_48 = arith.constant dense<0.000000e+00> : vector<8x8xf32>
    %148 = tpu.matmul %146, %147, %cst_48 {dimension_numbers = #tpu.dot_dimension_numbers<[1], [1], [0], [0], [0, 0, 1, 0], [], []>} : vector<8x8xbf16>, vector<8x8xbf16>, vector<8x8xf32> -> vector<8x8xf32>
    %cst_49 = arith.constant 0.353553385 : f32
    %149 = vector.broadcast %cst_49 : f32 to vector<8x8xf32>
    %150 = arith.mulf %148, %149 : vector<8x8xf32>
    %cst_50 = arith.constant dense<0xFF800000> : vector<8xf32>
    %151 = vector.multi_reduction <maximumf>, %150, %cst_50 [1] : vector<8x8xf32> to vector<8xf32>
    %152 = vector.shape_cast %151 : vector<8xf32> to vector<8x1xf32>
    %153 = vector.broadcast %152 : vector<8x1xf32> to vector<8x8xf32>
    %154 = arith.subf %150, %153 : vector<8x8xf32>
    %155 = math.exp %154 : vector<8x8xf32>
    %cst_51 = arith.constant dense<0.000000e+00> : vector<8xf32>
    %156 = vector.multi_reduction <add>, %155, %cst_51 [1] : vector<8x8xf32> to vector<8xf32>
    %157 = vector.shape_cast %156 : vector<8xf32> to vector<8x1xf32>
    %158 = tpu.reciprocal %157 : vector<8x1xf32> -> vector<8x1xf32>
    %159 = vector.broadcast %158 : vector<8x1xf32> to vector<8x8xf32>
    %160 = arith.mulf %155, %159 : vector<8x8xf32>
    %161 = arith.truncf %160 : vector<8x8xf32> to vector<8x8xbf16>
    %162 = arith.truncf %145 : vector<8x8xf32> to vector<8x8xbf16>
    %cst_52 = arith.constant dense<0.000000e+00> : vector<8x8xf32>
    %163 = tpu.matmul %161, %162, %cst_52 {dimension_numbers = #tpu.dot_dimension_numbers<[1], [0], [0], [1], [0, 0, 1, 1], [], []>} : vector<8x8xbf16>, vector<8x8xbf16>, vector<8x8xf32> -> vector<8x8xf32>
    %164 = vector.extract_strided_slice %36 {offsets = [8, 16], sizes = [8, 8], strides = [1, 1]} : vector<16x96xf32> to vector<8x8xf32>
    %165 = vector.extract_strided_slice %36 {offsets = [8, 48], sizes = [8, 8], strides = [1, 1]} : vector<16x96xf32> to vector<8x8xf32>
    %166 = vector.extract_strided_slice %36 {offsets = [8, 80], sizes = [8, 8], strides = [1, 1]} : vector<16x96xf32> to vector<8x8xf32>
    %167 = arith.truncf %164 : vector<8x8xf32> to vector<8x8xbf16>
    %168 = arith.truncf %165 : vector<8x8xf32> to vector<8x8xbf16>
    %cst_53 = arith.constant dense<0.000000e+00> : vector<8x8xf32>
    %169 = tpu.matmul %167, %168, %cst_53 {dimension_numbers = #tpu.dot_dimension_numbers<[1], [1], [0], [0], [0, 0, 1, 0], [], []>} : vector<8x8xbf16>, vector<8x8xbf16>, vector<8x8xf32> -> vector<8x8xf32>
    %cst_54 = arith.constant 0.353553385 : f32
    %170 = vector.broadcast %cst_54 : f32 to vector<8x8xf32>
    %171 = arith.mulf %169, %170 : vector<8x8xf32>
    %cst_55 = arith.constant dense<0xFF800000> : vector<8xf32>
    %172 = vector.multi_reduction <maximumf>, %171, %cst_55 [1] : vector<8x8xf32> to vector<8xf32>
    %173 = vector.shape_cast %172 : vector<8xf32> to vector<8x1xf32>
    %174 = vector.broadcast %173 : vector<8x1xf32> to vector<8x8xf32>
    %175 = arith.subf %171, %174 : vector<8x8xf32>
    %176 = math.exp %175 : vector<8x8xf32>
    %cst_56 = arith.constant dense<0.000000e+00> : vector<8xf32>
    %177 = vector.multi_reduction <add>, %176, %cst_56 [1] : vector<8x8xf32> to vector<8xf32>
    %178 = vector.shape_cast %177 : vector<8xf32> to vector<8x1xf32>
    %179 = tpu.reciprocal %178 : vector<8x1xf32> -> vector<8x1xf32>
    %180 = vector.broadcast %179 : vector<8x1xf32> to vector<8x8xf32>
    %181 = arith.mulf %176, %180 : vector<8x8xf32>
    %182 = arith.truncf %181 : vector<8x8xf32> to vector<8x8xbf16>
    %183 = arith.truncf %166 : vector<8x8xf32> to vector<8x8xbf16>
    %cst_57 = arith.constant dense<0.000000e+00> : vector<8x8xf32>
    %184 = tpu.matmul %182, %183, %cst_57 {dimension_numbers = #tpu.dot_dimension_numbers<[1], [0], [0], [1], [0, 0, 1, 1], [], []>} : vector<8x8xbf16>, vector<8x8xbf16>, vector<8x8xf32> -> vector<8x8xf32>
    %185 = vector.extract_strided_slice %36 {offsets = [8, 24], sizes = [8, 8], strides = [1, 1]} : vector<16x96xf32> to vector<8x8xf32>
    %186 = vector.extract_strided_slice %36 {offsets = [8, 56], sizes = [8, 8], strides = [1, 1]} : vector<16x96xf32> to vector<8x8xf32>
    %187 = vector.extract_strided_slice %36 {offsets = [8, 88], sizes = [8, 8], strides = [1, 1]} : vector<16x96xf32> to vector<8x8xf32>
    %188 = arith.truncf %185 : vector<8x8xf32> to vector<8x8xbf16>
    %189 = arith.truncf %186 : vector<8x8xf32> to vector<8x8xbf16>
    %cst_58 = arith.constant dense<0.000000e+00> : vector<8x8xf32>
    %190 = tpu.matmul %188, %189, %cst_58 {dimension_numbers = #tpu.dot_dimension_numbers<[1], [1], [0], [0], [0, 0, 1, 0], [], []>} : vector<8x8xbf16>, vector<8x8xbf16>, vector<8x8xf32> -> vector<8x8xf32>
    %cst_59 = arith.constant 0.353553385 : f32
    %191 = vector.broadcast %cst_59 : f32 to vector<8x8xf32>
    %192 = arith.mulf %190, %191 : vector<8x8xf32>
    %cst_60 = arith.constant dense<0xFF800000> : vector<8xf32>
    %193 = vector.multi_reduction <maximumf>, %192, %cst_60 [1] : vector<8x8xf32> to vector<8xf32>
    %194 = vector.shape_cast %193 : vector<8xf32> to vector<8x1xf32>
    %195 = vector.broadcast %194 : vector<8x1xf32> to vector<8x8xf32>
    %196 = arith.subf %192, %195 : vector<8x8xf32>
    %197 = math.exp %196 : vector<8x8xf32>
    %cst_61 = arith.constant dense<0.000000e+00> : vector<8xf32>
    %198 = vector.multi_reduction <add>, %197, %cst_61 [1] : vector<8x8xf32> to vector<8xf32>
    %199 = vector.shape_cast %198 : vector<8xf32> to vector<8x1xf32>
    %200 = tpu.reciprocal %199 : vector<8x1xf32> -> vector<8x1xf32>
    %201 = vector.broadcast %200 : vector<8x1xf32> to vector<8x8xf32>
    %202 = arith.mulf %197, %201 : vector<8x8xf32>
    %203 = arith.truncf %202 : vector<8x8xf32> to vector<8x8xbf16>
    %204 = arith.truncf %187 : vector<8x8xf32> to vector<8x8xbf16>
    %cst_62 = arith.constant dense<0.000000e+00> : vector<8x8xf32>
    %205 = tpu.matmul %203, %204, %cst_62 {dimension_numbers = #tpu.dot_dimension_numbers<[1], [0], [0], [1], [0, 0, 1, 1], [], []>} : vector<8x8xbf16>, vector<8x8xbf16>, vector<8x8xf32> -> vector<8x8xf32>
    %206 = tpu.concatenate %142, %163, %184, %205 in 1 : vector<8x8xf32>, vector<8x8xf32>, vector<8x8xf32>, vector<8x8xf32> -> vector<8x32xf32>
    %207 = tpu.concatenate %121, %206 in 0 : vector<8x32xf32>, vector<8x32xf32> -> vector<16x32xf32>
    %208 = arith.truncf %207 : vector<16x32xf32> to vector<16x32xbf16>
    %c0_63 = arith.constant 0 : index
    %c0_64 = arith.constant 0 : index
    %c0_65 = arith.constant 0 : index
    %209 = vector.load %arg8[%c0_63, %c0_64, %c0_65] : memref<2x32x32xbf16, #tpu.memory_space<vmem>>, vector<1x32x32xbf16>
    %210 = vector.shape_cast %209 : vector<1x32x32xbf16> to vector<32x32xbf16>
    %cst_66 = arith.constant dense<0.000000e+00> : vector<16x32xf32>
    %211 = tpu.matmul %208, %210, %cst_66 {dimension_numbers = #tpu.dot_dimension_numbers<[1], [0], [0], [1], [0, 0, 1, 1], [], []>} : vector<16x32xbf16>, vector<32x32xbf16>, vector<16x32xf32> -> vector<16x32xf32>
    %c0_67 = arith.constant 0 : index
    %c0_68 = arith.constant 0 : index
    %c0_69 = arith.constant 0 : index
    %212 = vector.load %arg9[%c0_67, %c0_68, %c0_69] : memref<2x1x32xf32, #tpu.memory_space<vmem>>, vector<1x1x32xf32>
    %213 = vector.shape_cast %212 : vector<1x1x32xf32> to vector<1x32xf32>
    %214 = vector.broadcast %213 : vector<1x32xf32> to vector<16x32xf32>
    %215 = arith.addf %211, %214 : vector<16x32xf32>
    %216 = arith.addf %4, %215 : vector<16x32xf32>
    %c0_70 = arith.constant 0 : index
    %c0_71 = arith.constant 0 : index
    %c0_72 = arith.constant 0 : index
    %217 = vector.load %arg10[%c0_70, %c0_71, %c0_72] : memref<2x1x32xf32, #tpu.memory_space<vmem>>, vector<1x1x32xf32>
    %218 = vector.shape_cast %217 : vector<1x1x32xf32> to vector<1x32xf32>
    %c0_73 = arith.constant 0 : index
    %c0_74 = arith.constant 0 : index
    %c0_75 = arith.constant 0 : index
    %219 = vector.load %arg11[%c0_73, %c0_74, %c0_75] : memref<2x1x32xf32, #tpu.memory_space<vmem>>, vector<1x1x32xf32>
    %220 = vector.shape_cast %219 : vector<1x1x32xf32> to vector<1x32xf32>
    %cst_76 = arith.constant dense<0.000000e+00> : vector<16xf32>
    %221 = vector.multi_reduction <add>, %216, %cst_76 [1] : vector<16x32xf32> to vector<16xf32>
    %222 = vector.shape_cast %221 : vector<16xf32> to vector<16x1xf32>
    %cst_77 = arith.constant 3.200000e+01 : f32
    %223 = vector.broadcast %cst_77 : f32 to vector<16x1xf32>
    %224 = arith.divf %222, %223 : vector<16x1xf32>
    %225 = vector.broadcast %224 : vector<16x1xf32> to vector<16x32xf32>
    %226 = arith.subf %216, %225 : vector<16x32xf32>
    %227 = arith.mulf %226, %226 : vector<16x32xf32>
    %cst_78 = arith.constant dense<0.000000e+00> : vector<16xf32>
    %228 = vector.multi_reduction <add>, %227, %cst_78 [1] : vector<16x32xf32> to vector<16xf32>
    %229 = vector.shape_cast %228 : vector<16xf32> to vector<16x1xf32>
    %cst_79 = arith.constant 3.200000e+01 : f32
    %230 = vector.broadcast %cst_79 : f32 to vector<16x1xf32>
    %231 = arith.divf %229, %230 : vector<16x1xf32>
    %cst_80 = arith.constant 9.99999996E-13 : f32
    %232 = vector.broadcast %cst_80 : f32 to vector<16x1xf32>
    %233 = arith.addf %231, %232 : vector<16x1xf32>
    %234 = math.rsqrt %233 : vector<16x1xf32>
    %235 = vector.broadcast %234 : vector<16x1xf32> to vector<16x32xf32>
    %236 = arith.mulf %226, %235 : vector<16x32xf32>
    %237 = vector.broadcast %218 : vector<1x32xf32> to vector<16x32xf32>
    %238 = arith.mulf %236, %237 : vector<16x32xf32>
    %239 = vector.broadcast %220 : vector<1x32xf32> to vector<16x32xf32>
    %240 = arith.addf %238, %239 : vector<16x32xf32>
    %241 = arith.truncf %240 : vector<16x32xf32> to vector<16x32xbf16>
    %c0_81 = arith.constant 0 : index
    %c0_82 = arith.constant 0 : index
    %c0_83 = arith.constant 0 : index
    %242 = vector.load %arg12[%c0_81, %c0_82, %c0_83] : memref<2x32x64xbf16, #tpu.memory_space<vmem>>, vector<1x32x64xbf16>
    %243 = vector.shape_cast %242 : vector<1x32x64xbf16> to vector<32x64xbf16>
    %cst_84 = arith.constant dense<0.000000e+00> : vector<16x64xf32>
    %244 = tpu.matmul %241, %243, %cst_84 {dimension_numbers = #tpu.dot_dimension_numbers<[1], [0], [0], [1], [0, 0, 1, 1], [], []>} : vector<16x32xbf16>, vector<32x64xbf16>, vector<16x64xf32> -> vector<16x64xf32>
    %c0_85 = arith.constant 0 : index
    %c0_86 = arith.constant 0 : index
    %c0_87 = arith.constant 0 : index
    %245 = vector.load %arg13[%c0_85, %c0_86, %c0_87] : memref<2x1x64xf32, #tpu.memory_space<vmem>>, vector<1x1x64xf32>
    %246 = vector.shape_cast %245 : vector<1x1x64xf32> to vector<1x64xf32>
    %247 = vector.broadcast %246 : vector<1x64xf32> to vector<16x64xf32>
    %248 = arith.addf %244, %247 : vector<16x64xf32>
    %cst_88 = arith.constant 5.000000e-01 : f32
    %249 = vector.broadcast %cst_88 : f32 to vector<16x64xf32>
    %250 = arith.mulf %249, %248 : vector<16x64xf32>
    %cst_89 = arith.constant 4.471500e-02 : f32
    %251 = vector.broadcast %cst_89 : f32 to vector<16x64xf32>
    %252 = arith.mulf %251, %248 : vector<16x64xf32>
    %253 = arith.mulf %252, %248 : vector<16x64xf32>
    %254 = arith.mulf %253, %248 : vector<16x64xf32>
    %255 = arith.addf %248, %254 : vector<16x64xf32>
    %cst_90 = arith.constant 0.797884583 : f32
    %256 = vector.broadcast %cst_90 : f32 to vector<16x64xf32>
    %257 = arith.mulf %256, %255 : vector<16x64xf32>
    %258 = math.tanh %257 : vector<16x64xf32>
    %cst_91 = arith.constant 1.000000e+00 : f32
    %259 = vector.broadcast %cst_91 : f32 to vector<16x64xf32>
    %260 = arith.addf %259, %258 : vector<16x64xf32>
    %261 = arith.mulf %250, %260 : vector<16x64xf32>
    %262 = arith.truncf %261 : vector<16x64xf32> to vector<16x64xbf16>
    %c0_92 = arith.constant 0 : index
    %c0_93 = arith.constant 0 : index
    %c0_94 = arith.constant 0 : index
    %263 = vector.load %arg14[%c0_92, %c0_93, %c0_94] : memref<2x64x32xbf16, #tpu.memory_space<vmem>>, vector<1x64x32xbf16>
    %264 = vector.shape_cast %263 : vector<1x64x32xbf16> to vector<64x32xbf16>
    %cst_95 = arith.constant dense<0.000000e+00> : vector<16x32xf32>
    %265 = tpu.matmul %262, %264, %cst_95 {dimension_numbers = #tpu.dot_dimension_numbers<[1], [0], [0], [1], [0, 0, 1, 1], [], []>} : vector<16x64xbf16>, vector<64x32xbf16>, vector<16x32xf32> -> vector<16x32xf32>
    %c0_96 = arith.constant 0 : index
    %c0_97 = arith.constant 0 : index
    %c0_98 = arith.constant 0 : index
    %266 = vector.load %arg15[%c0_96, %c0_97, %c0_98] : memref<2x1x32xf32, #tpu.memory_space<vmem>>, vector<1x1x32xf32>
    %267 = vector.shape_cast %266 : vector<1x1x32xf32> to vector<1x32xf32>
    %268 = vector.broadcast %267 : vector<1x32xf32> to vector<16x32xf32>
    %269 = arith.addf %265, %268 : vector<16x32xf32>
    %270 = arith.addf %216, %269 : vector<16x32xf32>
    %c1 = arith.constant 1 : index
    %c0_99 = arith.constant 0 : index
    %c0_100 = arith.constant 0 : index
    %271 = vector.load %arg4[%c1, %c0_99, %c0_100] : memref<2x1x32xf32, #tpu.memory_space<vmem>>, vector<1x1x32xf32>
    %272 = vector.shape_cast %271 : vector<1x1x32xf32> to vector<1x32xf32>
    %c1_101 = arith.constant 1 : index
    %c0_102 = arith.constant 0 : index
    %c0_103 = arith.constant 0 : index
    %273 = vector.load %arg5[%c1_101, %c0_102, %c0_103] : memref<2x1x32xf32, #tpu.memory_space<vmem>>, vector<1x1x32xf32>
    %274 = vector.shape_cast %273 : vector<1x1x32xf32> to vector<1x32xf32>
    %cst_104 = arith.constant dense<0.000000e+00> : vector<16xf32>
    %275 = vector.multi_reduction <add>, %270, %cst_104 [1] : vector<16x32xf32> to vector<16xf32>
    %276 = vector.shape_cast %275 : vector<16xf32> to vector<16x1xf32>
    %cst_105 = arith.constant 3.200000e+01 : f32
    %277 = vector.broadcast %cst_105 : f32 to vector<16x1xf32>
    %278 = arith.divf %276, %277 : vector<16x1xf32>
    %279 = vector.broadcast %278 : vector<16x1xf32> to vector<16x32xf32>
    %280 = arith.subf %270, %279 : vector<16x32xf32>
    %281 = arith.mulf %280, %280 : vector<16x32xf32>
    %cst_106 = arith.constant dense<0.000000e+00> : vector<16xf32>
    %282 = vector.multi_reduction <add>, %281, %cst_106 [1] : vector<16x32xf32> to vector<16xf32>
    %283 = vector.shape_cast %282 : vector<16xf32> to vector<16x1xf32>
    %cst_107 = arith.constant 3.200000e+01 : f32
    %284 = vector.broadcast %cst_107 : f32 to vector<16x1xf32>
    %285 = arith.divf %283, %284 : vector<16x1xf32>
    %cst_108 = arith.constant 9.99999996E-13 : f32
    %286 = vector.broadcast %cst_108 : f32 to vector<16x1xf32>
    %287 = arith.addf %285, %286 : vector<16x1xf32>
    %288 = math.rsqrt %287 : vector<16x1xf32>
    %289 = vector.broadcast %288 : vector<16x1xf32> to vector<16x32xf32>
    %290 = arith.mulf %280, %289 : vector<16x32xf32>
    %291 = vector.broadcast %272 : vector<1x32xf32> to vector<16x32xf32>
    %292 = arith.mulf %290, %291 : vector<16x32xf32>
    %293 = vector.broadcast %274 : vector<1x32xf32> to vector<16x32xf32>
    %294 = arith.addf %292, %293 : vector<16x32xf32>
    %295 = arith.truncf %294 : vector<16x32xf32> to vector<16x32xbf16>
    %c1_109 = arith.constant 1 : index
    %c0_110 = arith.constant 0 : index
    %c0_111 = arith.constant 0 : index
    %296 = vector.load %arg6[%c1_109, %c0_110, %c0_111] : memref<2x32x96xbf16, #tpu.memory_space<vmem>>, vector<1x32x96xbf16>
    %297 = vector.shape_cast %296 : vector<1x32x96xbf16> to vector<32x96xbf16>
    %cst_112 = arith.constant dense<0.000000e+00> : vector<16x96xf32>
    %298 = tpu.matmul %295, %297, %cst_112 {dimension_numbers = #tpu.dot_dimension_numbers<[1], [0], [0], [1], [0, 0, 1, 1], [], []>} : vector<16x32xbf16>, vector<32x96xbf16>, vector<16x96xf32> -> vector<16x96xf32>
    %c1_113 = arith.constant 1 : index
    %c0_114 = arith.constant 0 : index
    %c0_115 = arith.constant 0 : index
    %299 = vector.load %arg7[%c1_113, %c0_114, %c0_115] : memref<2x1x96xf32, #tpu.memory_space<vmem>>, vector<1x1x96xf32>
    %300 = vector.shape_cast %299 : vector<1x1x96xf32> to vector<1x96xf32>
    %301 = vector.broadcast %300 : vector<1x96xf32> to vector<16x96xf32>
    %302 = arith.addf %298, %301 : vector<16x96xf32>
    %303 = vector.extract_strided_slice %302 {offsets = [0, 0], sizes = [8, 8], strides = [1, 1]} : vector<16x96xf32> to vector<8x8xf32>
    %304 = vector.extract_strided_slice %302 {offsets = [0, 32], sizes = [8, 8], strides = [1, 1]} : vector<16x96xf32> to vector<8x8xf32>
    %305 = vector.extract_strided_slice %302 {offsets = [0, 64], sizes = [8, 8], strides = [1, 1]} : vector<16x96xf32> to vector<8x8xf32>
    %306 = arith.truncf %303 : vector<8x8xf32> to vector<8x8xbf16>
    %307 = arith.truncf %304 : vector<8x8xf32> to vector<8x8xbf16>
    %cst_116 = arith.constant dense<0.000000e+00> : vector<8x8xf32>
    %308 = tpu.matmul %306, %307, %cst_116 {dimension_numbers = #tpu.dot_dimension_numbers<[1], [1], [0], [0], [0, 0, 1, 0], [], []>} : vector<8x8xbf16>, vector<8x8xbf16>, vector<8x8xf32> -> vector<8x8xf32>
    %cst_117 = arith.constant 0.353553385 : f32
    %309 = vector.broadcast %cst_117 : f32 to vector<8x8xf32>
    %310 = arith.mulf %308, %309 : vector<8x8xf32>
    %cst_118 = arith.constant dense<0xFF800000> : vector<8xf32>
    %311 = vector.multi_reduction <maximumf>, %310, %cst_118 [1] : vector<8x8xf32> to vector<8xf32>
    %312 = vector.shape_cast %311 : vector<8xf32> to vector<8x1xf32>
    %313 = vector.broadcast %312 : vector<8x1xf32> to vector<8x8xf32>
    %314 = arith.subf %310, %313 : vector<8x8xf32>
    %315 = math.exp %314 : vector<8x8xf32>
    %cst_119 = arith.constant dense<0.000000e+00> : vector<8xf32>
    %316 = vector.multi_reduction <add>, %315, %cst_119 [1] : vector<8x8xf32> to vector<8xf32>
    %317 = vector.shape_cast %316 : vector<8xf32> to vector<8x1xf32>
    %318 = tpu.reciprocal %317 : vector<8x1xf32> -> vector<8x1xf32>
    %319 = vector.broadcast %318 : vector<8x1xf32> to vector<8x8xf32>
    %320 = arith.mulf %315, %319 : vector<8x8xf32>
    %321 = arith.truncf %320 : vector<8x8xf32> to vector<8x8xbf16>
    %322 = arith.truncf %305 : vector<8x8xf32> to vector<8x8xbf16>
    %cst_120 = arith.constant dense<0.000000e+00> : vector<8x8xf32>
    %323 = tpu.matmul %321, %322, %cst_120 {dimension_numbers = #tpu.dot_dimension_numbers<[1], [0], [0], [1], [0, 0, 1, 1], [], []>} : vector<8x8xbf16>, vector<8x8xbf16>, vector<8x8xf32> -> vector<8x8xf32>
    %324 = vector.extract_strided_slice %302 {offsets = [0, 8], sizes = [8, 8], strides = [1, 1]} : vector<16x96xf32> to vector<8x8xf32>
    %325 = vector.extract_strided_slice %302 {offsets = [0, 40], sizes = [8, 8], strides = [1, 1]} : vector<16x96xf32> to vector<8x8xf32>
    %326 = vector.extract_strided_slice %302 {offsets = [0, 72], sizes = [8, 8], strides = [1, 1]} : vector<16x96xf32> to vector<8x8xf32>
    %327 = arith.truncf %324 : vector<8x8xf32> to vector<8x8xbf16>
    %328 = arith.truncf %325 : vector<8x8xf32> to vector<8x8xbf16>
    %cst_121 = arith.constant dense<0.000000e+00> : vector<8x8xf32>
    %329 = tpu.matmul %327, %328, %cst_121 {dimension_numbers = #tpu.dot_dimension_numbers<[1], [1], [0], [0], [0, 0, 1, 0], [], []>} : vector<8x8xbf16>, vector<8x8xbf16>, vector<8x8xf32> -> vector<8x8xf32>
    %cst_122 = arith.constant 0.353553385 : f32
    %330 = vector.broadcast %cst_122 : f32 to vector<8x8xf32>
    %331 = arith.mulf %329, %330 : vector<8x8xf32>
    %cst_123 = arith.constant dense<0xFF800000> : vector<8xf32>
    %332 = vector.multi_reduction <maximumf>, %331, %cst_123 [1] : vector<8x8xf32> to vector<8xf32>
    %333 = vector.shape_cast %332 : vector<8xf32> to vector<8x1xf32>
    %334 = vector.broadcast %333 : vector<8x1xf32> to vector<8x8xf32>
    %335 = arith.subf %331, %334 : vector<8x8xf32>
    %336 = math.exp %335 : vector<8x8xf32>
    %cst_124 = arith.constant dense<0.000000e+00> : vector<8xf32>
    %337 = vector.multi_reduction <add>, %336, %cst_124 [1] : vector<8x8xf32> to vector<8xf32>
    %338 = vector.shape_cast %337 : vector<8xf32> to vector<8x1xf32>
    %339 = tpu.reciprocal %338 : vector<8x1xf32> -> vector<8x1xf32>
    %340 = vector.broadcast %339 : vector<8x1xf32> to vector<8x8xf32>
    %341 = arith.mulf %336, %340 : vector<8x8xf32>
    %342 = arith.truncf %341 : vector<8x8xf32> to vector<8x8xbf16>
    %343 = arith.truncf %326 : vector<8x8xf32> to vector<8x8xbf16>
    %cst_125 = arith.constant dense<0.000000e+00> : vector<8x8xf32>
    %344 = tpu.matmul %342, %343, %cst_125 {dimension_numbers = #tpu.dot_dimension_numbers<[1], [0], [0], [1], [0, 0, 1, 1], [], []>} : vector<8x8xbf16>, vector<8x8xbf16>, vector<8x8xf32> -> vector<8x8xf32>
    %345 = vector.extract_strided_slice %302 {offsets = [0, 16], sizes = [8, 8], strides = [1, 1]} : vector<16x96xf32> to vector<8x8xf32>
    %346 = vector.extract_strided_slice %302 {offsets = [0, 48], sizes = [8, 8], strides = [1, 1]} : vector<16x96xf32> to vector<8x8xf32>
    %347 = vector.extract_strided_slice %302 {offsets = [0, 80], sizes = [8, 8], strides = [1, 1]} : vector<16x96xf32> to vector<8x8xf32>
    %348 = arith.truncf %345 : vector<8x8xf32> to vector<8x8xbf16>
    %349 = arith.truncf %346 : vector<8x8xf32> to vector<8x8xbf16>
    %cst_126 = arith.constant dense<0.000000e+00> : vector<8x8xf32>
    %350 = tpu.matmul %348, %349, %cst_126 {dimension_numbers = #tpu.dot_dimension_numbers<[1], [1], [0], [0], [0, 0, 1, 0], [], []>} : vector<8x8xbf16>, vector<8x8xbf16>, vector<8x8xf32> -> vector<8x8xf32>
    %cst_127 = arith.constant 0.353553385 : f32
    %351 = vector.broadcast %cst_127 : f32 to vector<8x8xf32>
    %352 = arith.mulf %350, %351 : vector<8x8xf32>
    %cst_128 = arith.constant dense<0xFF800000> : vector<8xf32>
    %353 = vector.multi_reduction <maximumf>, %352, %cst_128 [1] : vector<8x8xf32> to vector<8xf32>
    %354 = vector.shape_cast %353 : vector<8xf32> to vector<8x1xf32>
    %355 = vector.broadcast %354 : vector<8x1xf32> to vector<8x8xf32>
    %356 = arith.subf %352, %355 : vector<8x8xf32>
    %357 = math.exp %356 : vector<8x8xf32>
    %cst_129 = arith.constant dense<0.000000e+00> : vector<8xf32>
    %358 = vector.multi_reduction <add>, %357, %cst_129 [1] : vector<8x8xf32> to vector<8xf32>
    %359 = vector.shape_cast %358 : vector<8xf32> to vector<8x1xf32>
    %360 = tpu.reciprocal %359 : vector<8x1xf32> -> vector<8x1xf32>
    %361 = vector.broadcast %360 : vector<8x1xf32> to vector<8x8xf32>
    %362 = arith.mulf %357, %361 : vector<8x8xf32>
    %363 = arith.truncf %362 : vector<8x8xf32> to vector<8x8xbf16>
    %364 = arith.truncf %347 : vector<8x8xf32> to vector<8x8xbf16>
    %cst_130 = arith.constant dense<0.000000e+00> : vector<8x8xf32>
    %365 = tpu.matmul %363, %364, %cst_130 {dimension_numbers = #tpu.dot_dimension_numbers<[1], [0], [0], [1], [0, 0, 1, 1], [], []>} : vector<8x8xbf16>, vector<8x8xbf16>, vector<8x8xf32> -> vector<8x8xf32>
    %366 = vector.extract_strided_slice %302 {offsets = [0, 24], sizes = [8, 8], strides = [1, 1]} : vector<16x96xf32> to vector<8x8xf32>
    %367 = vector.extract_strided_slice %302 {offsets = [0, 56], sizes = [8, 8], strides = [1, 1]} : vector<16x96xf32> to vector<8x8xf32>
    %368 = vector.extract_strided_slice %302 {offsets = [0, 88], sizes = [8, 8], strides = [1, 1]} : vector<16x96xf32> to vector<8x8xf32>
    %369 = arith.truncf %366 : vector<8x8xf32> to vector<8x8xbf16>
    %370 = arith.truncf %367 : vector<8x8xf32> to vector<8x8xbf16>
    %cst_131 = arith.constant dense<0.000000e+00> : vector<8x8xf32>
    %371 = tpu.matmul %369, %370, %cst_131 {dimension_numbers = #tpu.dot_dimension_numbers<[1], [1], [0], [0], [0, 0, 1, 0], [], []>} : vector<8x8xbf16>, vector<8x8xbf16>, vector<8x8xf32> -> vector<8x8xf32>
    %cst_132 = arith.constant 0.353553385 : f32
    %372 = vector.broadcast %cst_132 : f32 to vector<8x8xf32>
    %373 = arith.mulf %371, %372 : vector<8x8xf32>
    %cst_133 = arith.constant dense<0xFF800000> : vector<8xf32>
    %374 = vector.multi_reduction <maximumf>, %373, %cst_133 [1] : vector<8x8xf32> to vector<8xf32>
    %375 = vector.shape_cast %374 : vector<8xf32> to vector<8x1xf32>
    %376 = vector.broadcast %375 : vector<8x1xf32> to vector<8x8xf32>
    %377 = arith.subf %373, %376 : vector<8x8xf32>
    %378 = math.exp %377 : vector<8x8xf32>
    %cst_134 = arith.constant dense<0.000000e+00> : vector<8xf32>
    %379 = vector.multi_reduction <add>, %378, %cst_134 [1] : vector<8x8xf32> to vector<8xf32>
    %380 = vector.shape_cast %379 : vector<8xf32> to vector<8x1xf32>
    %381 = tpu.reciprocal %380 : vector<8x1xf32> -> vector<8x1xf32>
    %382 = vector.broadcast %381 : vector<8x1xf32> to vector<8x8xf32>
    %383 = arith.mulf %378, %382 : vector<8x8xf32>
    %384 = arith.truncf %383 : vector<8x8xf32> to vector<8x8xbf16>
    %385 = arith.truncf %368 : vector<8x8xf32> to vector<8x8xbf16>
    %cst_135 = arith.constant dense<0.000000e+00> : vector<8x8xf32>
    %386 = tpu.matmul %384, %385, %cst_135 {dimension_numbers = #tpu.dot_dimension_numbers<[1], [0], [0], [1], [0, 0, 1, 1], [], []>} : vector<8x8xbf16>, vector<8x8xbf16>, vector<8x8xf32> -> vector<8x8xf32>
    %387 = tpu.concatenate %323, %344, %365, %386 in 1 : vector<8x8xf32>, vector<8x8xf32>, vector<8x8xf32>, vector<8x8xf32> -> vector<8x32xf32>
    %388 = vector.extract_strided_slice %302 {offsets = [8, 0], sizes = [8, 8], strides = [1, 1]} : vector<16x96xf32> to vector<8x8xf32>
    %389 = vector.extract_strided_slice %302 {offsets = [8, 32], sizes = [8, 8], strides = [1, 1]} : vector<16x96xf32> to vector<8x8xf32>
    %390 = vector.extract_strided_slice %302 {offsets = [8, 64], sizes = [8, 8], strides = [1, 1]} : vector<16x96xf32> to vector<8x8xf32>
    %391 = arith.truncf %388 : vector<8x8xf32> to vector<8x8xbf16>
    %392 = arith.truncf %389 : vector<8x8xf32> to vector<8x8xbf16>
    %cst_136 = arith.constant dense<0.000000e+00> : vector<8x8xf32>
    %393 = tpu.matmul %391, %392, %cst_136 {dimension_numbers = #tpu.dot_dimension_numbers<[1], [1], [0], [0], [0, 0, 1, 0], [], []>} : vector<8x8xbf16>, vector<8x8xbf16>, vector<8x8xf32> -> vector<8x8xf32>
    %cst_137 = arith.constant 0.353553385 : f32
    %394 = vector.broadcast %cst_137 : f32 to vector<8x8xf32>
    %395 = arith.mulf %393, %394 : vector<8x8xf32>
    %cst_138 = arith.constant dense<0xFF800000> : vector<8xf32>
    %396 = vector.multi_reduction <maximumf>, %395, %cst_138 [1] : vector<8x8xf32> to vector<8xf32>
    %397 = vector.shape_cast %396 : vector<8xf32> to vector<8x1xf32>
    %398 = vector.broadcast %397 : vector<8x1xf32> to vector<8x8xf32>
    %399 = arith.subf %395, %398 : vector<8x8xf32>
    %400 = math.exp %399 : vector<8x8xf32>
    %cst_139 = arith.constant dense<0.000000e+00> : vector<8xf32>
    %401 = vector.multi_reduction <add>, %400, %cst_139 [1] : vector<8x8xf32> to vector<8xf32>
    %402 = vector.shape_cast %401 : vector<8xf32> to vector<8x1xf32>
    %403 = tpu.reciprocal %402 : vector<8x1xf32> -> vector<8x1xf32>
    %404 = vector.broadcast %403 : vector<8x1xf32> to vector<8x8xf32>
    %405 = arith.mulf %400, %404 : vector<8x8xf32>
    %406 = arith.truncf %405 : vector<8x8xf32> to vector<8x8xbf16>
    %407 = arith.truncf %390 : vector<8x8xf32> to vector<8x8xbf16>
    %cst_140 = arith.constant dense<0.000000e+00> : vector<8x8xf32>
    %408 = tpu.matmul %406, %407, %cst_140 {dimension_numbers = #tpu.dot_dimension_numbers<[1], [0], [0], [1], [0, 0, 1, 1], [], []>} : vector<8x8xbf16>, vector<8x8xbf16>, vector<8x8xf32> -> vector<8x8xf32>
    %409 = vector.extract_strided_slice %302 {offsets = [8, 8], sizes = [8, 8], strides = [1, 1]} : vector<16x96xf32> to vector<8x8xf32>
    %410 = vector.extract_strided_slice %302 {offsets = [8, 40], sizes = [8, 8], strides = [1, 1]} : vector<16x96xf32> to vector<8x8xf32>
    %411 = vector.extract_strided_slice %302 {offsets = [8, 72], sizes = [8, 8], strides = [1, 1]} : vector<16x96xf32> to vector<8x8xf32>
    %412 = arith.truncf %409 : vector<8x8xf32> to vector<8x8xbf16>
    %413 = arith.truncf %410 : vector<8x8xf32> to vector<8x8xbf16>
    %cst_141 = arith.constant dense<0.000000e+00> : vector<8x8xf32>
    %414 = tpu.matmul %412, %413, %cst_141 {dimension_numbers = #tpu.dot_dimension_numbers<[1], [1], [0], [0], [0, 0, 1, 0], [], []>} : vector<8x8xbf16>, vector<8x8xbf16>, vector<8x8xf32> -> vector<8x8xf32>
    %cst_142 = arith.constant 0.353553385 : f32
    %415 = vector.broadcast %cst_142 : f32 to vector<8x8xf32>
    %416 = arith.mulf %414, %415 : vector<8x8xf32>
    %cst_143 = arith.constant dense<0xFF800000> : vector<8xf32>
    %417 = vector.multi_reduction <maximumf>, %416, %cst_143 [1] : vector<8x8xf32> to vector<8xf32>
    %418 = vector.shape_cast %417 : vector<8xf32> to vector<8x1xf32>
    %419 = vector.broadcast %418 : vector<8x1xf32> to vector<8x8xf32>
    %420 = arith.subf %416, %419 : vector<8x8xf32>
    %421 = math.exp %420 : vector<8x8xf32>
    %cst_144 = arith.constant dense<0.000000e+00> : vector<8xf32>
    %422 = vector.multi_reduction <add>, %421, %cst_144 [1] : vector<8x8xf32> to vector<8xf32>
    %423 = vector.shape_cast %422 : vector<8xf32> to vector<8x1xf32>
    %424 = tpu.reciprocal %423 : vector<8x1xf32> -> vector<8x1xf32>
    %425 = vector.broadcast %424 : vector<8x1xf32> to vector<8x8xf32>
    %426 = arith.mulf %421, %425 : vector<8x8xf32>
    %427 = arith.truncf %426 : vector<8x8xf32> to vector<8x8xbf16>
    %428 = arith.truncf %411 : vector<8x8xf32> to vector<8x8xbf16>
    %cst_145 = arith.constant dense<0.000000e+00> : vector<8x8xf32>
    %429 = tpu.matmul %427, %428, %cst_145 {dimension_numbers = #tpu.dot_dimension_numbers<[1], [0], [0], [1], [0, 0, 1, 1], [], []>} : vector<8x8xbf16>, vector<8x8xbf16>, vector<8x8xf32> -> vector<8x8xf32>
    %430 = vector.extract_strided_slice %302 {offsets = [8, 16], sizes = [8, 8], strides = [1, 1]} : vector<16x96xf32> to vector<8x8xf32>
    %431 = vector.extract_strided_slice %302 {offsets = [8, 48], sizes = [8, 8], strides = [1, 1]} : vector<16x96xf32> to vector<8x8xf32>
    %432 = vector.extract_strided_slice %302 {offsets = [8, 80], sizes = [8, 8], strides = [1, 1]} : vector<16x96xf32> to vector<8x8xf32>
    %433 = arith.truncf %430 : vector<8x8xf32> to vector<8x8xbf16>
    %434 = arith.truncf %431 : vector<8x8xf32> to vector<8x8xbf16>
    %cst_146 = arith.constant dense<0.000000e+00> : vector<8x8xf32>
    %435 = tpu.matmul %433, %434, %cst_146 {dimension_numbers = #tpu.dot_dimension_numbers<[1], [1], [0], [0], [0, 0, 1, 0], [], []>} : vector<8x8xbf16>, vector<8x8xbf16>, vector<8x8xf32> -> vector<8x8xf32>
    %cst_147 = arith.constant 0.353553385 : f32
    %436 = vector.broadcast %cst_147 : f32 to vector<8x8xf32>
    %437 = arith.mulf %435, %436 : vector<8x8xf32>
    %cst_148 = arith.constant dense<0xFF800000> : vector<8xf32>
    %438 = vector.multi_reduction <maximumf>, %437, %cst_148 [1] : vector<8x8xf32> to vector<8xf32>
    %439 = vector.shape_cast %438 : vector<8xf32> to vector<8x1xf32>
    %440 = vector.broadcast %439 : vector<8x1xf32> to vector<8x8xf32>
    %441 = arith.subf %437, %440 : vector<8x8xf32>
    %442 = math.exp %441 : vector<8x8xf32>
    %cst_149 = arith.constant dense<0.000000e+00> : vector<8xf32>
    %443 = vector.multi_reduction <add>, %442, %cst_149 [1] : vector<8x8xf32> to vector<8xf32>
    %444 = vector.shape_cast %443 : vector<8xf32> to vector<8x1xf32>
    %445 = tpu.reciprocal %444 : vector<8x1xf32> -> vector<8x1xf32>
    %446 = vector.broadcast %445 : vector<8x1xf32> to vector<8x8xf32>
    %447 = arith.mulf %442, %446 : vector<8x8xf32>
    %448 = arith.truncf %447 : vector<8x8xf32> to vector<8x8xbf16>
    %449 = arith.truncf %432 : vector<8x8xf32> to vector<8x8xbf16>
    %cst_150 = arith.constant dense<0.000000e+00> : vector<8x8xf32>
    %450 = tpu.matmul %448, %449, %cst_150 {dimension_numbers = #tpu.dot_dimension_numbers<[1], [0], [0], [1], [0, 0, 1, 1], [], []>} : vector<8x8xbf16>, vector<8x8xbf16>, vector<8x8xf32> -> vector<8x8xf32>
    %451 = vector.extract_strided_slice %302 {offsets = [8, 24], sizes = [8, 8], strides = [1, 1]} : vector<16x96xf32> to vector<8x8xf32>
    %452 = vector.extract_strided_slice %302 {offsets = [8, 56], sizes = [8, 8], strides = [1, 1]} : vector<16x96xf32> to vector<8x8xf32>
    %453 = vector.extract_strided_slice %302 {offsets = [8, 88], sizes = [8, 8], strides = [1, 1]} : vector<16x96xf32> to vector<8x8xf32>
    %454 = arith.truncf %451 : vector<8x8xf32> to vector<8x8xbf16>
    %455 = arith.truncf %452 : vector<8x8xf32> to vector<8x8xbf16>
    %cst_151 = arith.constant dense<0.000000e+00> : vector<8x8xf32>
    %456 = tpu.matmul %454, %455, %cst_151 {dimension_numbers = #tpu.dot_dimension_numbers<[1], [1], [0], [0], [0, 0, 1, 0], [], []>} : vector<8x8xbf16>, vector<8x8xbf16>, vector<8x8xf32> -> vector<8x8xf32>
    %cst_152 = arith.constant 0.353553385 : f32
    %457 = vector.broadcast %cst_152 : f32 to vector<8x8xf32>
    %458 = arith.mulf %456, %457 : vector<8x8xf32>
    %cst_153 = arith.constant dense<0xFF800000> : vector<8xf32>
    %459 = vector.multi_reduction <maximumf>, %458, %cst_153 [1] : vector<8x8xf32> to vector<8xf32>
    %460 = vector.shape_cast %459 : vector<8xf32> to vector<8x1xf32>
    %461 = vector.broadcast %460 : vector<8x1xf32> to vector<8x8xf32>
    %462 = arith.subf %458, %461 : vector<8x8xf32>
    %463 = math.exp %462 : vector<8x8xf32>
    %cst_154 = arith.constant dense<0.000000e+00> : vector<8xf32>
    %464 = vector.multi_reduction <add>, %463, %cst_154 [1] : vector<8x8xf32> to vector<8xf32>
    %465 = vector.shape_cast %464 : vector<8xf32> to vector<8x1xf32>
    %466 = tpu.reciprocal %465 : vector<8x1xf32> -> vector<8x1xf32>
    %467 = vector.broadcast %466 : vector<8x1xf32> to vector<8x8xf32>
    %468 = arith.mulf %463, %467 : vector<8x8xf32>
    %469 = arith.truncf %468 : vector<8x8xf32> to vector<8x8xbf16>
    %470 = arith.truncf %453 : vector<8x8xf32> to vector<8x8xbf16>
    %cst_155 = arith.constant dense<0.000000e+00> : vector<8x8xf32>
    %471 = tpu.matmul %469, %470, %cst_155 {dimension_numbers = #tpu.dot_dimension_numbers<[1], [0], [0], [1], [0, 0, 1, 1], [], []>} : vector<8x8xbf16>, vector<8x8xbf16>, vector<8x8xf32> -> vector<8x8xf32>
    %472 = tpu.concatenate %408, %429, %450, %471 in 1 : vector<8x8xf32>, vector<8x8xf32>, vector<8x8xf32>, vector<8x8xf32> -> vector<8x32xf32>
    %473 = tpu.concatenate %387, %472 in 0 : vector<8x32xf32>, vector<8x32xf32> -> vector<16x32xf32>
    %474 = arith.truncf %473 : vector<16x32xf32> to vector<16x32xbf16>
    %c1_156 = arith.constant 1 : index
    %c0_157 = arith.constant 0 : index
    %c0_158 = arith.constant 0 : index
    %475 = vector.load %arg8[%c1_156, %c0_157, %c0_158] : memref<2x32x32xbf16, #tpu.memory_space<vmem>>, vector<1x32x32xbf16>
    %476 = vector.shape_cast %475 : vector<1x32x32xbf16> to vector<32x32xbf16>
    %cst_159 = arith.constant dense<0.000000e+00> : vector<16x32xf32>
    %477 = tpu.matmul %474, %476, %cst_159 {dimension_numbers = #tpu.dot_dimension_numbers<[1], [0], [0], [1], [0, 0, 1, 1], [], []>} : vector<16x32xbf16>, vector<32x32xbf16>, vector<16x32xf32> -> vector<16x32xf32>
    %c1_160 = arith.constant 1 : index
    %c0_161 = arith.constant 0 : index
    %c0_162 = arith.constant 0 : index
    %478 = vector.load %arg9[%c1_160, %c0_161, %c0_162] : memref<2x1x32xf32, #tpu.memory_space<vmem>>, vector<1x1x32xf32>
    %479 = vector.shape_cast %478 : vector<1x1x32xf32> to vector<1x32xf32>
    %480 = vector.broadcast %479 : vector<1x32xf32> to vector<16x32xf32>
    %481 = arith.addf %477, %480 : vector<16x32xf32>
    %482 = arith.addf %270, %481 : vector<16x32xf32>
    %c1_163 = arith.constant 1 : index
    %c0_164 = arith.constant 0 : index
    %c0_165 = arith.constant 0 : index
    %483 = vector.load %arg10[%c1_163, %c0_164, %c0_165] : memref<2x1x32xf32, #tpu.memory_space<vmem>>, vector<1x1x32xf32>
    %484 = vector.shape_cast %483 : vector<1x1x32xf32> to vector<1x32xf32>
    %c1_166 = arith.constant 1 : index
    %c0_167 = arith.constant 0 : index
    %c0_168 = arith.constant 0 : index
    %485 = vector.load %arg11[%c1_166, %c0_167, %c0_168] : memref<2x1x32xf32, #tpu.memory_space<vmem>>, vector<1x1x32xf32>
    %486 = vector.shape_cast %485 : vector<1x1x32xf32> to vector<1x32xf32>
    %cst_169 = arith.constant dense<0.000000e+00> : vector<16xf32>
    %487 = vector.multi_reduction <add>, %482, %cst_169 [1] : vector<16x32xf32> to vector<16xf32>
    %488 = vector.shape_cast %487 : vector<16xf32> to vector<16x1xf32>
    %cst_170 = arith.constant 3.200000e+01 : f32
    %489 = vector.broadcast %cst_170 : f32 to vector<16x1xf32>
    %490 = arith.divf %488, %489 : vector<16x1xf32>
    %491 = vector.broadcast %490 : vector<16x1xf32> to vector<16x32xf32>
    %492 = arith.subf %482, %491 : vector<16x32xf32>
    %493 = arith.mulf %492, %492 : vector<16x32xf32>
    %cst_171 = arith.constant dense<0.000000e+00> : vector<16xf32>
    %494 = vector.multi_reduction <add>, %493, %cst_171 [1] : vector<16x32xf32> to vector<16xf32>
    %495 = vector.shape_cast %494 : vector<16xf32> to vector<16x1xf32>
    %cst_172 = arith.constant 3.200000e+01 : f32
    %496 = vector.broadcast %cst_172 : f32 to vector<16x1xf32>
    %497 = arith.divf %495, %496 : vector<16x1xf32>
    %cst_173 = arith.constant 9.99999996E-13 : f32
    %498 = vector.broadcast %cst_173 : f32 to vector<16x1xf32>
    %499 = arith.addf %497, %498 : vector<16x1xf32>
    %500 = math.rsqrt %499 : vector<16x1xf32>
    %501 = vector.broadcast %500 : vector<16x1xf32> to vector<16x32xf32>
    %502 = arith.mulf %492, %501 : vector<16x32xf32>
    %503 = vector.broadcast %484 : vector<1x32xf32> to vector<16x32xf32>
    %504 = arith.mulf %502, %503 : vector<16x32xf32>
    %505 = vector.broadcast %486 : vector<1x32xf32> to vector<16x32xf32>
    %506 = arith.addf %504, %505 : vector<16x32xf32>
    %507 = arith.truncf %506 : vector<16x32xf32> to vector<16x32xbf16>
    %c1_174 = arith.constant 1 : index
    %c0_175 = arith.constant 0 : index
    %c0_176 = arith.constant 0 : index
    %508 = vector.load %arg12[%c1_174, %c0_175, %c0_176] : memref<2x32x64xbf16, #tpu.memory_space<vmem>>, vector<1x32x64xbf16>
    %509 = vector.shape_cast %508 : vector<1x32x64xbf16> to vector<32x64xbf16>
    %cst_177 = arith.constant dense<0.000000e+00> : vector<16x64xf32>
    %510 = tpu.matmul %507, %509, %cst_177 {dimension_numbers = #tpu.dot_dimension_numbers<[1], [0], [0], [1], [0, 0, 1, 1], [], []>} : vector<16x32xbf16>, vector<32x64xbf16>, vector<16x64xf32> -> vector<16x64xf32>
    %c1_178 = arith.constant 1 : index
    %c0_179 = arith.constant 0 : index
    %c0_180 = arith.constant 0 : index
    %511 = vector.load %arg13[%c1_178, %c0_179, %c0_180] : memref<2x1x64xf32, #tpu.memory_space<vmem>>, vector<1x1x64xf32>
    %512 = vector.shape_cast %511 : vector<1x1x64xf32> to vector<1x64xf32>
    %513 = vector.broadcast %512 : vector<1x64xf32> to vector<16x64xf32>
    %514 = arith.addf %510, %513 : vector<16x64xf32>
    %cst_181 = arith.constant 5.000000e-01 : f32
    %515 = vector.broadcast %cst_181 : f32 to vector<16x64xf32>
    %516 = arith.mulf %515, %514 : vector<16x64xf32>
    %cst_182 = arith.constant 4.471500e-02 : f32
    %517 = vector.broadcast %cst_182 : f32 to vector<16x64xf32>
    %518 = arith.mulf %517, %514 : vector<16x64xf32>
    %519 = arith.mulf %518, %514 : vector<16x64xf32>
    %520 = arith.mulf %519, %514 : vector<16x64xf32>
    %521 = arith.addf %514, %520 : vector<16x64xf32>
    %cst_183 = arith.constant 0.797884583 : f32
    %522 = vector.broadcast %cst_183 : f32 to vector<16x64xf32>
    %523 = arith.mulf %522, %521 : vector<16x64xf32>
    %524 = math.tanh %523 : vector<16x64xf32>
    %cst_184 = arith.constant 1.000000e+00 : f32
    %525 = vector.broadcast %cst_184 : f32 to vector<16x64xf32>
    %526 = arith.addf %525, %524 : vector<16x64xf32>
    %527 = arith.mulf %516, %526 : vector<16x64xf32>
    %528 = arith.truncf %527 : vector<16x64xf32> to vector<16x64xbf16>
    %c1_185 = arith.constant 1 : index
    %c0_186 = arith.constant 0 : index
    %c0_187 = arith.constant 0 : index
    %529 = vector.load %arg14[%c1_185, %c0_186, %c0_187] : memref<2x64x32xbf16, #tpu.memory_space<vmem>>, vector<1x64x32xbf16>
    %530 = vector.shape_cast %529 : vector<1x64x32xbf16> to vector<64x32xbf16>
    %cst_188 = arith.constant dense<0.000000e+00> : vector<16x32xf32>
    %531 = tpu.matmul %528, %530, %cst_188 {dimension_numbers = #tpu.dot_dimension_numbers<[1], [0], [0], [1], [0, 0, 1, 1], [], []>} : vector<16x64xbf16>, vector<64x32xbf16>, vector<16x32xf32> -> vector<16x32xf32>
    %c1_189 = arith.constant 1 : index
    %c0_190 = arith.constant 0 : index
    %c0_191 = arith.constant 0 : index
    %532 = vector.load %arg15[%c1_189, %c0_190, %c0_191] : memref<2x1x32xf32, #tpu.memory_space<vmem>>, vector<1x1x32xf32>
    %533 = vector.shape_cast %532 : vector<1x1x32xf32> to vector<1x32xf32>
    %534 = vector.broadcast %533 : vector<1x32xf32> to vector<16x32xf32>
    %535 = arith.addf %531, %534 : vector<16x32xf32>
    %536 = arith.addf %482, %535 : vector<16x32xf32>
    %537 = vector.extract_strided_slice %536 {offsets = [0, 0], sizes = [8, 32], strides = [1, 1]} : vector<16x32xf32> to vector<8x32xf32>
    %cst_192 = arith.constant dense<0.000000e+00> : vector<32xf32>
    %538 = vector.multi_reduction <add>, %537, %cst_192 [0] : vector<8x32xf32> to vector<32xf32>
    %539 = vector.shape_cast %538 : vector<32xf32> to vector<1x32xf32>
    %540 = vector.extract_strided_slice %536 {offsets = [8, 0], sizes = [8, 32], strides = [1, 1]} : vector<16x32xf32> to vector<8x32xf32>
    %cst_193 = arith.constant dense<0.000000e+00> : vector<32xf32>
    %541 = vector.multi_reduction <add>, %540, %cst_193 [0] : vector<8x32xf32> to vector<32xf32>
    %542 = vector.shape_cast %541 : vector<32xf32> to vector<1x32xf32>
    %543 = tpu.concatenate %539, %542 in 0 : vector<1x32xf32>, vector<1x32xf32> -> vector<2x32xf32>
    %cst_194 = arith.constant 1.250000e-01 : f32
    %544 = vector.broadcast %cst_194 : f32 to vector<2x32xf32>
    %545 = arith.mulf %543, %544 : vector<2x32xf32>
    %c0_195 = arith.constant 0 : index
    %c0_196 = arith.constant 0 : index
    %546 = vector.load %arg16[%c0_195, %c0_196] : memref<1x32xf32, #tpu.memory_space<vmem>>, vector<1x32xf32>
    %c0_197 = arith.constant 0 : index
    %c0_198 = arith.constant 0 : index
    %547 = vector.load %arg17[%c0_197, %c0_198] : memref<1x32xf32, #tpu.memory_space<vmem>>, vector<1x32xf32>
    %cst_199 = arith.constant dense<0.000000e+00> : vector<2xf32>
    %548 = vector.multi_reduction <add>, %545, %cst_199 [1] : vector<2x32xf32> to vector<2xf32>
    %549 = vector.shape_cast %548 : vector<2xf32> to vector<2x1xf32>
    %cst_200 = arith.constant 3.200000e+01 : f32
    %550 = vector.broadcast %cst_200 : f32 to vector<2x1xf32>
    %551 = arith.divf %549, %550 : vector<2x1xf32>
    %552 = vector.broadcast %551 : vector<2x1xf32> to vector<2x32xf32>
    %553 = arith.subf %545, %552 : vector<2x32xf32>
    %554 = arith.mulf %553, %553 : vector<2x32xf32>
    %cst_201 = arith.constant dense<0.000000e+00> : vector<2xf32>
    %555 = vector.multi_reduction <add>, %554, %cst_201 [1] : vector<2x32xf32> to vector<2xf32>
    %556 = vector.shape_cast %555 : vector<2xf32> to vector<2x1xf32>
    %cst_202 = arith.constant 3.200000e+01 : f32
    %557 = vector.broadcast %cst_202 : f32 to vector<2x1xf32>
    %558 = arith.divf %556, %557 : vector<2x1xf32>
    %cst_203 = arith.constant 9.99999996E-13 : f32
    %559 = vector.broadcast %cst_203 : f32 to vector<2x1xf32>
    %560 = arith.addf %558, %559 : vector<2x1xf32>
    %561 = math.rsqrt %560 : vector<2x1xf32>
    %562 = vector.broadcast %561 : vector<2x1xf32> to vector<2x32xf32>
    %563 = arith.mulf %553, %562 : vector<2x32xf32>
    %564 = vector.broadcast %546 : vector<1x32xf32> to vector<2x32xf32>
    %565 = arith.mulf %563, %564 : vector<2x32xf32>
    %566 = vector.broadcast %547 : vector<1x32xf32> to vector<2x32xf32>
    %567 = arith.addf %565, %566 : vector<2x32xf32>
    %568 = arith.truncf %567 : vector<2x32xf32> to vector<2x32xbf16>
    %c0_204 = arith.constant 0 : index
    %c0_205 = arith.constant 0 : index
    %569 = vector.load %arg18[%c0_204, %c0_205] : memref<32x128xbf16, #tpu.memory_space<vmem>>, vector<32x128xbf16>
    %cst_206 = arith.constant dense<0.000000e+00> : vector<2x128xf32>
    %570 = tpu.matmul %568, %569, %cst_206 {dimension_numbers = #tpu.dot_dimension_numbers<[1], [0], [0], [1], [0, 0, 1, 1], [], []>} : vector<2x32xbf16>, vector<32x128xbf16>, vector<2x128xf32> -> vector<2x128xf32>
    %c0_207 = arith.constant 0 : index
    %c0_208 = arith.constant 0 : index
    %571 = vector.load %arg19[%c0_207, %c0_208] : memref<1x128xf32, #tpu.memory_space<vmem>>, vector<1x128xf32>
    %572 = vector.broadcast %571 : vector<1x128xf32> to vector<2x128xf32>
    %573 = arith.addf %570, %572 : vector<2x128xf32>
    %c0_209 = arith.constant 0 : index
    %c0_210 = arith.constant 0 : index
    %574 = vector.load %arg20[%c0_209, %c0_210] : memref<2x128xf32, #tpu.memory_space<vmem>>, vector<2x128xf32>
    tpu.vector_store %arg20[%c0_209, %c0_210], %573 {strides = array<i32>} : memref<2x128xf32, #tpu.memory_space<vmem>>, vector<2x128xf32>,
    return
  }
  func.func @transform_0(%arg0: i32) -> (i32, i32) {
    %c0_i32 = arith.constant 0 : i32
    %c0_i32_0 = arith.constant 0 : i32
    %c0_i32_1 = arith.constant 0 : i32
    return %c0_i32, %c0_i32_0 : i32, i32
  }
  func.func @transform_1(%arg0: i32) -> (i32, i32) {
    %c0_i32 = arith.constant 0 : i32
    %c0_i32_0 = arith.constant 0 : i32
    %c0_i32_1 = arith.constant 0 : i32
    return %c0_i32, %c0_i32_0 : i32, i32
  }
  func.func @transform_2(%arg0: i32) -> (i32, i32) {
    %c0_i32 = arith.constant 0 : i32
    %c0_i32_0 = arith.constant 0 : i32
    %c0_i32_1 = arith.constant 0 : i32
    return %c0_i32, %c0_i32_0 : i32, i32
  }
  func.func @transform_3(%arg0: i32) -> (i32, i32, i32) {
    %c0_i32 = arith.constant 0 : i32
    %c0_i32_0 = arith.constant 0 : i32
    %c0_i32_1 = arith.constant 0 : i32
    %c0_i32_2 = arith.constant 0 : i32
    return %c0_i32, %c0_i32_0, %c0_i32_1 : i32, i32, i32
  }
  func.func @transform_4(%arg0: i32) -> (i32, i32, i32) {
    %c0_i32 = arith.constant 0 : i32
    %c0_i32_0 = arith.constant 0 : i32
    %c0_i32_1 = arith.constant 0 : i32
    %c0_i32_2 = arith.constant 0 : i32
    return %c0_i32, %c0_i32_0, %c0_i32_1 : i32, i32, i32
  }
  func.func @transform_5(%arg0: i32) -> (i32, i32, i32) {
    %c0_i32 = arith.constant 0 : i32
    %c0_i32_0 = arith.constant 0 : i32
    %c0_i32_1 = arith.constant 0 : i32
    %c0_i32_2 = arith.constant 0 : i32
    return %c0_i32, %c0_i32_0, %c0_i32_1 : i32, i32, i32
  }
  func.func @transform_6(%arg0: i32) -> (i32, i32, i32) {
    %c0_i32 = arith.constant 0 : i32
    %c0_i32_0 = arith.constant 0 : i32
    %c0_i32_1 = arith.constant 0 : i32
    %c0_i32_2 = arith.constant 0 : i32
    return %c0_i32, %c0_i32_0, %c0_i32_1 : i32, i32, i32
  }
  func.func @transform_7(%arg0: i32) -> (i32, i32, i32) {
    %c0_i32 = arith.constant 0 : i32
    %c0_i32_0 = arith.constant 0 : i32
    %c0_i32_1 = arith.constant 0 : i32
    %c0_i32_2 = arith.constant 0 : i32
    return %c0_i32, %c0_i32_0, %c0_i32_1 : i32, i32, i32
  }
  func.func @transform_8(%arg0: i32) -> (i32, i32, i32) {
    %c0_i32 = arith.constant 0 : i32
    %c0_i32_0 = arith.constant 0 : i32
    %c0_i32_1 = arith.constant 0 : i32
    %c0_i32_2 = arith.constant 0 : i32
    return %c0_i32, %c0_i32_0, %c0_i32_1 : i32, i32, i32
  }
  func.func @transform_9(%arg0: i32) -> (i32, i32, i32) {
    %c0_i32 = arith.constant 0 : i32
    %c0_i32_0 = arith.constant 0 : i32
    %c0_i32_1 = arith.constant 0 : i32
    %c0_i32_2 = arith.constant 0 : i32
    return %c0_i32, %c0_i32_0, %c0_i32_1 : i32, i32, i32
  }
  func.func @transform_10(%arg0: i32) -> (i32, i32, i32) {
    %c0_i32 = arith.constant 0 : i32
    %c0_i32_0 = arith.constant 0 : i32
    %c0_i32_1 = arith.constant 0 : i32
    %c0_i32_2 = arith.constant 0 : i32
    return %c0_i32, %c0_i32_0, %c0_i32_1 : i32, i32, i32
  }
  func.func @transform_11(%arg0: i32) -> (i32, i32, i32) {
    %c0_i32 = arith.constant 0 : i32
    %c0_i32_0 = arith.constant 0 : i32
    %c0_i32_1 = arith.constant 0 : i32
    %c0_i32_2 = arith.constant 0 : i32
    return %c0_i32, %c0_i32_0, %c0_i32_1 : i32, i32, i32
  }
  func.func @transform_12(%arg0: i32) -> (i32, i32, i32) {
    %c0_i32 = arith.constant 0 : i32
    %c0_i32_0 = arith.constant 0 : i32
    %c0_i32_1 = arith.constant 0 : i32
    %c0_i32_2 = arith.constant 0 : i32
    return %c0_i32, %c0_i32_0, %c0_i32_1 : i32, i32, i32
  }
  func.func @transform_13(%arg0: i32) -> (i32, i32, i32) {
    %c0_i32 = arith.constant 0 : i32
    %c0_i32_0 = arith.constant 0 : i32
    %c0_i32_1 = arith.constant 0 : i32
    %c0_i32_2 = arith.constant 0 : i32
    return %c0_i32, %c0_i32_0, %c0_i32_1 : i32, i32, i32
  }
  func.func @transform_14(%arg0: i32) -> (i32, i32, i32) {
    %c0_i32 = arith.constant 0 : i32
    %c0_i32_0 = arith.constant 0 : i32
    %c0_i32_1 = arith.constant 0 : i32
    %c0_i32_2 = arith.constant 0 : i32
    return %c0_i32, %c0_i32_0, %c0_i32_1 : i32, i32, i32
  }
  func.func @transform_15(%arg0: i32) -> (i32, i32) {
    %c0_i32 = arith.constant 0 : i32
    %c0_i32_0 = arith.constant 0 : i32
    %c0_i32_1 = arith.constant 0 : i32
    return %c0_i32, %c0_i32_0 : i32, i32
  }
  func.func @transform_16(%arg0: i32) -> (i32, i32) {
    %c0_i32 = arith.constant 0 : i32
    %c0_i32_0 = arith.constant 0 : i32
    %c0_i32_1 = arith.constant 0 : i32
    return %c0_i32, %c0_i32_0 : i32, i32
  }
  func.func @transform_17(%arg0: i32) -> (i32, i32) {
    %c0_i32 = arith.constant 0 : i32
    %c0_i32_0 = arith.constant 0 : i32
    %c0_i32_1 = arith.constant 0 : i32
    return %c0_i32, %c0_i32_0 : i32, i32
  }
  func.func @transform_18(%arg0: i32) -> (i32, i32) {
    %c0_i32 = arith.constant 0 : i32
    %c0_i32_0 = arith.constant 0 : i32
    %c0_i32_1 = arith.constant 0 : i32
    return %c0_i32, %c0_i32_0 : i32, i32
  }
  func.func @transform_19(%arg0: i32) -> (i32, i32) {
    %c0_i32 = arith.constant 0 : i32
    %c0_i32_0 = arith.constant 0 : i32
    %c0_i32_1 = arith.constant 0 : i32
    return %c0_i32, %c0_i32_0 : i32, i32
  }
}

</mosaic_0001>

<bundles_post_ra>
// kernel: vivit_forward.1
= control target key start
LH: loop header
LB: loop body
LE: loop exit
PB: predicated region body
PF: predicated region fallthrough
CT: control target
= control target key end

     0   :  { %s4747_s0 = inlined_call_operand.vmem [shape: bf16[16,384], index: 0, kind: input, shape index: {}]   ;;  %s4748_s1 = inlined_call_operand.vmem [shape: f32[16,32], index: 1, kind: input, shape index: {}]   ;;  %s4749_s2 = inlined_call_operand.vmem [shape: bf16[384,32], index: 2, kind: input, shape index: {}]   ;;  %s4750_s3 = inlined_call_operand.vmem [shape: f32[2,1,32], index: 3, kind: input, shape index: {}]   ;;  %s4751_s4 = inlined_call_operand.vmem [shape: f32[2,1,32], index: 4, kind: input, shape index: {}]   ;;  %s4752_s5 = inlined_call_operand.vmem [shape: bf16[2,32,96], index: 5, kind: input, shape index: {}]   ;;  %s4753_s6 = inlined_call_operand.vmem [shape: f32[2,1,96], index: 6, kind: input, shape index: {}]   ;;  %s4754_s7 = inlined_call_operand.vmem [shape: bf16[2,32,32], index: 7, kind: input, shape index: {}]   ;;  %s4755_s8 = inlined_call_operand.vmem [shape: f32[2,1,32], index: 8, kind: input, shape index: {}]   ;;  %s4756_s9 = inlined_call_operand.vmem [shape: f32[2,1,32], index: 9, kind: input, shape index: {}]   ;;  %s4757_s10 = inlined_call_operand.vmem [shape: f32[2,1,32], index: 10, kind: input, shape index: {}]   ;;  %s4758_s11 = inlined_call_operand.vmem [shape: bf16[2,32,64], index: 11, kind: input, shape index: {}]   ;;  %s4759_s12 = inlined_call_operand.vmem [shape: f32[2,1,64], index: 12, kind: input, shape index: {}]   ;;  %s4760_s13 = inlined_call_operand.vmem [shape: bf16[2,64,32], index: 13, kind: input, shape index: {}]   ;;  %s4761_s14 = inlined_call_operand.vmem [shape: f32[2,1,32], index: 14, kind: input, shape index: {}]   ;;  %s4762_s15 = inlined_call_operand.vmem [shape: f32[1,32], index: 15, kind: input, shape index: {}]   ;;  %s4763_s16 = inlined_call_operand.vmem [shape: f32[1,32], index: 16, kind: input, shape index: {}]   ;;  %s4764_s17 = inlined_call_operand.vmem [shape: bf16[32,128], index: 17, kind: input, shape index: {}]   ;;  %s4765_s18 = inlined_call_operand.vmem [shape: f32[1,128], index: 18, kind: input, shape index: {}]   ;;  %s4766_s19 = inlined_call_operand.hbm [shape: f32[2,128], index: 19, kind: output, shape index: {}]  }
   0x1   :  { %4784 = sst [smem:[#allocation5_spill]] %s4747_s0 }
   0x2   :  { %4785 = sst [smem:[#allocation6_spill]] %s4748_s1 }
   0x3   :  { %4786 = sst [smem:[#allocation7_spill]] %s4749_s2 }
   0x4   :  { %4787 = sst [smem:[#allocation8_spill]] %s4750_s3 }
   0x5   :  { %s4788_s20 = sld [smem:[#allocation7_spill]]  ;;  %v3906_v2 = vmov 0.0   ;;  %vm3907_vm0 = vmmov 0   ;;  %s4789_s22 = sld [smem:[#allocation5_spill]] }
   0x6   :  { %3403 = vmatprep.subr.bf16.mxu1 %v3906_v2  ;;  %3419 = vmatprep.mubr.msk.bf16.mxu1 %vm3907_vm0, %v3906_v2 }
   0xb   :  { %v3742_v0 = vld [vmem:[%s4788_s20 + $0x40] sm:$0xff]   ;;  %v3745_v4 = vld [vmem:[%s4788_s20 + $0x48] sm:$0xff]   ;;  %v3748_v7 = vld [vmem:[%s4788_s20 + $0x50] sm:$0xff]  }
   0xc   :  { %v3743_v1 = vld [vmem:[%s4788_s20] sm:$0xff]   ;;  %3277 = vmatprep.subr.bf16.mxu0 %v3742_v0  ;;  %v3746_v5 = vld [vmem:[%s4788_s20 + $0x8] sm:$0xff]   ;;  %v3749_v8 = vld [vmem:[%s4788_s20 + $0x10] sm:$0xff]  }
   0xd   :  { %v3744_v3 = vld [vmem:[%s4788_s20 + $0x80] sm:$0xff]   ;;  %3278 = vmatpush3.bf16.msra.mxu0 %v3743_v1  ;;  %v3747_v6 = vld [vmem:[%s4788_s20 + $0x88] sm:$0xff]   ;;  %v3750_v9 = vld [vmem:[%s4788_s20 + $0x90] sm:$0xff]  }
   0xe   :  { %3404 = vmatpush3.bf16.msra.mxu1 %v3744_v3  ;;  %3279 = vmatprep.subr.bf16.mxu0 %v3745_v4  ;;  %v3751_v10 = vld [vmem:[%s4788_s20 + $0x58] sm:$0xff]   ;;  %v3754_v13 = vld [vmem:[%s4788_s20 + $0x60] sm:$0xff]   ;;  %v3757_v16 = vld [vmem:[%s4788_s20 + $0x68] sm:$0xff]  }
   0xf   :  { %3405 = vmatprep.subr.bf16.mxu1 %v3906_v2  ;;  %v3752_v11 = vld [vmem:[%s4788_s20 + $0x18] sm:$0xff]   ;;  %v3755_v14 = vld [vmem:[%s4788_s20 + $0x20] sm:$0xff]   ;;  %v3758_v17 = vld [vmem:[%s4788_s20 + $0x28] sm:$0xff]  }
  0x10   :  { %v3753_v12 = vld [vmem:[%s4788_s20 + $0x98] sm:$0xff]   ;;  %v3756_v15 = vld [vmem:[%s4788_s20 + $0xa0] sm:$0xff]   ;;  %v3759_v18 = vld [vmem:[%s4788_s20 + $0xa8] sm:$0xff]  }
  0x11   :  { %3280 = vmatpush3.bf16.msra.mxu0 %v3746_v5  ;;  %v3760_v19 = vld [vmem:[%s4788_s20 + $0x70] sm:$0xff]   ;;  %v3763_v22 = vld [vmem:[%s4788_s20 + $0x78] sm:$0xff]   ;;  %v3765_v26 = vld [vmem:[%s4789_s22] ss:$12 sps:$4 sm:$0xff]  }
  0x12   :  { %3406 = vmatpush3.bf16.msra.mxu1 %v3747_v6  ;;  %3281 = vmatprep.subr.bf16.mxu0 %v3748_v7  ;;  %v3761_v20 = vld [vmem:[%s4788_s20 + $0x30] sm:$0xff]   ;;  %v3764_v24 = vld [vmem:[%s4788_s20 + $0x38] sm:$0xff]  }
  0x13   :  { %3407 = vmatprep.subr.bf16.mxu1 %v3906_v2  ;;  %v3762_v21 = vld [vmem:[%s4788_s20 + $0xb0] sm:$0xff]   ;;  %v3768_v25 = vld [vmem:[%s4788_s20 + $0xb8] sm:$0xff]  }
  0x14   :  { %v3767_v23 = vld [vmem:[%s4789_s22 + $0x4] ss:$12 sps:$4 sm:$0xff]   ;;  %v3769_v27 = vld [vmem:[%s4789_s22 + $0x8] ss:$12 sps:$4 sm:$0xff]  }
  0x15   :  { %3282 = vmatpush3.bf16.msra.mxu0 %v3749_v8  ;;  %310 = vmatprep.mubr.bf16.mxu0 %v3767_v23 }
  0x16   :  { %3408 = vmatpush3.bf16.msra.mxu1 %v3750_v9  ;;  %3283 = vmatprep.subr.bf16.mxu0 %v3751_v10 }
  0x17   :  { %3409 = vmatprep.subr.bf16.mxu1 %v3906_v2 }
  0x19   :  { %3284 = vmatpush3.bf16.msra.mxu0 %v3752_v11 }
  0x1a   :  { %3410 = vmatpush3.bf16.msra.mxu1 %v3753_v12  ;;  %3285 = vmatprep.subr.bf16.mxu0 %v3754_v13 }
  0x1b   :  { %3411 = vmatprep.subr.bf16.mxu1 %v3906_v2 }
  0x1d   :  { %3286 = vmatpush3.bf16.msra.mxu0 %v3755_v14 }
  0x1e   :  { %3412 = vmatpush3.bf16.msra.mxu1 %v3756_v15  ;;  %3287 = vmatprep.subr.bf16.mxu0 %v3757_v16 }
  0x1f   :  { %3413 = vmatprep.subr.bf16.mxu1 %v3906_v2 }
  0x21   :  { %3288 = vmatpush3.bf16.msra.mxu0 %v3758_v17 }
  0x22   :  { %3414 = vmatpush3.bf16.msra.mxu1 %v3759_v18  ;;  %3289 = vmatprep.subr.bf16.mxu0 %v3760_v19 }
  0x23   :  { %3415 = vmatprep.subr.bf16.mxu1 %v3906_v2 }
  0x25   :  { %3290 = vmatpush3.bf16.msra.mxu0 %v3761_v20 }
  0x26   :  { %3416 = vmatpush3.bf16.msra.mxu1 %v3762_v21  ;;  %3291 = vmatprep.subr.bf16.mxu0 %v3763_v22 }
  0x27   :  { %3417 = vmatprep.subr.bf16.mxu1 %v3906_v2 }
  0x29   :  { %3292 = vmatpush3.bf16.msra.mxu0 %v3764_v24 }
  0x2a   :  { %3418 = vmatpush3.bf16.msra.mxu1 %v3768_v25  ;;  %3423 = vmatprep.subr.bf16.mxu0 %v3906_v2 }
  0x2b   :  { %3431 = vmatprep.subr.bf16.mxu1 %v3906_v2 }
  0x2c   :  { %311 = vmatmul.mubr.bf16.vlgmr.msra.gmra.mrb[0].mxu0 %v3765_v26 }
  0x2d   :  { %3420 = vmatmul.mubr.bf16.vlgmr.msra.gmra.mrb[0].mxu1 %v3769_v27  ;;  %3427 = vmatprep.mubr.msk.bf16.mxu0 %vm3907_vm0, %v3906_v2 }
  0x2e   :  { %3433 = vmatprep.mubr.msk.bf16.mxu1 %vm3907_vm0, %v3906_v2 }
  0x2f   :  { %24 = vsyncpa [#allocation3], 0  ;;  %s4790_s0 = sld [smem:[#allocation6_spill]]  ;;  %vm362_vm1 = vcmask 261120   ;;  %v3770_v56 = vld [vmem:[%s4752_s5] sm:$0xff]   ;;  %v3771_v57 = vld [vmem:[%s4752_s5 + $0x8] sm:$0xff]  }
  0x30   :  { %3424 = vmatpush3.bf16.msra.mxu0 %v3770_v56  ;;  %s4791_s3 = sld [smem:[#allocation8_spill]]  ;;  %v3168_v7 = vld [vmem:[%s4751_s4] ss:$0 sm:$0xff]  ;;  %s3908_s29 = smov 88   ;;  %vm478_vm2 = vcmask 64512   ;;  %vm543_vm3 = vcmask 1043456  }
  0x31   :  { %3425 = vmatprep.subr.bf16.mxu0 %v3906_v2  ;;  %v3169_v12 = vld [vmem:[%s4753_s6] ss:$0 sm:$0xff]  ;;  %s3910_s30 = smov 120   ;;  %s3911_s21 = smov 112   ;;  %vm933_vm4 = vcmask 130048   ;;  %vm935_vm5 = vcmask 195584  }
  0x32   :  { %s3912_s1 = smov 80   ;;  %s4782_s22 = smov 104   ;;  %vm1636_vm6 = vcmask 523264   ;;  %vm3025_vm7 = vcmask 1040384   ;;  %vm3030_vm8 = vcmask 254976  }
  0x33   :  { %s3914_s2 = smov 72   ;;  %s4780_s23 = smov 56  }
  0x34   :  { %3426 = vmatpush3.bf16.msra.mxu0 %v3771_v57  ;;  %s4775_s24 = smov 64   ;;  %s4773_s25 = smov 48  }
  0x35   :  { %v116_v30 = vld [vmem:[%s4790_s0] sm:$0xff]  ;;  %v117_v36 = vld [vmem:[%s4790_s0 + $0x8] sm:$0xff]  ;;  %3437 = vmatprep.subr.bf16.mxu0 %v3906_v2  ;;  %s3909_s0 = smov 96   ;;  %s4771_s26 = smov 40  }
  0x36   :  { %v3167_v3 = vld [vmem:[%s4791_s3] ss:$0 sm:$0xff]  ;;  %s4779_s27 = smov 8   ;;  %s4777_s28 = smov 24  }
  0xff   :  { %v3293_v28 = vpop.f32.mrb[0].mxu0 }
 0x100   :  { %v3294_v29 = vpop.f32.mrb[1].mxu0  ;;  %v353_v31 = vpop.f32.mrb[0].mxu1 }
 0x101   :  { %v3295_v32 = vadd.f32 %v3294_v29, %v3293_v28  ;;  %v3296_v33 = vpop.f32.mrb[2].mxu0  ;;  %v3421_v34 = vpop.f32.mrb[1].mxu1 }
 0x102   :  { %v3297_v35 = vpop.f32.mrb[3].mxu0  ;;  %v356_v37 = vpop.f32.mrb[2].mxu1 }
 0x103   :  { %v313_v38 = vadd.f32 %v3295_v32, %v116_v30  ;;  %v3298_v39 = vadd.f32 %v3297_v35, %v3296_v33  ;;  %v3422_v40 = vpop.f32.mrb[3].mxu1 }
 0x105   :  { %v4126_v41 = vadd.f32 %v353_v31, %v313_v38  ;;  %v316_v42 = vadd.f32 %v3298_v39, %v117_v36 }
 0x107   :  { %v4128_v43 = vadd.f32 %v356_v37, %v316_v42  ;;  %v363_v44 = vsel %vm362_vm1, %v4126_v41, 0.0 }
 0x108   :  { %364 = vadd.xlane.f32.xlu0 %v363_v44 }
 0x109   :  { %v366_v45 = vsel %vm362_vm1, %v4128_v43, 0.0 }
 0x10c   :  { %367 = vadd.xlane.f32.xlu0 %v366_v45 }
 0x195   :  { %v365_v46 = vpop.xlane.xlu0 %364 }
 0x196   :  { %v370_v47 = vmul.f32 0.03125, %v365_v46 }
 0x198   :  { %v372_v48 = vsub.f32 %v4126_v41, %v370_v47 }
 0x199   :  { %v368_v49 = vpop.xlane.xlu0 %367 }
 0x19a   :  { %v371_v50 = vmul.f32 0.03125, %v368_v49  ;;  %v374_v51 = vmul.f32 %v372_v48, %v372_v48 }
 0x19c   :  { %v373_v52 = vsub.f32 %v4128_v43, %v371_v50  ;;  %v376_v53 = vsel %vm362_vm1, %v374_v51, 0.0 }
 0x19d   :  { %377 = vadd.xlane.f32.xlu1 %v376_v53 }
 0x19e   :  { %v375_v54 = vmul.f32 %v373_v52, %v373_v52 }
 0x1a0   :  { %v379_v55 = vsel %vm362_vm1, %v375_v54, 0.0 }
 0x1a1   :  { %380 = vadd.xlane.f32.xlu1 %v379_v55 }
 0x22a   :  { %v378_v58 = vpop.xlane.xlu1 %377 }
 0x22b   :  { %v382_v59 = vmul.f32 0.03125, %v378_v58 }
 0x22d   :  { %v384_v60 = vadd.f32 1e-12, %v382_v59 }
 0x22e   :  { %v381_v61 = vpop.xlane.xlu1 %380 }
 0x22f   :  { %3792 = vrsqrt.f32 %v384_v60  ;;  %v383_v62 = vmul.f32 0.03125, %v381_v61 }
 0x231   :  { %v385_v63 = vadd.f32 1e-12, %v383_v62 }
 0x233   :  { %3794 = vrsqrt.f32 %v385_v63 }
 0x239   :  { %v3793_v0 = vpop.eup %3792 }
 0x23a   :  { %v388_v1 = vmul.f32 %v3793_v0, %v372_v48 }
 0x23c   :  { %v396_v6 = vmul.f32 %v3167_v3, %v388_v1 }
 0x23d   :  { %v3795_v4 = vpop.eup %3794 }
 0x23e   :  { %v389_v5 = vmul.f32 %v3795_v4, %v373_v52  ;;  %v404_v9 = vadd.f32 %v3168_v7, %v396_v6 }
 0x240   :  { %v397_v8 = vmul.f32 %v3167_v3, %v389_v5 }
 0x242   :  { %v405_v10 = vadd.f32 %v3168_v7, %v397_v8 }
 0x244   :  { %v406_v11 = vpack.c.bf16 %v405_v10, %v404_v9 }
 0x246   :  { %3428 = vmatmul.mubr.msk.bf16.vlgmr.msra.gmra.mrb[4].mxu0 %vm362_vm1, %v406_v11 }
 0x247   :  { %3439 = vmatprep.mubr.msk.bf16.mxu0 %vm3907_vm0, %v3906_v2 }
 0x319   :  { %v467_v13 = vpop.f32.mrb[4].mxu0 }
 0x31a   :  { %v468_v14 = vadd.f32 %v3169_v12, %v467_v13  ;;  %v3429_v15 = vpop.f32.mrb[5].mxu0 }
 0x31b   :  { %v470_v16 = vpop.f32.mrb[6].mxu0 }
 0x31c   :  { %v4158_v17 = vpack.c.bf16 %v468_v14, %v468_v14  ;;  %v3430_v18 = vpop.f32.mrb[7].mxu0  ;;  %v471_v19 = vadd.f32 %v3169_v12, %v470_v16 }
 0x31e   :  { %589 = vrot.lane.b32.xlu1 %v4158_v17, %s3908_s29  ;;  %476 = vrot.lane.b32.xlu0 %v4158_v17, %s3909_s0  ;;  %v4172_v20 = vpack.c.bf16 %v471_v19, %v471_v19 }
 0x322   :  { %587 = vrot.lane.b32.xlu1 %v4158_v17, %s3910_s30  ;;  %698 = vrot.lane.b32.xlu0 %v4158_v17, %s3911_s21 }
 0x326   :  { %700 = vrot.lane.b32.xlu1 %v4158_v17, %s3912_s1  ;;  %809 = vrot.lane.b32.xlu0 %v4158_v17, %s4782_s22 }
 0x32a   :  { %811 = vrot.lane.b32.xlu1 %v4158_v17, %s3914_s2  ;;  %1050 = vrot.lane.b32.xlu0 %v4172_v20, %s3908_s29 }
 0x32e   :  { %1161 = vrot.lane.b32.xlu0 %v4172_v20, %s3912_s1  ;;  %939 = vrot.lane.b32.xlu1 %v4172_v20, %s3909_s0 }
 0x332   :  { %1272 = vrot.lane.b32.xlu0 %v4172_v20, %s3914_s2  ;;  %1048 = vrot.lane.b32.xlu1 %v4172_v20, %s3910_s30 }
 0x336   :  { %1159 = vrot.lane.b32.xlu1 %v4172_v20, %s3911_s21 }
 0x33a   :  { %1270 = vrot.lane.b32.xlu1 %v4172_v20, %s4782_s22  ;;  %s3922_s22 = smov [#allocation2]  }
 0x33e   :  { %650 = vrot.lane.b32.xlu1 %v4158_v17, %s4780_s23 }
 0x390   :  { %v477_v21 = vpop.permute.xlu0 %476  ;;  %v590_v23 = vpop.permute.xlu1 %589 }
 0x391   :  { %v483_v22 = vsel %vm478_vm2, %v477_v21, 0  ;;  %v595_v25 = vsel %vm478_vm2, %v590_v23, 0 }
 0x392   :  { %3432 = vmatpush3.bf16.xpose.msra.mxu1 %v483_v22 }
 0x393   :  { %3443 = vmatprep.subr.bf16.mxu1 %v3906_v2 }
 0x394   :  { %v588_v24 = vpop.permute.xlu1 %587  ;;  %v699_v29 = vpop.permute.xlu0 %698 }
 0x398   :  { %v701_v26 = vpop.permute.xlu1 %700  ;;  %v810_v32 = vpop.permute.xlu0 %809 }
 0x399   :  { %3434 = vmatmul.mubr.msk.bf16.vlgmr.msra.gmra.mrb[4].mxu1 %vm478_vm2, %v4158_v17  ;;  %v706_v27 = vsel %vm478_vm2, %v701_v26, 0 }
 0x39a   :  { %3444 = vmatpush3.bf16.xpose.msra.mxu1 %v595_v25  ;;  %3445 = vmatprep.mubr.msk.bf16.mxu1 %vm3907_vm0, %v3906_v2 }
 0x39b   :  { %3455 = vmatprep.subr.bf16.mxu1 %v3906_v2 }
 0x39c   :  { %v812_v28 = vpop.permute.xlu1 %811  ;;  %v1051_v34 = vpop.permute.xlu0 %1050 }
 0x39d   :  { %v817_v30 = vsel %vm478_vm2, %v812_v28, 0  ;;  %v1056_v35 = vsel %vm478_vm2, %v1051_v34, 0 }
 0x3a0   :  { %v940_v31 = vpop.permute.xlu1 %939  ;;  %v1162_v36 = vpop.permute.xlu0 %1161 }
 0x3a1   :  { %3446 = vmatmul.mubr.msk.bf16.vlgmr.msra.gmra.mrb[8].mxu1 %vm478_vm2, %v588_v24  ;;  %v945_v33 = vsel %vm478_vm2, %v940_v31, 0  ;;  %v1167_v38 = vsel %vm478_vm2, %v1162_v36, 0 }
 0x3a2   :  { %3456 = vmatpush3.bf16.xpose.msra.mxu1 %v706_v27  ;;  %3457 = vmatprep.mubr.msk.bf16.mxu1 %vm3907_vm0, %v3906_v2 }
 0x3a3   :  { %3467 = vmatprep.subr.bf16.mxu1 %v3906_v2 }
 0x3a4   :  { %v1049_v37 = vpop.permute.xlu1 %1048  ;;  %v1273_v39 = vpop.permute.xlu0 %1272 }
 0x3a5   :  { %v1278_v42 = vsel %vm478_vm2, %v1273_v39, 0 }
 0x3a8   :  { %v1160_v40 = vpop.permute.xlu1 %1159 }
 0x3a9   :  { %3458 = vmatmul.mubr.msk.bf16.vlgmr.msra.gmra.mrb[12].mxu1 %vm478_vm2, %v699_v29 }
 0x3aa   :  { %3468 = vmatpush3.bf16.xpose.msra.mxu1 %v817_v30  ;;  %3469 = vmatprep.mubr.msk.bf16.mxu1 %vm3907_vm0, %v3906_v2 }
 0x3ab   :  { %3479 = vmatprep.subr.bf16.mxu1 %v3906_v2 }
 0x3ac   :  { %v1271_v44 = vpop.permute.xlu1 %1270 }
 0x3b1   :  { %3470 = vmatmul.mubr.msk.bf16.vlgmr.msra.gmra.mrb[16].mxu1 %vm478_vm2, %v810_v32 }
 0x3b2   :  { %3480 = vmatpush3.bf16.xpose.msra.mxu1 %v945_v33  ;;  %3481 = vmatprep.mubr.msk.bf16.mxu1 %vm3907_vm0, %v3906_v2 }
 0x3b3   :  { %3491 = vmatprep.subr.bf16.mxu1 %v3906_v2 }
 0x3b9   :  { %3482 = vmatmul.mubr.msk.bf16.vlgmr.msra.gmra.mrb[20].mxu1 %vm478_vm2, %v4172_v20 }
 0x3ba   :  { %3492 = vmatpush3.bf16.xpose.msra.mxu1 %v1056_v35  ;;  %3493 = vmatprep.mubr.msk.bf16.mxu1 %vm3907_vm0, %v3906_v2  ;;  %v4255_v35 = vpop.permute.xlu1 %650 }
 0x3bb   :  { %3503 = vmatprep.subr.bf16.mxu1 %v3906_v2 }
 0x3c1   :  { %3494 = vmatmul.mubr.msk.bf16.vlgmr.msra.gmra.mrb[24].mxu1 %vm478_vm2, %v1049_v37 }
 0x3c2   :  { %3504 = vmatpush3.bf16.xpose.msra.mxu1 %v1167_v38  ;;  %3505 = vmatprep.mubr.msk.bf16.mxu1 %vm3907_vm0, %v3906_v2 }
 0x3c3   :  { %3515 = vmatprep.subr.bf16.mxu1 %v3906_v2 }
 0x3c9   :  { %3506 = vmatmul.mubr.msk.bf16.vlgmr.msra.gmra.mrb[28].mxu1 %vm478_vm2, %v1160_v40 }
 0x3ca   :  { %3516 = vmatpush3.bf16.xpose.msra.mxu1 %v1278_v42  ;;  %3517 = vmatprep.mubr.msk.bf16.mxu1 %vm3907_vm0, %v3906_v2 }
 0x3cb   :  { %3527 = vmatprep.subr.bf16.mxu1 %v3906_v2 }
 0x3d1   :  { %3518 = vmatmul.mubr.msk.bf16.vlgmr.msra.gmra.mrb[32].mxu1 %vm478_vm2, %v1271_v44 }
 0x3d2   :  { %3531 = vmatprep.mubr.msk.bf16.mxu1 %vm3907_vm0, %v3906_v2 }
 0x46c   :  { %v519_v45 = vpop.f32.mrb[4].mxu1 }
 0x46d   :  { %v525_v46 = vmul.f32 0.35355338, %v519_v45  ;;  %v3435_v47 = vpop.f32.mrb[5].mxu1 }
 0x46e   :  { %v522_v48 = vpop.f32.mrb[6].mxu1 }
 0x46f   :  { %v3436_v49 = vpop.f32.mrb[7].mxu1  ;;  %v526_v50 = vsel %vm478_vm2, %v525_v46, -inf }
 0x470   :  { %527 = vmax.xlane.f32.xlu0 %v526_v50 }
 0x474   :  { %v631_v51 = vpop.f32.mrb[8].mxu1 }
 0x475   :  { %v4235_v52 = vmul.f32 0.35355338, %v631_v51  ;;  %v3447_v53 = vpop.f32.mrb[9].mxu1 }
 0x476   :  { %v634_v54 = vpop.f32.mrb[10].mxu1 }
 0x477   :  { %v3448_v55 = vpop.f32.mrb[11].mxu1  ;;  %v638_v56 = vsel %vm478_vm2, %v4235_v52, -inf }
 0x478   :  { %639 = vmax.xlane.f32.xlu1 %v638_v56 }
 0x47c   :  { %v742_v57 = vpop.f32.mrb[12].mxu1 }
 0x47d   :  { %v3459_v58 = vpop.f32.mrb[13].mxu1  ;;  %v748_v16 = vmul.f32 0.35355338, %v742_v57 }
 0x47e   :  { %v745_v59 = vpop.f32.mrb[14].mxu1 }
 0x47f   :  { %v3460_v60 = vpop.f32.mrb[15].mxu1  ;;  %v749_v21 = vsel %vm478_vm2, %v748_v16, -inf }
 0x484   :  { %v853_v61 = vpop.f32.mrb[16].mxu1 }
 0x485   :  { %v3471_v62 = vpop.f32.mrb[17].mxu1  ;;  %v859_v18 = vmul.f32 0.35355338, %v853_v61 }
 0x486   :  { %v856_v63 = vpop.f32.mrb[18].mxu1  ;;  %538 = vrot.lane.b32.xlu0 %v4158_v17, %s4775_s24 }
 0x487   :  { %v3472_v0 = vpop.f32.mrb[19].mxu1  ;;  %v860_v28 = vsel %vm478_vm2, %v859_v18, -inf }
 0x48c   :  { %v981_v1 = vpop.f32.mrb[20].mxu1 }
 0x48d   :  { %v3483_v3 = vpop.f32.mrb[21].mxu1  ;;  %v987_v27 = vmul.f32 0.35355338, %v981_v1 }
 0x48e   :  { %v984_v4 = vpop.f32.mrb[22].mxu1 }
 0x48f   :  { %v3484_v5 = vpop.f32.mrb[23].mxu1  ;;  %v988_v30 = vsel %vm478_vm2, %v987_v27, -inf }
 0x494   :  { %v1092_v6 = vpop.f32.mrb[24].mxu1 }
 0x495   :  { %v4241_v7 = vmul.f32 0.35355338, %v1092_v6  ;;  %v3495_v8 = vpop.f32.mrb[25].mxu1 }
 0x496   :  { %v1095_v9 = vpop.f32.mrb[26].mxu1 }
 0x497   :  { %v3496_v10 = vpop.f32.mrb[27].mxu1  ;;  %v1099_v11 = vsel %vm478_vm2, %v4241_v7, -inf }
 0x498   :  { %1100 = vmax.xlane.f32.xlu1 %v1099_v11 }
 0x49c   :  { %v1203_v12 = vpop.f32.mrb[28].mxu1 }
 0x49d   :  { %v3507_v13 = vpop.f32.mrb[29].mxu1  ;;  %v1209_v29 = vmul.f32 0.35355338, %v1203_v12 }
 0x49e   :  { %v1206_v14 = vpop.f32.mrb[30].mxu1 }
 0x49f   :  { %v3508_v15 = vpop.f32.mrb[31].mxu1  ;;  %v1210_v31 = vsel %vm478_vm2, %v1209_v29, -inf }
 0x4a4   :  { %v1314_v19 = vpop.f32.mrb[32].mxu1 }
 0x4a5   :  { %v4246_v22 = vmul.f32 0.35355338, %v1314_v19  ;;  %750 = vmax.xlane.f32.xlu0 %v749_v21  ;;  %v3519_v23 = vpop.f32.mrb[33].mxu1  ;;  %v656_v21 = vsel %vm543_vm3, %v4255_v35, 0 }
 0x4a6   :  { %v1317_v24 = vpop.f32.mrb[34].mxu1 }
 0x4a7   :  { %v3520_v25 = vpop.f32.mrb[35].mxu1  ;;  %v1321_v26 = vsel %vm478_vm2, %v4246_v22, -inf }
 0x4a8   :  { %1322 = vmax.xlane.f32.xlu1 %v1321_v26 }
 0x4a9   :  { %861 = vmax.xlane.f32.xlu0 %v860_v28 }
 0x4ad   :  { %989 = vmax.xlane.f32.xlu0 %v988_v30 }
 0x4b1   :  { %1211 = vmax.xlane.f32.xlu0 %v1210_v31 }
 0x4c7   :  { %761 = vrot.lane.b32.xlu0 %v4158_v17, %s4773_s25 }
 0x4fd   :  { %v528_v32 = vpop.xlane.xlu0 %527 }
 0x4fe   :  { %v529_v33 = vsub.f32 %v525_v46, %v528_v32 }
 0x500   :  { %v530_v34 = vmul.f32 1.442695, %v529_v33 }
 0x501   :  { %v539_v36 = vpop.permute.xlu0 %538 }
 0x502   :  { %3796 = vpow2.f32 %v530_v34  ;;  %v545_v37 = vsel %vm543_vm3, %v539_v36, 0 }
 0x503   :  { %3438 = vmatpush3.bf16.msra.mxu0 %v545_v37 }
 0x504   :  { %3449 = vmatprep.subr.bf16.mxu0 %v3906_v2 }
 0x505   :  { %v640_v38 = vpop.xlane.xlu1 %639 }
 0x506   :  { %v641_v39 = vsub.f32 %v4235_v52, %v640_v38 }
 0x508   :  { %v642_v40 = vmul.f32 1.442695, %v641_v39 }
 0x50a   :  { %3798 = vpow2.f32 %v642_v40 }
 0x50c   :  { %v3797_v42 = vpop.eup %3796 }
 0x50d   :  { %v532_v44 = vsel %vm478_vm2, %v3797_v42, 0.0 }
 0x50e   :  { %533 = vadd.xlane.f32.xlu0 %v532_v44 }
 0x514   :  { %v4261_v45 = vpop.eup %3798 }
 0x515   :  { %v644_v46 = vsel %vm478_vm2, %v4261_v45, 0.0 }
 0x516   :  { %645 = vadd.xlane.f32.xlu1 %v644_v46 }
 0x525   :  { %v1101_v53 = vpop.xlane.xlu1 %1100 }
 0x526   :  { %v1102_v56 = vsub.f32 %v4241_v7, %v1101_v53 }
 0x527   :  { %1000 = vrot.lane.b32.xlu1 %v4172_v20, %s4775_s24 }
 0x528   :  { %v1103_v59 = vmul.f32 1.442695, %v1102_v56 }
 0x532   :  { %v751_v47 = vpop.xlane.xlu0 %750 }
 0x533   :  { %v752_v48 = vsub.f32 %v748_v16, %v751_v47 }
 0x535   :  { %v753_v49 = vmul.f32 1.442695, %v752_v48  ;;  %v1323_v7 = vpop.xlane.xlu1 %1322 }
 0x536   :  { %v862_v50 = vpop.xlane.xlu0 %861  ;;  %v1324_v8 = vsub.f32 %v4246_v22, %v1323_v7 }
 0x537   :  { %3800 = vpow2.f32 %v753_v49  ;;  %v863_v51 = vsub.f32 %v859_v18, %v862_v50 }
 0x538   :  { %v1325_v10 = vmul.f32 1.442695, %v1324_v8 }
 0x539   :  { %v864_v52 = vmul.f32 1.442695, %v863_v51 }
 0x53a   :  { %v990_v54 = vpop.xlane.xlu0 %989 }
 0x53b   :  { %v991_v55 = vsub.f32 %v987_v27, %v990_v54  ;;  %3802 = vpow2.f32 %v864_v52 }
 0x53d   :  { %v992_v57 = vmul.f32 1.442695, %v991_v55 }
 0x53e   :  { %v1212_v4 = vpop.xlane.xlu0 %1211 }
 0x53f   :  { %3804 = vpow2.f32 %v992_v57  ;;  %v1213_v5 = vsub.f32 %v1209_v29, %v1212_v4 }
 0x540   :  { %3806 = vpow2.f32 %v1103_v59 }
 0x541   :  { %v3801_v58 = vpop.eup %3800  ;;  %v1214_v6 = vmul.f32 1.442695, %v1213_v5 }
 0x542   :  { %v755_v60 = vsel %vm478_vm2, %v3801_v58, 0.0  ;;  %v762_v13 = vpop.permute.xlu0 %761 }
 0x543   :  { %756 = vadd.xlane.f32.xlu0 %v755_v60  ;;  %3808 = vpow2.f32 %v1214_v6  ;;  %v767_v24 = vsel %vm543_vm3, %v762_v13, 0 }
 0x544   :  { %3810 = vpow2.f32 %v1325_v10 }
 0x545   :  { %v4269_v61 = vpop.eup %3802 }
 0x546   :  { %v866_v62 = vsel %vm478_vm2, %v4269_v61, 0.0 }
 0x549   :  { %v4273_v63 = vpop.eup %3804 }
 0x54a   :  { %v994_v0 = vsel %vm478_vm2, %v4273_v63, 0.0  ;;  %v4277_v1 = vpop.eup %3806 }
 0x54b   :  { %867 = vadd.xlane.f32.xlu1 %v866_v62  ;;  %v1105_v3 = vsel %vm478_vm2, %v4277_v1, 0.0 }
 0x54d   :  { %v4286_v9 = vpop.eup %3808 }
 0x54e   :  { %v1216_v11 = vsel %vm478_vm2, %v4286_v9, 0.0  ;;  %v4290_v12 = vpop.eup %3810 }
 0x54f   :  { %995 = vadd.xlane.f32.xlu1 %v994_v0 }
 0x553   :  { %1106 = vadd.xlane.f32.xlu1 %v1105_v3 }
 0x559   :  { %872 = vrot.lane.b32.xlu0 %v4158_v17, %s4771_s26  ;;  %v1327_v17 = vsel %vm478_vm2, %v4290_v12, 0.0 }
 0x564   :  { %1111 = vrot.lane.b32.xlu1 %v4172_v20, %s4780_s23  ;;  %s3132_s23 = sshll.u32 %s3922_s22, 4  ;;  %s3133_s23 = int_to_ptr.vmem [resolvable:$true] %s3132_s23 }
 0x565   :  { %p3887_p1 = scmp.lt.s32.totalorder %s3133_s23, %s3133_s23 }
 0x578   :  { %1217 = vadd.xlane.f32.xlu0 %v1216_v11 }
 0x588   :  { %1328 = vadd.xlane.f32.xlu1 %v1327_v17 }
 0x58e   :  { %1222 = vrot.lane.b32.xlu0 %v4172_v20, %s4773_s25  ;;  %s4799_s25 = smov 24  }
 0x599   :  { %1333 = vrot.lane.b32.xlu1 %v4172_v20, %s4771_s26  ;;  %s4778_s26 = smov 16  }
 0x59b   :  { %v534_v14 = vpop.xlane.xlu0 %533 }
 0x59c   :  { %3812 = vrcp.f32 %v534_v14 }
 0x5a3   :  { %v646_v15 = vpop.xlane.xlu1 %645 }
 0x5a4   :  { %3814 = vrcp.f32 %v646_v15 }
 0x5a6   :  { %v3813_v16 = vpop.eup %3812 }
 0x5a7   :  { %v536_v18 = vmul.f32 %v3813_v16, %v3797_v42  ;;  %v1001_v26 = vpop.permute.xlu1 %1000 }
 0x5a8   :  { %v1006_v39 = vsel %vm543_vm3, %v1001_v26, 0 }
 0x5a9   :  { %v537_v19 = vpack.c.bf16 %v536_v18, %v536_v18 }
 0x5ab   :  { %3440 = vmatmul.mubr.msk.bf16.vlgmr.msra.gmra.mrb[8].mxu0 %vm478_vm2, %v537_v19 }
 0x5ac   :  { %3450 = vmatpush3.bf16.msra.mxu0 %v656_v21  ;;  %3451 = vmatprep.mubr.msk.bf16.mxu0 %vm3907_vm0, %v3906_v2 }
 0x5ad   :  { %3461 = vmatprep.subr.bf16.mxu0 %v3906_v2 }
 0x5ae   :  { %v3815_v22 = vpop.eup %3814 }
 0x5af   :  { %v648_v20 = vmul.f32 %v3815_v22, %v4261_v45 }
 0x5b1   :  { %v649_v23 = vpack.c.bf16 %v648_v20, %v648_v20 }
 0x5b3   :  { %3452 = vmatmul.mubr.msk.bf16.vlgmr.msra.gmra.mrb[12].mxu0 %vm478_vm2, %v649_v23  ;;  %v3772_v23 = vld [vmem:[%s4754_s7] sm:$0xff]  }
 0x5b4   :  { %3462 = vmatpush3.bf16.msra.mxu0 %v767_v24  ;;  %3463 = vmatprep.mubr.msk.bf16.mxu0 %vm3907_vm0, %v3906_v2 }
 0x5b5   :  { %3473 = vmatprep.subr.bf16.mxu0 %v3906_v2  ;;  %3528 = vmatpush3.bf16.msra.mxu1 %v3772_v23  ;;  %v3194_v23 = vld [vmem:[%s4757_s10] ss:$0 sm:$0xff] }
 0x5b6   :  { %3529 = vmatprep.subr.bf16.mxu1 %v3906_v2 }
 0x5d0   :  { %v757_v25 = vpop.xlane.xlu0 %756 }
 0x5d1   :  { %3816 = vrcp.f32 %v757_v25 }
 0x5d4   :  { %v873_v31 = vpop.permute.xlu0 %872 }
 0x5d5   :  { %v878_v33 = vsel %vm543_vm3, %v873_v31, 0 }
 0x5d8   :  { %v868_v27 = vpop.xlane.xlu1 %867 }
 0x5d9   :  { %3818 = vrcp.f32 %v868_v27 }
 0x5db   :  { %v3817_v28 = vpop.eup %3816 }
 0x5dc   :  { %v759_v29 = vmul.f32 %v3817_v28, %v3801_v58  ;;  %v996_v30 = vpop.xlane.xlu1 %995 }
 0x5dd   :  { %3820 = vrcp.f32 %v996_v30 }
 0x5de   :  { %v760_v32 = vpack.c.bf16 %v759_v29, %v759_v29  ;;  %v3773_v29 = vld [vmem:[%s4754_s7 + $0x8] sm:$0xff]  }
 0x5df   :  { %3530 = vmatpush3.bf16.msra.mxu1 %v3773_v29  ;;  %v3777_v29 = vld [vmem:[%s4760_s13 + $0x8] sm:$0xff]  }
 0x5e0   :  { %3464 = vmatmul.mubr.msk.bf16.vlgmr.msra.gmra.mrb[16].mxu0 %vm478_vm2, %v760_v32  ;;  %v1107_v34 = vpop.xlane.xlu1 %1106  ;;  %3543 = vmatprep.subr.bf16.mxu1 %v3906_v2 }
 0x5e1   :  { %3474 = vmatpush3.bf16.msra.mxu0 %v878_v33  ;;  %3475 = vmatprep.mubr.msk.bf16.mxu0 %vm3907_vm0, %v3906_v2  ;;  %3822 = vrcp.f32 %v1107_v34 }
 0x5e2   :  { %3485 = vmatprep.subr.bf16.mxu0 %v3906_v2 }
 0x5e3   :  { %v3819_v35 = vpop.eup %3818 }
 0x5e4   :  { %v870_v36 = vmul.f32 %v3819_v35, %v4269_v61  ;;  %v1112_v42 = vpop.permute.xlu1 %1111 }
 0x5e5   :  { %v1117_v46 = vsel %vm543_vm3, %v1112_v42, 0 }
 0x5e6   :  { %v871_v37 = vpack.c.bf16 %v870_v36, %v870_v36 }
 0x5e7   :  { %v3821_v38 = vpop.eup %3820 }
 0x5e8   :  { %3476 = vmatmul.mubr.msk.bf16.vlgmr.msra.gmra.mrb[20].mxu0 %vm478_vm2, %v871_v37  ;;  %v998_v40 = vmul.f32 %v3821_v38, %v4273_v63 }
 0x5e9   :  { %3486 = vmatpush3.bf16.msra.mxu0 %v1006_v39  ;;  %3487 = vmatprep.mubr.msk.bf16.mxu0 %vm3907_vm0, %v3906_v2 }
 0x5ea   :  { %3497 = vmatprep.subr.bf16.mxu0 %v3906_v2  ;;  %v999_v44 = vpack.c.bf16 %v998_v40, %v998_v40 }
 0x5eb   :  { %v3823_v45 = vpop.eup %3822 }
 0x5ec   :  { %v1109_v47 = vmul.f32 %v3823_v45, %v4277_v1 }
 0x5ee   :  { %v1110_v48 = vpack.c.bf16 %v1109_v47, %v1109_v47 }
 0x5f0   :  { %3488 = vmatmul.mubr.msk.bf16.vlgmr.msra.gmra.mrb[24].mxu0 %vm478_vm2, %v999_v44 }
 0x5f1   :  { %3498 = vmatpush3.bf16.msra.mxu0 %v1117_v46  ;;  %3499 = vmatprep.mubr.msk.bf16.mxu0 %vm3907_vm0, %v3906_v2 }
 0x5f2   :  { %3509 = vmatprep.subr.bf16.mxu0 %v3906_v2 }
 0x5f8   :  { %3500 = vmatmul.mubr.msk.bf16.vlgmr.msra.gmra.mrb[28].mxu0 %vm478_vm2, %v1110_v48 }
 0x5f9   :  { %3511 = vmatprep.mubr.msk.bf16.mxu0 %vm3907_vm0, %v3906_v2 }
 0x605   :  { %v1218_v49 = vpop.xlane.xlu0 %1217 }
 0x606   :  { %3824 = vrcp.f32 %v1218_v49 }
 0x609   :  { %v1223_v50 = vpop.permute.xlu0 %1222 }
 0x60a   :  { %v1228_v51 = vsel %vm543_vm3, %v1223_v50, 0 }
 0x60b   :  { %3510 = vmatpush3.bf16.msra.mxu0 %v1228_v51 }
 0x60c   :  { %3521 = vmatprep.subr.bf16.mxu0 %v3906_v2 }
 0x610   :  { %v3825_v52 = vpop.eup %3824 }
 0x611   :  { %v1220_v53 = vmul.f32 %v3825_v52, %v4286_v9 }
 0x613   :  { %v1221_v54 = vpack.c.bf16 %v1220_v53, %v1220_v53  ;;  %v3189_v53 = vld [vmem:[%s4755_s8] ss:$0 sm:$0xff] }
 0x615   :  { %3512 = vmatmul.mubr.msk.bf16.vlgmr.msra.gmra.mrb[32].mxu0 %vm478_vm2, %v1221_v54  ;;  %v1329_v55 = vpop.xlane.xlu1 %1328 }
 0x616   :  { %3826 = vrcp.f32 %v1329_v55  ;;  %3523 = vmatprep.mubr.msk.bf16.mxu0 %vm3907_vm0, %v3906_v2 }
 0x619   :  { %v1334_v56 = vpop.permute.xlu1 %1333 }
 0x61a   :  { %v1339_v57 = vsel %vm543_vm3, %v1334_v56, 0 }
 0x61b   :  { %3522 = vmatpush3.bf16.msra.mxu0 %v1339_v57 }
 0x61c   :  { %3535 = vmatprep.subr.bf16.mxu0 %v3906_v2 }
 0x620   :  { %v3827_v58 = vpop.eup %3826 }
 0x621   :  { %v1331_v59 = vmul.f32 %v3827_v58, %v4290_v12 }
 0x623   :  { %v1332_v60 = vpack.c.bf16 %v1331_v59, %v1331_v59 }
 0x625   :  { %3524 = vmatmul.mubr.msk.bf16.vlgmr.msra.gmra.mrb[36].mxu0 %vm478_vm2, %v1332_v60 }
 0x626   :  { %3539 = vmatprep.mubr.msk.bf16.mxu0 %vm3907_vm0, %v3906_v2 }
 0x67e   :  { %v581_v61 = vpop.f32.mrb[8].mxu0 }
 0x67f   :  { %v3441_v62 = vpop.f32.mrb[9].mxu0 }
 0x680   :  { %v584_v63 = vpop.f32.mrb[10].mxu0 }
 0x681   :  { %v3442_v0 = vpop.f32.mrb[11].mxu0 }
 0x686   :  { %v692_v1 = vpop.f32.mrb[12].mxu0 }
 0x687   :  { %v3453_v3 = vpop.f32.mrb[13].mxu0 }
 0x688   :  { %v695_v4 = vpop.f32.mrb[14].mxu0 }
 0x689   :  { %v3454_v5 = vpop.f32.mrb[15].mxu0 }
 0x6b3   :  { %v803_v6 = vpop.f32.mrb[16].mxu0 }
 0x6b4   :  { %v3465_v7 = vpop.f32.mrb[17].mxu0 }
 0x6b5   :  { %v806_v8 = vpop.f32.mrb[18].mxu0 }
 0x6b6   :  { %v3466_v9 = vpop.f32.mrb[19].mxu0 }
 0x6b7   :  { %v3774_v9 = vld [vmem:[%s4758_s11] sm:$0xff]  }
 0x6b8   :  { %3536 = vmatpush3.bf16.msra.mxu0 %v3774_v9 }
 0x6b9   :  { %3537 = vmatprep.subr.bf16.mxu0 %v3906_v2 }
 0x6bb   :  { %v914_v10 = vpop.f32.mrb[20].mxu0 }
 0x6bc   :  { %v3477_v11 = vpop.f32.mrb[21].mxu0 }
 0x6bd   :  { %v917_v12 = vpop.f32.mrb[22].mxu0 }
 0x6be   :  { %v3478_v17 = vpop.f32.mrb[23].mxu0 }
 0x6c3   :  { %v1042_v13 = vpop.f32.mrb[24].mxu0 }
 0x6c4   :  { %v3489_v14 = vpop.f32.mrb[25].mxu0 }
 0x6c5   :  { %v1045_v15 = vpop.f32.mrb[26].mxu0 }
 0x6c6   :  { %v3490_v16 = vpop.f32.mrb[27].mxu0 }
 0x6cb   :  { %v1153_v18 = vpop.f32.mrb[28].mxu0 }
 0x6cc   :  { %v3712_v19 = vpack.i.bf16 %v1153_v18, %v692_v1  ;;  %v3501_v21 = vpop.f32.mrb[29].mxu0 }
 0x6cd   :  { %v1156_v22 = vpop.f32.mrb[30].mxu0 }
 0x6ce   :  { %3713 = vrot.lane.b32.xlu0 %v3712_v19, %s4779_s27  ;;  %v3502_v20 = vpop.f32.mrb[31].mxu0  ;;  %v3193_v19 = vld [vmem:[%s4756_s9] ss:$0 sm:$0xff] }
 0x6e8   :  { %v1264_v24 = vpop.f32.mrb[32].mxu0 }
 0x6e9   :  { %v3717_v25 = vpack.i.bf16 %v1264_v24, %v803_v6  ;;  %v3513_v26 = vpop.f32.mrb[33].mxu0 }
 0x6ea   :  { %v1267_v27 = vpop.f32.mrb[34].mxu0 }
 0x6eb   :  { %3718 = vrot.lane.b32.xlu1 %v3717_v25, %s4778_s26  ;;  %v3514_v28 = vpop.f32.mrb[35].mxu0 }
 0x6ec   :  { %v3776_v28 = vld [vmem:[%s4760_s13] sm:$0xff]  }
 0x6f8   :  { %v1375_v30 = vpop.f32.mrb[36].mxu0 }
 0x6f9   :  { %v3722_v31 = vpack.i.bf16 %v1375_v30, %v914_v10  ;;  %v3525_v32 = vpop.f32.mrb[37].mxu0  ;;  %v3775_v10 = vld [vmem:[%s4758_s11 + $0x8] sm:$0xff]   ;;  %v3778_v30 = vld [vmem:[%s4760_s13 + $0x10] sm:$0xff]  }
 0x6fa   :  { %v1378_v33 = vpop.f32.mrb[38].mxu0  ;;  %3538 = vmatpush3.bf16.msra.mxu0 %v3775_v10  ;;  %v3195_v32 = vld [vmem:[%s4759_s12] ss:$0 sm:$0xff] }
 0x6fb   :  { %3723 = vrot.lane.b32.xlu0 %v3722_v31, %s4777_s28  ;;  %v3526_v34 = vpop.f32.mrb[39].mxu0  ;;  %3555 = vmatprep.subr.bf16.mxu0 %v3906_v2  ;;  %v3779_v31 = vld [vmem:[%s4760_s13 + $0x18] sm:$0xff]   ;;  %s4798_s28 = smov 16  }
 0x740   :  { %v3714_v35 = vpop.permute.xlu0 %3713 }
 0x741   :  { %v3716_v37 = vunpack.i.h.bf16 %v3714_v35  ;;  %v3715_v38 = vunpack.i.l.bf16 %v3714_v35 }
 0x743   :  { %v1393_v44 = vsel %vm478_vm2, %v1042_v13, %v3716_v37  ;;  %v932_v45 = vsel %vm478_vm2, %v581_v61, %v3715_v38 }
 0x75d   :  { %v3719_v36 = vpop.permute.xlu1 %3718 }
 0x75e   :  { %v3721_v39 = vunpack.i.h.bf16 %v3719_v36  ;;  %v3720_v40 = vunpack.i.l.bf16 %v3719_v36 }
 0x760   :  { %v1394_v48 = vsel %vm933_vm4, %v1393_v44, %v3721_v39  ;;  %v934_v49 = vsel %vm933_vm4, %v932_v45, %v3720_v40 }
 0x76d   :  { %v3724_v42 = vpop.permute.xlu0 %3723 }
 0x76e   :  { %v3726_v46 = vunpack.i.h.bf16 %v3724_v42  ;;  %v3725_v47 = vunpack.i.l.bf16 %v3724_v42 }
 0x770   :  { %v1395_v50 = vsel %vm935_vm5, %v1394_v48, %v3726_v46  ;;  %v936_v51 = vsel %vm935_vm5, %v934_v49, %v3725_v47 }
 0x771   :  { %v1396_v52 = vpack.c.bf16 %v1395_v50, %v936_v51 }
 0x773   :  { %3532 = vmatmul.mubr.msk.bf16.vlgmr.msra.gmra.mrb[36].mxu1 %vm362_vm1, %v1396_v52 }
 0x774   :  { %3551 = vmatprep.mubr.msk.bf16.mxu1 %vm3907_vm0, %v3906_v2  ;;  %3544 = vmatpush3.bf16.msra.mxu1 %v3776_v28 }
 0x775   :  { %3545 = vmatprep.subr.bf16.mxu1 %v3906_v2 }
 0x778   :  { %3546 = vmatpush3.bf16.msra.mxu1 %v3777_v29 }
 0x779   :  { %3547 = vmatprep.subr.bf16.mxu1 %v3906_v2 }
 0x77c   :  { %3548 = vmatpush3.bf16.msra.mxu1 %v3778_v30  ;;  %v3208_v30 = vld [vmem:[%s4751_s4 + $0x1] ss:$0 sm:$0xff]  ;;  %s4792_s4 = smov 104  }
 0x77d   :  { %3549 = vmatprep.subr.bf16.mxu1 %v3906_v2 }
 0x780   :  { %3550 = vmatpush3.bf16.msra.mxu1 %v3779_v31 }
 0x781   :  { %3569 = vmatprep.subr.bf16.mxu1 %v3906_v2 }
 0x846   :  { %v1457_v54 = vpop.f32.mrb[36].mxu1 }
 0x847   :  { %v1458_v55 = vadd.f32 %v3189_v53, %v1457_v54  ;;  %v3533_v56 = vpop.f32.mrb[37].mxu1 }
 0x848   :  { %v1460_v57 = vpop.f32.mrb[38].mxu1 }
 0x849   :  { %v4367_v58 = vadd.f32 %v1458_v55, %v4126_v41  ;;  %v1461_v59 = vadd.f32 %v3189_v53, %v1460_v57  ;;  %v3534_v60 = vpop.f32.mrb[39].mxu1 }
 0x84b   :  { %v4370_v61 = vadd.f32 %v1461_v59, %v4128_v43  ;;  %v1468_v62 = vsel %vm362_vm1, %v4367_v58, 0.0 }
 0x84c   :  { %1469 = vadd.xlane.f32.xlu1 %v1468_v62  ;;  %v3199_v62 = vld [vmem:[%s4761_s14] ss:$0 sm:$0xff] }
 0x84d   :  { %v1471_v63 = vsel %vm362_vm1, %v4370_v61, 0.0 }
 0x84e   :  { %1472 = vadd.xlane.f32.xlu0 %v1471_v63 }
 0x8d9   :  { %v1470_v0 = vpop.xlane.xlu1 %1469 }
 0x8da   :  { %v1474_v1 = vmul.f32 0.03125, %v1470_v0 }
 0x8db   :  { %v1473_v3 = vpop.xlane.xlu0 %1472 }
 0x8dc   :  { %v1476_v4 = vsub.f32 %v4367_v58, %v1474_v1  ;;  %v1475_v41 = vmul.f32 0.03125, %v1473_v3 }
 0x8de   :  { %v1477_v5 = vsub.f32 %v4370_v61, %v1475_v41  ;;  %v1478_v6 = vmul.f32 %v1476_v4, %v1476_v4 }
 0x8e0   :  { %v1480_v43 = vsel %vm362_vm1, %v1478_v6, 0.0  ;;  %v1479_v7 = vmul.f32 %v1477_v5, %v1477_v5 }
 0x8e1   :  { %1481 = vadd.xlane.f32.xlu0 %v1480_v43 }
 0x8e2   :  { %v1483_v8 = vsel %vm362_vm1, %v1479_v7, 0.0 }
 0x8e5   :  { %1484 = vadd.xlane.f32.xlu0 %v1483_v8 }
 0x96e   :  { %v1482_v11 = vpop.xlane.xlu0 %1481 }
 0x96f   :  { %v1486_v12 = vmul.f32 0.03125, %v1482_v11 }
 0x971   :  { %v1488_v17 = vadd.f32 1e-12, %v1486_v12 }
 0x972   :  { %v1485_v13 = vpop.xlane.xlu0 %1484 }
 0x973   :  { %3828 = vrsqrt.f32 %v1488_v17  ;;  %v1487_v14 = vmul.f32 0.03125, %v1485_v13 }
 0x975   :  { %v1489_v15 = vadd.f32 1e-12, %v1487_v14 }
 0x977   :  { %3830 = vrsqrt.f32 %v1489_v15  ;;  %v3780_v15 = vld [vmem:[%s4752_s5 + $0x10] sm:$0xff]  }
 0x97d   :  { %v3829_v16 = vpop.eup %3828 }
 0x97e   :  { %v1492_v18 = vmul.f32 %v3829_v16, %v1476_v4  ;;  %v3781_v16 = vld [vmem:[%s4752_s5 + $0x18] sm:$0xff]  }
 0x980   :  { %v1500_v22 = vmul.f32 %v3193_v19, %v1492_v18 }
 0x981   :  { %v3831_v21 = vpop.eup %3830 }
 0x982   :  { %v1493_v20 = vmul.f32 %v3831_v21, %v1477_v5  ;;  %v1508_v25 = vadd.f32 %v3194_v23, %v1500_v22 }
 0x984   :  { %v1501_v24 = vmul.f32 %v3193_v19, %v1493_v20 }
 0x986   :  { %v1509_v26 = vadd.f32 %v3194_v23, %v1501_v24 }
 0x988   :  { %v1510_v27 = vpack.c.bf16 %v1509_v26, %v1508_v25  ;;  %v3207_v25 = vld [vmem:[%s4791_s3 + $0x1] ss:$0 sm:$0xff]  ;;  %s4794_s3 = smov 64  }
 0x98a   :  { %3540 = vmatmul.mubr.msk.bf16.vlgmr.msra.gmra.mrb[40].mxu0 %vm362_vm1, %v1510_v27 }
 0x98b   :  { %3559 = vmatprep.mubr.msk.bf16.mxu0 %vm3907_vm0, %v3906_v2  ;;  %3556 = vmatpush3.bf16.msra.mxu0 %v3780_v15 }
 0x98c   :  { %3557 = vmatprep.subr.bf16.mxu0 %v3906_v2 }
 0x98f   :  { %3558 = vmatpush3.bf16.msra.mxu0 %v3781_v16 }
 0x990   :  { %3563 = vmatprep.subr.bf16.mxu0 %v3906_v2 }
 0xa5d   :  { %v1571_v33 = vpop.f32.mrb[40].mxu0 }
 0xa5e   :  { %v1572_v34 = vadd.f32 %v3195_v32, %v1571_v33  ;;  %v3541_v35 = vpop.f32.mrb[41].mxu0 }
 0xa5f   :  { %v1574_v36 = vpop.f32.mrb[42].mxu0  ;;  %v3214_v35 = vld [vmem:[%s4753_s6 + $0x1] ss:$0 sm:$0xff]  ;;  %s4793_s6 = smov 56  }
 0xa60   :  { %v1580_v37 = vmul.f32 0.044715, %v1572_v34  ;;  %v1575_v38 = vadd.f32 %v3195_v32, %v1574_v36  ;;  %v3542_v39 = vpop.f32.mrb[43].mxu0  ;;  %v1578_v54 = vmul.f32 0.5, %v1572_v34 }
 0xa62   :  { %v1582_v40 = vmul.f32 %v1580_v37, %v1572_v34  ;;  %v1581_v42 = vmul.f32 0.044715, %v1575_v38  ;;  %v1579_v55 = vmul.f32 0.5, %v1575_v38 }
 0xa64   :  { %v1584_v44 = vmul.f32 %v1582_v40, %v1572_v34  ;;  %v1583_v45 = vmul.f32 %v1581_v42, %v1575_v38 }
 0xa66   :  { %v1586_v46 = vadd.f32 %v1584_v44, %v1572_v34  ;;  %v1585_v47 = vmul.f32 %v1583_v45, %v1575_v38 }
 0xa68   :  { %v1588_v48 = vmul.f32 0.7978846, %v1586_v46  ;;  %v1587_v49 = vadd.f32 %v1585_v47, %v1575_v38 }
 0xa6a   :  { %3832 = vtanh.f32 %v1588_v48  ;;  %v1589_v50 = vmul.f32 0.7978846, %v1587_v49 }
 0xa6c   :  { %3834 = vtanh.f32 %v1589_v50 }
 0xa74   :  { %v3833_v51 = vpop.eup %3832 }
 0xa75   :  { %v1592_v52 = vadd.f32 1.0, %v3833_v51 }
 0xa76   :  { %v3835_v53 = vpop.eup %3834 }
 0xa77   :  { %v1593_v56 = vadd.f32 1.0, %v3835_v53  ;;  %v1594_v57 = vmul.f32 %v1592_v52, %v1578_v54 }
 0xa79   :  { %v1595_v59 = vmul.f32 %v1593_v56, %v1579_v55 }
 0xa7b   :  { %v1596_v60 = vpack.c.bf16 %v1595_v59, %v1594_v57 }
 0xa7d   :  { %3552 = vmatmul.mubr.msk.bf16.vlgmr.msra.gmra.mrb[40].mxu1 %vm1636_vm6, %v1596_v60 }
 0xa7e   :  { %3571 = vmatprep.mubr.msk.bf16.mxu1 %vm3907_vm0, %v3906_v2 }
 0xb50   :  { %v1674_v63 = vpop.f32.mrb[40].mxu1 }
 0xb51   :  { %v1675_v0 = vadd.f32 %v3199_v62, %v1674_v63  ;;  %v3553_v1 = vpop.f32.mrb[41].mxu1 }
 0xb52   :  { %v1677_v3 = vpop.f32.mrb[42].mxu1 }
 0xb53   :  { %v4423_v4 = vadd.f32 %v1675_v0, %v4367_v58  ;;  %v1678_v41 = vadd.f32 %v3199_v62, %v1677_v3  ;;  %v3554_v5 = vpop.f32.mrb[43].mxu1 }
 0xb55   :  { %v4426_v6 = vadd.f32 %v1678_v41, %v4370_v61  ;;  %v1687_v43 = vsel %vm362_vm1, %v4423_v4, 0.0 }
 0xb56   :  { %1688 = vadd.xlane.f32.xlu1 %v1687_v43 }
 0xb57   :  { %v1690_v7 = vsel %vm362_vm1, %v4426_v6, 0.0 }
 0xb58   :  { %1691 = vadd.xlane.f32.xlu0 %v1690_v7 }
 0xbe3   :  { %v1689_v8 = vpop.xlane.xlu1 %1688 }
 0xbe4   :  { %v1693_v9 = vmul.f32 0.03125, %v1689_v8 }
 0xbe5   :  { %v1692_v10 = vpop.xlane.xlu0 %1691 }
 0xbe6   :  { %v1695_v11 = vsub.f32 %v4423_v4, %v1693_v9  ;;  %v1694_v58 = vmul.f32 0.03125, %v1692_v10 }
 0xbe8   :  { %v1696_v12 = vsub.f32 %v4426_v6, %v1694_v58  ;;  %v1697_v17 = vmul.f32 %v1695_v11, %v1695_v11 }
 0xbea   :  { %v1699_v61 = vsel %vm362_vm1, %v1697_v17, 0.0  ;;  %v1698_v13 = vmul.f32 %v1696_v12, %v1696_v12 }
 0xbeb   :  { %1700 = vadd.xlane.f32.xlu1 %v1699_v61 }
 0xbec   :  { %v1702_v14 = vsel %vm362_vm1, %v1698_v13, 0.0 }
 0xbed   :  { %1703 = vadd.xlane.f32.xlu0 %v1702_v14 }
 0xc78   :  { %v1701_v18 = vpop.xlane.xlu1 %1700 }
 0xc79   :  { %v1705_v19 = vmul.f32 0.03125, %v1701_v18 }
 0xc7a   :  { %v1704_v21 = vpop.xlane.xlu0 %1703 }
 0xc7b   :  { %v1707_v22 = vadd.f32 1e-12, %v1705_v19  ;;  %v1706_v20 = vmul.f32 0.03125, %v1704_v21 }
 0xc7d   :  { %3836 = vrsqrt.f32 %v1707_v22  ;;  %v1708_v23 = vadd.f32 1e-12, %v1706_v20 }
 0xc7f   :  { %3838 = vrsqrt.f32 %v1708_v23 }
 0xc87   :  { %v3837_v24 = vpop.eup %3836 }
 0xc88   :  { %v1711_v26 = vmul.f32 %v3837_v24, %v1695_v11 }
 0xc89   :  { %v3839_v27 = vpop.eup %3838 }
 0xc8a   :  { %v1719_v28 = vmul.f32 %v3207_v25, %v1711_v26  ;;  %v1712_v29 = vmul.f32 %v3839_v27, %v1696_v12 }
 0xc8c   :  { %v1720_v31 = vmul.f32 %v3207_v25, %v1712_v29  ;;  %v1727_v32 = vadd.f32 %v3208_v30, %v1719_v28 }
 0xc8e   :  { %v1728_v33 = vadd.f32 %v3208_v30, %v1720_v31 }
 0xc90   :  { %v1729_v34 = vpack.c.bf16 %v1728_v33, %v1727_v32 }
 0xc92   :  { %3560 = vmatmul.mubr.msk.bf16.vlgmr.msra.gmra.mrb[44].mxu0 %vm362_vm1, %v1729_v34 }
 0xc93   :  { %3565 = vmatprep.mubr.msk.bf16.mxu0 %vm3907_vm0, %v3906_v2 }
 0xd65   :  { %v1792_v36 = vpop.f32.mrb[44].mxu0 }
 0xd66   :  { %v1793_v37 = vadd.f32 %v3214_v35, %v1792_v36  ;;  %v3561_v38 = vpop.f32.mrb[45].mxu0 }
 0xd67   :  { %v1795_v39 = vpop.f32.mrb[46].mxu0 }
 0xd68   :  { %v4456_v40 = vpack.c.bf16 %v1793_v37, %v1793_v37  ;;  %v3562_v42 = vpop.f32.mrb[47].mxu0  ;;  %v1796_v44 = vadd.f32 %v3214_v35, %v1795_v39 }
 0xd6a   :  { %1912 = vrot.lane.b32.xlu0 %v4456_v40, %s3908_s29  ;;  %1801 = vrot.lane.b32.xlu1 %v4456_v40, %s3909_s0  ;;  %v4466_v45 = vpack.c.bf16 %v1796_v44, %v1796_v44 }
 0xd6e   :  { %2134 = vrot.lane.b32.xlu0 %v4456_v40, %s3914_s2  ;;  %1910 = vrot.lane.b32.xlu1 %v4456_v40, %s3910_s30 }
 0xd72   :  { %2023 = vrot.lane.b32.xlu1 %v4456_v40, %s3912_s1  ;;  %2260 = vrot.lane.b32.xlu0 %v4466_v45, %s3909_s0  ;;  %s4796_s0 = smov 40  }
 0xd76   :  { %2021 = vrot.lane.b32.xlu1 %v4456_v40, %s3911_s21  ;;  %2369 = vrot.lane.b32.xlu0 %v4466_v45, %s3910_s30 }
 0xd7a   :  { %2132 = vrot.lane.b32.xlu1 %v4456_v40, %s4792_s4  ;;  %2480 = vrot.lane.b32.xlu0 %v4466_v45, %s3911_s21 }
 0xd7e   :  { %2371 = vrot.lane.b32.xlu1 %v4466_v45, %s3908_s29  ;;  %2591 = vrot.lane.b32.xlu0 %v4466_v45, %s4792_s4  ;;  %s4795_s29 = smov 48  }
 0xd82   :  { %2482 = vrot.lane.b32.xlu1 %v4466_v45, %s3912_s1  ;;  %s4797_s1 = smov 8  }
 0xd86   :  { %2593 = vrot.lane.b32.xlu1 %v4466_v45, %s3914_s2 }
 0xddc   :  { %v1802_v46 = vpop.permute.xlu1 %1801  ;;  %v1913_v48 = vpop.permute.xlu0 %1912 }
 0xddd   :  { %v1807_v47 = vsel %vm478_vm2, %v1802_v46, 0  ;;  %v1918_v50 = vsel %vm478_vm2, %v1913_v48, 0 }
 0xdde   :  { %3564 = vmatpush3.bf16.xpose.msra.mxu0 %v1807_v47 }
 0xddf   :  { %3575 = vmatprep.subr.bf16.mxu0 %v3906_v2 }
 0xde0   :  { %v1911_v49 = vpop.permute.xlu1 %1910  ;;  %v2135_v53 = vpop.permute.xlu0 %2134 }
 0xde1   :  { %v2140_v55 = vsel %vm478_vm2, %v2135_v53, 0 }
 0xde4   :  { %v2024_v51 = vpop.permute.xlu1 %2023  ;;  %v2261_v56 = vpop.permute.xlu0 %2260 }
 0xde5   :  { %3566 = vmatmul.mubr.msk.bf16.vlgmr.msra.gmra.mrb[48].mxu0 %vm478_vm2, %v4456_v40  ;;  %v2029_v52 = vsel %vm478_vm2, %v2024_v51, 0  ;;  %v2266_v59 = vsel %vm478_vm2, %v2261_v56, 0 }
 0xde6   :  { %3576 = vmatpush3.bf16.xpose.msra.mxu0 %v1918_v50  ;;  %3577 = vmatprep.mubr.msk.bf16.mxu0 %vm3907_vm0, %v3906_v2 }
 0xde7   :  { %3587 = vmatprep.subr.bf16.mxu0 %v3906_v2 }
 0xde8   :  { %v2022_v54 = vpop.permute.xlu1 %2021  ;;  %v2370_v0 = vpop.permute.xlu0 %2369 }
 0xdec   :  { %v2133_v57 = vpop.permute.xlu1 %2132  ;;  %v2481_v41 = vpop.permute.xlu0 %2480 }
 0xded   :  { %3578 = vmatmul.mubr.msk.bf16.vlgmr.msra.gmra.mrb[52].mxu0 %vm478_vm2, %v1911_v49 }
 0xdee   :  { %3588 = vmatpush3.bf16.xpose.msra.mxu0 %v2029_v52  ;;  %3589 = vmatprep.mubr.msk.bf16.mxu0 %vm3907_vm0, %v3906_v2 }
 0xdef   :  { %3599 = vmatprep.subr.bf16.mxu0 %v3906_v2 }
 0xdf0   :  { %v2372_v60 = vpop.permute.xlu1 %2371  ;;  %v2592_v43 = vpop.permute.xlu0 %2591 }
 0xdf1   :  { %v2377_v62 = vsel %vm478_vm2, %v2372_v60, 0 }
 0xdf4   :  { %v2483_v63 = vpop.permute.xlu1 %2482 }
 0xdf5   :  { %3590 = vmatmul.mubr.msk.bf16.vlgmr.msra.gmra.mrb[56].mxu0 %vm478_vm2, %v2022_v54  ;;  %v2488_v1 = vsel %vm478_vm2, %v2483_v63, 0 }
 0xdf6   :  { %3600 = vmatpush3.bf16.xpose.msra.mxu0 %v2140_v55  ;;  %3601 = vmatprep.mubr.msk.bf16.mxu0 %vm3907_vm0, %v3906_v2 }
 0xdf7   :  { %3611 = vmatprep.subr.bf16.mxu0 %v3906_v2 }
 0xdf8   :  { %v2594_v3 = vpop.permute.xlu1 %2593 }
 0xdf9   :  { %v2599_v5 = vsel %vm478_vm2, %v2594_v3, 0 }
 0xdfd   :  { %3602 = vmatmul.mubr.msk.bf16.vlgmr.msra.gmra.mrb[60].mxu0 %vm478_vm2, %v2133_v57 }
 0xdfe   :  { %3612 = vmatpush3.bf16.xpose.msra.mxu0 %v2266_v59  ;;  %3613 = vmatprep.mubr.msk.bf16.mxu0 %vm3907_vm0, %v3906_v2 }
 0xdff   :  { %3623 = vmatprep.subr.bf16.mxu0 %v3906_v2 }
 0xe05   :  { %3614 = vmatmul.mubr.msk.bf16.vlgmr.msra.gmra.mrb[64].mxu0 %vm478_vm2, %v4466_v45 }
 0xe06   :  { %3624 = vmatpush3.bf16.xpose.msra.mxu0 %v2377_v62  ;;  %3625 = vmatprep.mubr.msk.bf16.mxu0 %vm3907_vm0, %v3906_v2 }
 0xe07   :  { %3635 = vmatprep.subr.bf16.mxu0 %v3906_v2 }
 0xe0d   :  { %3626 = vmatmul.mubr.msk.bf16.vlgmr.msra.gmra.mrb[68].mxu0 %vm478_vm2, %v2370_v0 }
 0xe0e   :  { %3636 = vmatpush3.bf16.xpose.msra.mxu0 %v2488_v1  ;;  %3637 = vmatprep.mubr.msk.bf16.mxu0 %vm3907_vm0, %v3906_v2 }
 0xe0f   :  { %3647 = vmatprep.subr.bf16.mxu0 %v3906_v2 }
 0xe15   :  { %3638 = vmatmul.mubr.msk.bf16.vlgmr.msra.gmra.mrb[72].mxu0 %vm478_vm2, %v2481_v41 }
 0xe16   :  { %3648 = vmatpush3.bf16.xpose.msra.mxu0 %v2599_v5  ;;  %3649 = vmatprep.mubr.msk.bf16.mxu0 %vm3907_vm0, %v3906_v2 }
 0xe17   :  { %3659 = vmatprep.subr.bf16.mxu0 %v3906_v2 }
 0xe1d   :  { %3650 = vmatmul.mubr.msk.bf16.vlgmr.msra.gmra.mrb[76].mxu0 %vm478_vm2, %v2592_v43 }
 0xe1e   :  { %3663 = vmatprep.mubr.msk.bf16.mxu0 %vm3907_vm0, %v3906_v2 }
 0xeb8   :  { %v1843_v7 = vpop.f32.mrb[48].mxu0 }
 0xeb9   :  { %v1849_v8 = vmul.f32 0.35355338, %v1843_v7  ;;  %v3567_v9 = vpop.f32.mrb[49].mxu0 }
 0xeba   :  { %v1846_v10 = vpop.f32.mrb[50].mxu0 }
 0xebb   :  { %v3568_v11 = vpop.f32.mrb[51].mxu0  ;;  %v1850_v58 = vsel %vm478_vm2, %v1849_v8, -inf }
 0xebc   :  { %1851 = vmax.xlane.f32.xlu1 %v1850_v58 }
 0xec0   :  { %v1954_v12 = vpop.f32.mrb[52].mxu0 }
 0xec1   :  { %v1960_v17 = vmul.f32 0.35355338, %v1954_v12  ;;  %v3579_v61 = vpop.f32.mrb[53].mxu0 }
 0xec2   :  { %v1957_v13 = vpop.f32.mrb[54].mxu0 }
 0xec3   :  { %v3580_v14 = vpop.f32.mrb[55].mxu0  ;;  %v1961_v15 = vsel %vm478_vm2, %v1960_v17, -inf }
 0xec4   :  { %1962 = vmax.xlane.f32.xlu0 %v1961_v15 }
 0xec8   :  { %v2065_v16 = vpop.f32.mrb[56].mxu0 }
 0xec9   :  { %v2071_v18 = vmul.f32 0.35355338, %v2065_v16  ;;  %v3591_v19 = vpop.f32.mrb[57].mxu0 }
 0xeca   :  { %v2068_v21 = vpop.f32.mrb[58].mxu0 }
 0xecb   :  { %v3592_v22 = vpop.f32.mrb[59].mxu0  ;;  %v2072_v20 = vsel %vm478_vm2, %v2071_v18, -inf }
 0xecc   :  { %2073 = vmax.xlane.f32.xlu0 %v2072_v20 }
 0xed0   :  { %v2176_v23 = vpop.f32.mrb[60].mxu0 }
 0xed1   :  { %v4533_v24 = vmul.f32 0.35355338, %v2176_v23  ;;  %v3603_v25 = vpop.f32.mrb[61].mxu0 }
 0xed2   :  { %v2179_v26 = vpop.f32.mrb[62].mxu0 }
 0xed3   :  { %v3604_v27 = vpop.f32.mrb[63].mxu0  ;;  %v2183_v28 = vsel %vm478_vm2, %v4533_v24, -inf }
 0xed4   :  { %2184 = vmax.xlane.f32.xlu0 %v2183_v28 }
 0xed8   :  { %v2302_v29 = vpop.f32.mrb[64].mxu0 }
 0xed9   :  { %v4537_v30 = vmul.f32 0.35355338, %v2302_v29  ;;  %v3615_v31 = vpop.f32.mrb[65].mxu0 }
 0xeda   :  { %v2305_v32 = vpop.f32.mrb[66].mxu0 }
 0xedb   :  { %v3616_v33 = vpop.f32.mrb[67].mxu0  ;;  %v2309_v34 = vsel %vm478_vm2, %v4537_v30, -inf }
 0xedc   :  { %2310 = vmax.xlane.f32.xlu1 %v2309_v34 }
 0xee0   :  { %v2413_v35 = vpop.f32.mrb[68].mxu0 }
 0xee1   :  { %v2419_v36 = vmul.f32 0.35355338, %v2413_v35  ;;  %v3627_v37 = vpop.f32.mrb[69].mxu0 }
 0xee2   :  { %v2416_v38 = vpop.f32.mrb[70].mxu0 }
 0xee3   :  { %v3628_v39 = vpop.f32.mrb[71].mxu0  ;;  %v2420_v42 = vsel %vm478_vm2, %v2419_v36, -inf }
 0xee4   :  { %2421 = vmax.xlane.f32.xlu0 %v2420_v42 }
 0xee8   :  { %v2524_v44 = vpop.f32.mrb[72].mxu0 }
 0xee9   :  { %v2530_v46 = vmul.f32 0.35355338, %v2524_v44  ;;  %v3639_v47 = vpop.f32.mrb[73].mxu0 }
 0xeea   :  { %v2527_v48 = vpop.f32.mrb[74].mxu0 }
 0xeeb   :  { %v3640_v49 = vpop.f32.mrb[75].mxu0  ;;  %v2531_v50 = vsel %vm478_vm2, %v2530_v46, -inf }
 0xeec   :  { %2532 = vmax.xlane.f32.xlu1 %v2531_v50 }
 0xef0   :  { %v2635_v51 = vpop.f32.mrb[76].mxu0 }
 0xef1   :  { %v3651_v52 = vpop.f32.mrb[77].mxu0  ;;  %v2641_v55 = vmul.f32 0.35355338, %v2635_v51 }
 0xef2   :  { %v2638_v53 = vpop.f32.mrb[78].mxu0 }
 0xef3   :  { %v3652_v54 = vpop.f32.mrb[79].mxu0  ;;  %v2642_v56 = vsel %vm478_vm2, %v2641_v55, -inf }
 0xefa   :  { %1973 = vrot.lane.b32.xlu0 %v4456_v40, %s4793_s6 }
 0xefd   :  { %1862 = vrot.lane.b32.xlu1 %v4456_v40, %s4794_s3 }
 0xf19   :  { %2643 = vmax.xlane.f32.xlu0 %v2642_v56 }
 0xf49   :  { %v1852_v57 = vpop.xlane.xlu1 %1851 }
 0xf4a   :  { %v1853_v59 = vsub.f32 %v1849_v8, %v1852_v57 }
 0xf4c   :  { %v1854_v60 = vmul.f32 1.442695, %v1853_v59 }
 0xf4e   :  { %3840 = vpow2.f32 %v1854_v60 }
 0xf51   :  { %v1963_v62 = vpop.xlane.xlu0 %1962 }
 0xf52   :  { %v1964_v63 = vsub.f32 %v1960_v17, %v1963_v62 }
 0xf54   :  { %v1965_v0 = vmul.f32 1.442695, %v1964_v63 }
 0xf56   :  { %3842 = vpow2.f32 %v1965_v0 }
 0xf58   :  { %v4548_v1 = vpop.eup %3840 }
 0xf59   :  { %v2074_v3 = vpop.xlane.xlu0 %2073  ;;  %v1856_v41 = vsel %vm478_vm2, %v4548_v1, 0.0 }
 0xf5a   :  { %v2075_v5 = vsub.f32 %v2071_v18, %v2074_v3  ;;  %1857 = vadd.xlane.f32.xlu1 %v1856_v41 }
 0xf5c   :  { %v2076_v43 = vmul.f32 1.442695, %v2075_v5 }
 0xf5e   :  { %3844 = vpow2.f32 %v2076_v43 }
 0xf60   :  { %v4552_v7 = vpop.eup %3842 }
 0xf61   :  { %v1967_v8 = vsel %vm478_vm2, %v4552_v7, 0.0  ;;  %v2185_v17 = vpop.xlane.xlu0 %2184 }
 0xf62   :  { %1968 = vadd.xlane.f32.xlu0 %v1967_v8  ;;  %v2186_v13 = vsub.f32 %v4533_v24, %v2185_v17 }
 0xf64   :  { %v2187_v14 = vmul.f32 1.442695, %v2186_v13 }
 0xf66   :  { %3846 = vpow2.f32 %v2187_v14 }
 0xf68   :  { %v4556_v9 = vpop.eup %3844 }
 0xf69   :  { %v2078_v10 = vsel %vm478_vm2, %v4556_v9, 0.0  ;;  %v2311_v11 = vpop.xlane.xlu1 %2310 }
 0xf6a   :  { %2079 = vadd.xlane.f32.xlu1 %v2078_v10  ;;  %v2312_v15 = vsub.f32 %v4537_v30, %v2311_v11 }
 0xf6c   :  { %v2313_v19 = vmul.f32 1.442695, %v2312_v15 }
 0xf6e   :  { %3848 = vpow2.f32 %v2313_v19 }
 0xf70   :  { %v3847_v20 = vpop.eup %3846 }
 0xf71   :  { %v2422_v16 = vpop.xlane.xlu0 %2421  ;;  %v2189_v23 = vsel %vm478_vm2, %v3847_v20, 0.0 }
 0xf72   :  { %v2423_v18 = vsub.f32 %v2419_v36, %v2422_v16 }
 0xf74   :  { %v2424_v22 = vmul.f32 1.442695, %v2423_v18 }
 0xf75   :  { %v1974_v30 = vpop.permute.xlu0 %1973 }
 0xf76   :  { %3850 = vpow2.f32 %v2424_v22  ;;  %v1979_v44 = vsel %vm543_vm3, %v1974_v30, 0 }
 0xf78   :  { %2084 = vrot.lane.b32.xlu0 %v4456_v40, %s4795_s29  ;;  %v4569_v25 = vpop.eup %3848 }
 0xf79   :  { %v2533_v58 = vpop.xlane.xlu1 %2532  ;;  %v2315_v26 = vsel %vm478_vm2, %v4569_v25, 0.0 }
 0xf7a   :  { %v2534_v21 = vsub.f32 %v2530_v46, %v2533_v58 }
 0xf7b   :  { %2195 = vrot.lane.b32.xlu1 %v4456_v40, %s4796_s0 }
 0xf7c   :  { %v2535_v40 = vmul.f32 1.442695, %v2534_v21 }
 0xf7d   :  { %v1863_v12 = vpop.permute.xlu1 %1862 }
 0xf7e   :  { %v1868_v61 = vsel %vm543_vm3, %v1863_v12, 0  ;;  %3852 = vpow2.f32 %v2535_v40 }
 0xf7f   :  { %3570 = vmatpush3.bf16.msra.mxu1 %v1868_v61 }
 0xf80   :  { %3581 = vmatprep.subr.bf16.mxu1 %v3906_v2  ;;  %v4571_v24 = vpop.eup %3850 }
 0xf81   :  { %v2426_v28 = vsel %vm478_vm2, %v4571_v24, 0.0 }
 0xf88   :  { %v4575_v27 = vpop.eup %3852 }
 0xf89   :  { %v2537_v29 = vsel %vm478_vm2, %v4575_v27, 0.0 }
 0xf97   :  { %2190 = vadd.xlane.f32.xlu0 %v2189_v23 }
 0xf9b   :  { %2316 = vadd.xlane.f32.xlu0 %v2315_v26 }
 0xf9f   :  { %2427 = vadd.xlane.f32.xlu1 %v2426_v28  ;;  %2538 = vadd.xlane.f32.xlu0 %v2537_v29 }
 0xfa6   :  { %v2644_v31 = vpop.xlane.xlu0 %2643 }
 0xfa7   :  { %v2645_v32 = vsub.f32 %v2641_v55, %v2644_v31 }
 0xfa9   :  { %v2646_v33 = vmul.f32 1.442695, %v2645_v32 }
 0xfab   :  { %3854 = vpow2.f32 %v2646_v33 }
 0xfb0   :  { %2432 = vrot.lane.b32.xlu1 %v4466_v45, %s4793_s6 }
 0xfb4   :  { %2543 = vrot.lane.b32.xlu1 %v4466_v45, %s4795_s29 }
 0xfb5   :  { %v4585_v34 = vpop.eup %3854 }
 0xfb6   :  { %v2648_v35 = vsel %vm478_vm2, %v4585_v34, 0.0 }
 0xfb7   :  { %2649 = vadd.xlane.f32.xlu0 %v2648_v35 }
 0xfb8   :  { %2654 = vrot.lane.b32.xlu1 %v4466_v45, %s4796_s0 }
 0xfcd   :  { %2321 = vrot.lane.b32.xlu0 %v4466_v45, %s4794_s3 }
 0xfe7   :  { %v1858_v36 = vpop.xlane.xlu1 %1857 }
 0xfe8   :  { %3856 = vrcp.f32 %v1858_v36 }
 0xfef   :  { %v1969_v37 = vpop.xlane.xlu0 %1968 }
 0xff0   :  { %3858 = vrcp.f32 %v1969_v37 }
 0xff2   :  { %v3857_v38 = vpop.eup %3856 }
 0xff3   :  { %v1860_v39 = vmul.f32 %v3857_v38, %v4548_v1  ;;  %v2085_v48 = vpop.permute.xlu0 %2084 }
 0xff4   :  { %v2090_v50 = vsel %vm543_vm3, %v2085_v48, 0 }
 0xff5   :  { %v1861_v42 = vpack.c.bf16 %v1860_v39, %v1860_v39 }
 0xff7   :  { %3572 = vmatmul.mubr.msk.bf16.vlgmr.msra.gmra.mrb[44].mxu1 %vm478_vm2, %v1861_v42  ;;  %v2080_v46 = vpop.xlane.xlu1 %2079 }
 0xff8   :  { %3582 = vmatpush3.bf16.msra.mxu1 %v1979_v44  ;;  %3860 = vrcp.f32 %v2080_v46  ;;  %3583 = vmatprep.mubr.msk.bf16.mxu1 %vm3907_vm0, %v3906_v2  ;;  %v3782_v44 = vld [vmem:[%s4754_s7 + $0x10] sm:$0xff]  }
 0xff9   :  { %3593 = vmatprep.subr.bf16.mxu1 %v3906_v2  ;;  %3660 = vmatpush3.bf16.msra.mxu0 %v3782_v44  ;;  %v3245_v44 = vld [vmem:[%s4756_s9 + $0x1] ss:$0 sm:$0xff] }
 0xffa   :  { %v3859_v45 = vpop.eup %3858  ;;  %3661 = vmatprep.subr.bf16.mxu0 %v3906_v2 }
 0xffb   :  { %v1971_v47 = vmul.f32 %v3859_v45, %v4552_v7  ;;  %v2196_v53 = vpop.permute.xlu1 %2195 }
 0xffc   :  { %v2201_v55 = vsel %vm543_vm3, %v2196_v53, 0 }
 0xffd   :  { %v1972_v49 = vpack.c.bf16 %v1971_v47, %v1971_v47 }
 0xfff   :  { %3584 = vmatmul.mubr.msk.bf16.vlgmr.msra.gmra.mrb[48].mxu1 %vm478_vm2, %v1972_v49  ;;  %v3783_v49 = vld [vmem:[%s4754_s7 + $0x18] sm:$0xff]  }
0x1000   :  { %3594 = vmatpush3.bf16.msra.mxu1 %v2090_v50  ;;  %3595 = vmatprep.mubr.msk.bf16.mxu1 %vm3907_vm0, %v3906_v2 }
0x1001   :  { %3605 = vmatprep.subr.bf16.mxu1 %v3906_v2  ;;  %3662 = vmatpush3.bf16.msra.mxu0 %v3783_v49 }
0x1002   :  { %v3861_v51 = vpop.eup %3860  ;;  %3675 = vmatprep.subr.bf16.mxu0 %v3906_v2 }
0x1003   :  { %v2082_v52 = vmul.f32 %v3861_v51, %v4556_v9 }
0x1005   :  { %v2083_v54 = vpack.c.bf16 %v2082_v52, %v2082_v52 }
0x1007   :  { %3596 = vmatmul.mubr.msk.bf16.vlgmr.msra.gmra.mrb[52].mxu1 %vm478_vm2, %v2083_v54 }
0x1008   :  { %3606 = vmatpush3.bf16.msra.mxu1 %v2201_v55  ;;  %3607 = vmatprep.mubr.msk.bf16.mxu1 %vm3907_vm0, %v3906_v2 }
0x1009   :  { %3617 = vmatprep.subr.bf16.mxu1 %v3906_v2 }
0x1024   :  { %v2191_v56 = vpop.xlane.xlu0 %2190 }
0x1025   :  { %3862 = vrcp.f32 %v2191_v56 }
0x1028   :  { %v2317_v62 = vpop.xlane.xlu0 %2316 }
0x1029   :  { %3864 = vrcp.f32 %v2317_v62 }
0x102c   :  { %v2428_v63 = vpop.xlane.xlu1 %2427  ;;  %v2539_v0 = vpop.xlane.xlu0 %2538 }
0x102d   :  { %3866 = vrcp.f32 %v2428_v63 }
0x102e   :  { %3868 = vrcp.f32 %v2539_v0 }
0x102f   :  { %v3863_v57 = vpop.eup %3862 }
0x1030   :  { %v2193_v59 = vmul.f32 %v3863_v57, %v3847_v20  ;;  %v2433_v7 = vpop.permute.xlu1 %2432 }
0x1031   :  { %v2438_v10 = vsel %vm543_vm3, %v2433_v7, 0 }
0x1032   :  { %v2194_v60 = vpack.c.bf16 %v2193_v59, %v2193_v59 }
0x1033   :  { %v3865_v1 = vpop.eup %3864 }
0x1034   :  { %3608 = vmatmul.mubr.msk.bf16.vlgmr.msra.gmra.mrb[56].mxu1 %vm478_vm2, %v2194_v60  ;;  %v2319_v41 = vmul.f32 %v3865_v1, %v4569_v25  ;;  %v2544_v58 = vpop.permute.xlu1 %2543 }
0x1035   :  { %3619 = vmatprep.mubr.msk.bf16.mxu1 %vm3907_vm0, %v3906_v2  ;;  %v2549_v61 = vsel %vm543_vm3, %v2544_v58, 0 }
0x1036   :  { %v2320_v8 = vpack.c.bf16 %v2319_v41, %v2319_v41 }
0x1037   :  { %v3867_v9 = vpop.eup %3866 }
0x1038   :  { %v2430_v11 = vmul.f32 %v3867_v9, %v4571_v24  ;;  %v3869_v17 = vpop.eup %3868  ;;  %v2655_v14 = vpop.permute.xlu1 %2654 }
0x1039   :  { %v2541_v13 = vmul.f32 %v3869_v17, %v4575_v27  ;;  %v2660_v18 = vsel %vm543_vm3, %v2655_v14, 0 }
0x103a   :  { %v2431_v12 = vpack.c.bf16 %v2430_v11, %v2430_v11 }
0x103b   :  { %v2542_v15 = vpack.c.bf16 %v2541_v13, %v2541_v13 }
0x1044   :  { %v2650_v3 = vpop.xlane.xlu0 %2649 }
0x1045   :  { %3870 = vrcp.f32 %v2650_v3 }
0x1048   :  { %v2322_v5 = vpop.permute.xlu0 %2321 }
0x1049   :  { %v2327_v43 = vsel %vm543_vm3, %v2322_v5, 0 }
0x104a   :  { %3618 = vmatpush3.bf16.msra.mxu1 %v2327_v43 }
0x104b   :  { %3629 = vmatprep.subr.bf16.mxu1 %v3906_v2 }
0x104d   :  { %3620 = vmatmul.mubr.msk.bf16.vlgmr.msra.gmra.mrb[60].mxu1 %vm478_vm2, %v2320_v8 }
0x104e   :  { %3630 = vmatpush3.bf16.msra.mxu1 %v2438_v10  ;;  %3631 = vmatprep.mubr.msk.bf16.mxu1 %vm3907_vm0, %v3906_v2 }
0x104f   :  { %3641 = vmatprep.subr.bf16.mxu1 %v3906_v2  ;;  %v3871_v16 = vpop.eup %3870 }
0x1050   :  { %v2652_v19 = vmul.f32 %v3871_v16, %v4585_v34 }
0x1052   :  { %v2653_v21 = vpack.c.bf16 %v2652_v19, %v2652_v19 }
0x1055   :  { %3632 = vmatmul.mubr.msk.bf16.vlgmr.msra.gmra.mrb[64].mxu1 %vm478_vm2, %v2431_v12 }
0x1056   :  { %3642 = vmatpush3.bf16.msra.mxu1 %v2549_v61  ;;  %3643 = vmatprep.mubr.msk.bf16.mxu1 %vm3907_vm0, %v3906_v2  ;;  %v3239_v61 = vld [vmem:[%s4755_s8 + $0x1] ss:$0 sm:$0xff] }
0x1057   :  { %3653 = vmatprep.subr.bf16.mxu1 %v3906_v2 }
0x105d   :  { %3644 = vmatmul.mubr.msk.bf16.vlgmr.msra.gmra.mrb[68].mxu1 %vm478_vm2, %v2542_v15 }
0x105e   :  { %3654 = vmatpush3.bf16.msra.mxu1 %v2660_v18  ;;  %3655 = vmatprep.mubr.msk.bf16.mxu1 %vm3907_vm0, %v3906_v2 }
0x105f   :  { %3667 = vmatprep.subr.bf16.mxu1 %v3906_v2 }
0x1065   :  { %3656 = vmatmul.mubr.msk.bf16.vlgmr.msra.gmra.mrb[72].mxu1 %vm478_vm2, %v2653_v21 }
0x1066   :  { %3671 = vmatprep.mubr.msk.bf16.mxu1 %vm3907_vm0, %v3906_v2 }
0x10ca   :  { %v1904_v22 = vpop.f32.mrb[44].mxu1 }
0x10cb   :  { %v3573_v40 = vpop.f32.mrb[45].mxu1 }
0x10cc   :  { %v1907_v20 = vpop.f32.mrb[46].mxu1 }
0x10cd   :  { %v3574_v23 = vpop.f32.mrb[47].mxu1 }
0x10d2   :  { %v2015_v25 = vpop.f32.mrb[48].mxu1 }
0x10d3   :  { %v3585_v24 = vpop.f32.mrb[49].mxu1 }
0x10d4   :  { %v2018_v26 = vpop.f32.mrb[50].mxu1 }
0x10d5   :  { %v3586_v27 = vpop.f32.mrb[51].mxu1 }
0x10da   :  { %v2126_v28 = vpop.f32.mrb[52].mxu1 }
0x10db   :  { %v3597_v29 = vpop.f32.mrb[53].mxu1 }
0x10dc   :  { %v2129_v30 = vpop.f32.mrb[54].mxu1 }
0x10dd   :  { %v3598_v31 = vpop.f32.mrb[55].mxu1 }
0x10de   :  { %v3784_v31 = vld [vmem:[%s4758_s11 + $0x10] sm:$0xff]  }
0x10df   :  { %3668 = vmatpush3.bf16.msra.mxu1 %v3784_v31 }
0x10e0   :  { %3669 = vmatprep.subr.bf16.mxu1 %v3906_v2 }
0x1107   :  { %v2237_v32 = vpop.f32.mrb[56].mxu1 }
0x1108   :  { %v3609_v33 = vpop.f32.mrb[57].mxu1 }
0x1109   :  { %v2240_v34 = vpop.f32.mrb[58].mxu1 }
0x110a   :  { %v3610_v35 = vpop.f32.mrb[59].mxu1 }
0x1120   :  { %v2363_v36 = vpop.f32.mrb[60].mxu1 }
0x1121   :  { %v3621_v37 = vpop.f32.mrb[61].mxu1 }
0x1122   :  { %v2366_v38 = vpop.f32.mrb[62].mxu1 }
0x1123   :  { %v3622_v39 = vpop.f32.mrb[63].mxu1 }
0x1128   :  { %v2474_v42 = vpop.f32.mrb[64].mxu1 }
0x1129   :  { %v3727_v46 = vpack.i.bf16 %v2474_v42, %v2015_v25  ;;  %v3633_v45 = vpop.f32.mrb[65].mxu1 }
0x112a   :  { %v2477_v47 = vpop.f32.mrb[66].mxu1 }
0x112b   :  { %3728 = vrot.lane.b32.xlu1 %v3727_v46, %s4797_s1  ;;  %v3634_v48 = vpop.f32.mrb[67].mxu1 }
0x112c   :  { %v3246_v48 = vld [vmem:[%s4757_s10 + $0x1] ss:$0 sm:$0xff] }
0x1130   :  { %v2585_v50 = vpop.f32.mrb[68].mxu1 }
0x1131   :  { %v3732_v51 = vpack.i.bf16 %v2585_v50, %v2126_v28  ;;  %v3645_v52 = vpop.f32.mrb[69].mxu1 }
0x1132   :  { %v2588_v53 = vpop.f32.mrb[70].mxu1 }
0x1133   :  { %3733 = vrot.lane.b32.xlu1 %v3732_v51, %s4798_s28  ;;  %v3646_v54 = vpop.f32.mrb[71].mxu1  ;;  %v3786_v53 = vld [vmem:[%s4760_s13 + $0x20] sm:$0xff]  }
0x1134   :  { %v3787_v54 = vld [vmem:[%s4760_s13 + $0x28] sm:$0xff]  }
0x1138   :  { %v2696_v55 = vpop.f32.mrb[72].mxu1 }
0x1139   :  { %v3737_v56 = vpack.i.bf16 %v2696_v55, %v2237_v32  ;;  %v3657_v57 = vpop.f32.mrb[73].mxu1  ;;  %v3785_v32 = vld [vmem:[%s4758_s11 + $0x18] sm:$0xff]   ;;  %v3788_v55 = vld [vmem:[%s4760_s13 + $0x30] sm:$0xff]  }
0x113a   :  { %v2699_v59 = vpop.f32.mrb[74].mxu1  ;;  %3670 = vmatpush3.bf16.msra.mxu1 %v3785_v32  ;;  %v3252_v57 = vld [vmem:[%s4759_s12 + $0x1] ss:$0 sm:$0xff] }
0x113b   :  { %3738 = vrot.lane.b32.xlu1 %v3737_v56, %s4799_s25  ;;  %v3658_v60 = vpop.f32.mrb[75].mxu1  ;;  %3687 = vmatprep.subr.bf16.mxu1 %v3906_v2  ;;  %v3789_v56 = vld [vmem:[%s4760_s13 + $0x38] sm:$0xff]  }
0x119d   :  { %v3729_v62 = vpop.permute.xlu1 %3728 }
0x119e   :  { %v3731_v0 = vunpack.i.h.bf16 %v3729_v62  ;;  %v3730_v1 = vunpack.i.l.bf16 %v3729_v62 }
0x11a0   :  { %v2714_v43 = vsel %vm478_vm2, %v2363_v36, %v3731_v0  ;;  %v2255_v7 = vsel %vm478_vm2, %v1904_v22, %v3730_v1 }
0x11a5   :  { %v3734_v63 = vpop.permute.xlu1 %3733 }
0x11a6   :  { %v3736_v3 = vunpack.i.h.bf16 %v3734_v63  ;;  %v3735_v41 = vunpack.i.l.bf16 %v3734_v63 }
0x11a8   :  { %v2715_v10 = vsel %vm933_vm4, %v2714_v43, %v3736_v3  ;;  %v2256_v11 = vsel %vm933_vm4, %v2255_v7, %v3735_v41 }
0x11ad   :  { %v3739_v5 = vpop.permute.xlu1 %3738 }
0x11ae   :  { %v3741_v8 = vunpack.i.h.bf16 %v3739_v5  ;;  %v3740_v9 = vunpack.i.l.bf16 %v3739_v5 }
0x11b0   :  { %v2716_v58 = vsel %vm935_vm5, %v2715_v10, %v3741_v8  ;;  %v2257_v12 = vsel %vm935_vm5, %v2256_v11, %v3740_v9 }
0x11b1   :  { %v2717_v17 = vpack.c.bf16 %v2716_v58, %v2257_v12 }
0x11b3   :  { %3664 = vmatmul.mubr.msk.bf16.vlgmr.msra.gmra.mrb[80].mxu0 %vm362_vm1, %v2717_v17 }
0x11b4   :  { %3683 = vmatprep.mubr.msk.bf16.mxu0 %vm3907_vm0, %v3906_v2  ;;  %3676 = vmatpush3.bf16.msra.mxu0 %v3786_v53 }
0x11b5   :  { %3677 = vmatprep.subr.bf16.mxu0 %v3906_v2 }
0x11b8   :  { %3678 = vmatpush3.bf16.msra.mxu0 %v3787_v54 }
0x11b9   :  { %3679 = vmatprep.subr.bf16.mxu0 %v3906_v2 }
0x11bc   :  { %3680 = vmatpush3.bf16.msra.mxu0 %v3788_v55 }
0x11bd   :  { %3681 = vmatprep.subr.bf16.mxu0 %v3906_v2 }
0x11c0   :  { %3682 = vmatpush3.bf16.msra.mxu0 %v3789_v56 }
0x1286   :  { %v2780_v13 = vpop.f32.mrb[80].mxu0 }
0x1287   :  { %v2781_v14 = vadd.f32 %v3239_v61, %v2780_v13  ;;  %v3665_v15 = vpop.f32.mrb[81].mxu0 }
0x1288   :  { %v2783_v16 = vpop.f32.mrb[82].mxu0 }
0x1289   :  { %v4662_v18 = vadd.f32 %v2781_v14, %v4423_v4  ;;  %v2784_v19 = vadd.f32 %v3239_v61, %v2783_v16  ;;  %v3666_v21 = vpop.f32.mrb[83].mxu0 }
0x128b   :  { %v4665_v22 = vadd.f32 %v2784_v19, %v4426_v6  ;;  %v2793_v40 = vsel %vm362_vm1, %v4662_v18, 0.0 }
0x128c   :  { %2794 = vadd.xlane.f32.xlu0 %v2793_v40  ;;  %v3265_v40 = vld [vmem:[%s4761_s14 + $0x1] ss:$0 sm:$0xff] }
0x128d   :  { %v2796_v20 = vsel %vm362_vm1, %v4665_v22, 0.0 }
0x128e   :  { %2797 = vadd.xlane.f32.xlu1 %v2796_v20 }
0x1319   :  { %v2795_v23 = vpop.xlane.xlu0 %2794 }
0x131a   :  { %v2799_v25 = vmul.f32 0.03125, %v2795_v23 }
0x131b   :  { %v2798_v24 = vpop.xlane.xlu1 %2797 }
0x131c   :  { %v2801_v26 = vsub.f32 %v4662_v18, %v2799_v25  ;;  %v2800_v4 = vmul.f32 0.03125, %v2798_v24 }
0x131e   :  { %v2802_v27 = vsub.f32 %v4665_v22, %v2800_v4  ;;  %v2803_v28 = vmul.f32 %v2801_v26, %v2801_v26 }
0x1320   :  { %v2805_v6 = vsel %vm362_vm1, %v2803_v28, 0.0  ;;  %v2804_v29 = vmul.f32 %v2802_v27, %v2802_v27 }
0x1321   :  { %2806 = vadd.xlane.f32.xlu0 %v2805_v6 }
0x1322   :  { %v2808_v30 = vsel %vm362_vm1, %v2804_v29, 0.0 }
0x1325   :  { %2809 = vadd.xlane.f32.xlu0 %v2808_v30 }
0x13ae   :  { %v2807_v33 = vpop.xlane.xlu0 %2806 }
0x13af   :  { %v2811_v34 = vmul.f32 0.03125, %v2807_v33 }
0x13b1   :  { %v2813_v35 = vadd.f32 1e-12, %v2811_v34 }
0x13b2   :  { %v2810_v36 = vpop.xlane.xlu0 %2809 }
0x13b3   :  { %3872 = vrsqrt.f32 %v2813_v35  ;;  %v2812_v37 = vmul.f32 0.03125, %v2810_v36 }
0x13b5   :  { %v2814_v38 = vadd.f32 1e-12, %v2812_v37 }
0x13b7   :  { %3874 = vrsqrt.f32 %v2814_v38 }
0x13bd   :  { %v3873_v39 = vpop.eup %3872 }
0x13be   :  { %v2817_v42 = vmul.f32 %v3873_v39, %v2801_v26 }
0x13c0   :  { %v2825_v45 = vmul.f32 %v3245_v44, %v2817_v42 }
0x13c1   :  { %v3875_v46 = vpop.eup %3874 }
0x13c2   :  { %v2818_v47 = vmul.f32 %v3875_v46, %v2802_v27  ;;  %v2833_v50 = vadd.f32 %v3246_v48, %v2825_v45 }
0x13c4   :  { %v2826_v49 = vmul.f32 %v3245_v44, %v2818_v47 }
0x13c6   :  { %v2834_v51 = vadd.f32 %v3246_v48, %v2826_v49 }
0x13c8   :  { %v2835_v52 = vpack.c.bf16 %v2834_v51, %v2833_v50  ;;  %v3790_v51 = vld [vmem:[%s4764_s17] sm:$0xff]  }
0x13ca   :  { %3672 = vmatmul.mubr.msk.bf16.vlgmr.msra.gmra.mrb[76].mxu1 %vm362_vm1, %v2835_v52  ;;  %v3791_v52 = vld [vmem:[%s4764_s17 + $0x8] sm:$0xff]  }
0x13cb   :  { %3691 = vmatprep.mubr.msk.bf16.mxu1 %vm3907_vm0, %v3906_v2  ;;  %3688 = vmatpush3.bf16.msra.mxu1 %v3790_v51 }
0x13cc   :  { %3689 = vmatprep.subr.bf16.mxu1 %v3906_v2  ;;  %v3273_v2 = vld [vmem:[%s4765_s18] ss:$0 sm:$0xff] }
0x13cf   :  { %3690 = vmatpush3.bf16.msra.mxu1 %v3791_v52 }
0x149d   :  { %v2898_v59 = vpop.f32.mrb[76].mxu1 }
0x149e   :  { %v2899_v60 = vadd.f32 %v3252_v57, %v2898_v59  ;;  %v3673_v62 = vpop.f32.mrb[77].mxu1 }
0x149f   :  { %v2901_v63 = vpop.f32.mrb[78].mxu1 }
0x14a0   :  { %v2907_v0 = vmul.f32 0.044715, %v2899_v60  ;;  %v2902_v1 = vadd.f32 %v3252_v57, %v2901_v63  ;;  %v3674_v3 = vpop.f32.mrb[79].mxu1  ;;  %v2905_v13 = vmul.f32 0.5, %v2899_v60  ;;  %v3271_v57 = vld [vmem:[%s4762_s15] ss:$0 sm:$0xff] }
0x14a1   :  { %s3882_s15 = scalar_lea.vmem %s3133_s23, 32 }
0x14a2   :  { %v2909_v41 = vmul.f32 %v2907_v0, %v2899_v60  ;;  %v2908_v5 = vmul.f32 0.044715, %v2902_v1  ;;  %v2906_v14 = vmul.f32 0.5, %v2902_v1  ;;  %p3883_p0 = scmp.ne.s32.totalorder %s3133_s23, %s3882_s15  ;;  %p3888_p2 = scmp.lt.s32.totalorder %s3882_s15, %s3882_s15 }
0x14a4   :  { %v2911_v43 = vmul.f32 %v2909_v41, %v2899_v60  ;;  %v2910_v7 = vmul.f32 %v2908_v5, %v2902_v1  ;;  %p3889_p3 = por %p3888_p2, %p3887_p1 }
0x14a6   :  { %v2913_v8 = vadd.f32 %v2911_v43, %v2899_v60  ;;  %v2912_v9 = vmul.f32 %v2910_v7, %v2902_v1  ;;  %v3272_v60 = vld [vmem:[%s4763_s16] ss:$0 sm:$0xff]  ;;  %p3890_p4 = pnand %p3889_p3, %p3883_p0 }
0x14a8   :  { %v2915_v10 = vmul.f32 0.7978846, %v2913_v8  ;;  %v2914_v11 = vadd.f32 %v2912_v9, %v2902_v1 }
0x14aa   :  { %3876 = vtanh.f32 %v2915_v10  ;;  %v2916_v58 = vmul.f32 0.7978846, %v2914_v11 }
0x14ac   :  { %3878 = vtanh.f32 %v2916_v58 }
0x14b4   :  { %v3877_v12 = vpop.eup %3876 }
0x14b5   :  { %v2919_v17 = vadd.f32 1.0, %v3877_v12 }
0x14b6   :  { %v3879_v61 = vpop.eup %3878 }
0x14b7   :  { %v2920_v15 = vadd.f32 1.0, %v3879_v61  ;;  %v2921_v16 = vmul.f32 %v2919_v17, %v2905_v13 }
0x14b9   :  { %v2922_v19 = vmul.f32 %v2920_v15, %v2906_v14 }
0x14bb   :  { %v2923_v21 = vpack.c.bf16 %v2922_v19, %v2921_v16 }
0x14bd   :  { %3684 = vmatmul.mubr.msk.bf16.vlgmr.msra.gmra.mrb[84].mxu0 %vm1636_vm6, %v2923_v21 }
0x1590   :  { %v3002_v20 = vpop.f32.mrb[84].mxu0 }
0x1591   :  { %v3003_v23 = vadd.f32 %v3265_v40, %v3002_v20  ;;  %v3685_v25 = vpop.f32.mrb[85].mxu0 }
0x1592   :  { %v3005_v24 = vpop.f32.mrb[86].mxu0 }
0x1593   :  { %v3009_v26 = vadd.f32 %v3003_v23, %v4662_v18  ;;  %v3006_v4 = vadd.f32 %v3265_v40, %v3005_v24  ;;  %v3686_v27 = vpop.f32.mrb[87].mxu0 }
0x1595   :  { %v3011_v28 = vsel %vm362_vm1, %v3009_v26, 0.0  ;;  %v3010_v6 = vadd.f32 %v3006_v4, %v4665_v22 }
0x1596   :  { %v3012_v29 = vrot.slane %v3011_v28, 4 }
0x1597   :  { %v3018_v30 = vsel %vm362_vm1, %v3010_v6, 0.0 }
0x1598   :  { %v3013_v31 = vadd.f32 %v3012_v29, %v3011_v28  ;;  %v3019_v32 = vrot.slane %v3018_v30, 4 }
0x159a   :  { %v3014_v33 = vrot.slane %v3013_v31, 2  ;;  %v3020_v34 = vadd.f32 %v3019_v32, %v3018_v30 }
0x159c   :  { %v3015_v35 = vadd.f32 %v3014_v33, %v3013_v31  ;;  %v3021_v36 = vrot.slane %v3020_v34, 2 }
0x159e   :  { %v3016_v37 = vrot.slane %v3015_v35, 1  ;;  %v3022_v38 = vadd.f32 %v3021_v36, %v3020_v34 }
0x15a0   :  { %v3023_v39 = vrot.slane %v3022_v38, 1  ;;  %v3017_v18 = vadd.f32 %v3016_v37, %v3015_v35 }
0x15a2   :  { %v3024_v42 = vadd.f32 %v3023_v39, %v3022_v38 }
0x15a4   :  { %v3026_v44 = vsel %vm3025_vm7, %v3017_v18, %v3024_v42 }
0x15a5   :  { %v3027_v46 = vmul.f32 0.125, %v3026_v44 }
0x15a7   :  { %v3031_v45 = vsel %vm3030_vm8, %v3027_v46, 0.0 }
0x15a8   :  { %3032 = vadd.xlane.f32.xlu0 %v3031_v45 }
0x1635   :  { %v3033_v22 = vpop.xlane.xlu0 %3032 }
0x1636   :  { %v3034_v47 = vmul.f32 0.03125, %v3033_v22 }
0x1638   :  { %v3035_v48 = vsub.f32 %v3027_v46, %v3034_v47 }
0x163a   :  { %v3036_v49 = vmul.f32 %v3035_v48, %v3035_v48 }
0x163c   :  { %v3037_v50 = vsel %vm3030_vm8, %v3036_v49, 0.0 }
0x163d   :  { %3038 = vadd.xlane.f32.xlu1 %v3037_v50 }
0x16ca   :  { %v3039_v53 = vpop.xlane.xlu1 %3038 }
0x16cb   :  { %v3040_v54 = vmul.f32 0.03125, %v3039_v53 }
0x16cd   :  { %v3041_v55 = vadd.f32 1e-12, %v3040_v54 }
0x16cf   :  { %3880 = vrsqrt.f32 %v3041_v55 }
0x16d9   :  { %v3881_v56 = vpop.eup %3880 }
0x16da   :  { %v3043_v59 = vmul.f32 %v3881_v56, %v3035_v48 }
0x16dc   :  { %v3050_v62 = vmul.f32 %v3271_v57, %v3043_v59 }
0x16de   :  { %v3057_v63 = vadd.f32 %v3272_v60, %v3050_v62 }
0x16e0   :  { %v3058_v0 = vpack.c.bf16 %v3057_v63, %v3057_v63 }
0x16e2   :  { %3692 = vmatmul.mubr.msk.bf16.vlgmr.msra.gmra.mrb[80].mxu1 %vm362_vm1, %v3058_v0 }
0x17b5   :  { %v3119_v1 = vpop.f32.mrb[80].mxu1 }
0x17b6   :  { %v3120_v3 = vadd.f32 %v3273_v2, %v3119_v1  ;;  %v3693_v41 = vpop.f32.mrb[81].mxu1 }
0x17b7   :  { %v3122_v5 = vpop.f32.mrb[82].mxu1 }
0x17b8   :  { %3125 = vst [vmem:[#allocation2] sm:$0x3] %v3120_v3  ;;  %v3694_v43 = vpop.f32.mrb[83].mxu1 }
0x17b9   :  { %3893 = shalt.err (!%p3890_p4)
}
0x17ba   :  { %s3894_s18 = scalar_lea.hbm %s4766_s19, 32 }
0x17bb   :  { %p3895_p5 = scmp.ne.s32.totalorder %s4766_s19, %s3894_s18  ;;  %p3898_p6 = scmp.lt.u32.totalorder %s3894_s18, %s4766_s19 }
0x17bd   :  { %p3900_p7 = pnand %p3898_p6, %p3895_p5 }
0x17bf   :  { %3903 = shalt.err (!%p3900_p7)
}
0x17c0   :  { %3135 = dma.vmem_to_hbm [thread:$0]  %s3133_s23, 32, %s4766_s19, [#allocation3]  }
0x17c1   :  { %3904 = dma.done.wait [#allocation3], 32  }
0x17c2   :  { %3905 = vsyncadd [#allocation3], 4294967264 }
0x17c3   :  { %3139 = vsyncpa [#allocation3], 1 }

</bundles_post_ra>
